<compile_context>
chip_gen: v7x
topology: tpu7x:2x2x1
jax: 0.10.0
libtpu: 0.0.40
codegen_flags: <defaults>
</compile_context>

<pallas_src>
import math
from functools import partial

import jax
import jax.numpy as jnp
from jax.experimental import pallas as pl
from jax.experimental.pallas import tpu as pltpu

LN_EPS = 1e-5
_INV_SQRT2 = 1.0 / math.sqrt(2.0)


# ------------------------- in-kernel math helpers -------------------------

def _erf_approx(x):
    # Abramowitz & Stegun 7.1.26 polynomial, |abs err| < 1.5e-7.  The divide goes to the
    # EUP via approx reciprocal (the EUP slot is otherwise idle except for the exp).
    a1, a2, a3, a4, a5 = 0.254829592, -0.284496736, 1.421413741, -1.453152027, 1.061405429
    p = 0.3275911
    ax = jnp.abs(x)
    t = pl.reciprocal(1.0 + p * ax, approx=True)
    poly = ((((a5 * t + a4) * t + a3) * t + a2) * t + a1) * t
    y = 1.0 - poly * jnp.exp(-ax * ax)
    return jnp.where(x >= 0, y, -y)


def _gelu(x):
    # exact (erf-based) GELU, matching torch.nn.functional.gelu default (approximate='none')
    return 0.5 * x * (1.0 + _erf_approx(x * _INV_SQRT2))


def _channel_layernorm(x, gamma, beta):
    # normalize over the channel axis (axis 0 of [C, L]) per time step == LayerNorm(channels)
    mu = jnp.mean(x, axis=0, keepdims=True)
    var = jnp.mean(jnp.square(x - mu), axis=0, keepdims=True)
    return (x - mu) * jax.lax.rsqrt(var + LN_EPS) * gamma + beta


def _write_tap_slab(im_ref, row0, src, mk, d):
    """im[row0:row0+C, l] = src[:, l + d] * mk[0, l], zero where l + d is out of range.

    mk already carries the sequence mask shifted by d with batch-boundary zeros, so this is
    exactly the zero-padded, masked conv input for tap offset d.  Static d (tiny), so the
    branches resolve at trace time; only |d| boundary columns get explicit zero stores.
    """
    C, L = src.shape
    r0, r1 = row0, row0 + C
    dt = im_ref.dtype
    if d == 0:
        im_ref[r0:r1, :] = (src * mk).astype(dt)
    elif d > 0:
        im_ref[r0:r1, :L - d] = (src[:, d:] * mk[:, :L - d]).astype(dt)
        im_ref[r0:r1, L - d:] = jnp.zeros((C, d), dt)
    else:
        a = -d
        im_ref[r0:r1, a:] = (src[:, :L - a] * mk[:, a:]).astype(dt)
        im_ref[r0:r1, 0:a] = jnp.zeros((C, a), dt)


# ------------------------- fused Pallas kernel -------------------------

def _duration_predictor_kernel(
    x_ref,      # [Cin, L]   L = Bt * T_pad  (Bt batches packed along lanes), matmul dtype
    mk_ref,     # [K, L]     per-tap shifted masks with batch-boundary zeros (f32)
    w1_ref,     # [H, K*Cin] conv_1 weights in im2col layout, matmul dtype
    w2_ref,     # [H, K*H]   conv_2 weights in im2col layout, matmul dtype
    p_ref,      # [H, 8] f32: cols = [b1, ln1_g, ln1_b, b2, ln2_g*proj_w, c_beta, proj_b, 0]
    o_ref,      # [1, L] f32
    im1_ref,    # [K*Cin, L] VMEM scratch (stage-1 im2col operand)
    im2_ref,    # [K*H, L]   VMEM scratch (stage-2 im2col operand)
    *, ksize, pad,
):
    cin = x_ref.shape[0]
    hch = w1_ref.shape[0]

    # ---- stage 1: masked, tap-shifted im2col -> ONE MXU matmul ----
    x = x_ref[...]
    for k in range(ksize):
        _write_tap_slab(im1_ref, k * cin, x, mk_ref[k:k + 1, :], k - pad)
    acc = jnp.dot(w1_ref[...], im1_ref[...], preferred_element_type=jnp.float32)   # [H, L]
    acc = acc + p_ref[:, 0:1]                                   # + conv_1 bias
    acc = _gelu(acc)
    acc = _channel_layernorm(acc, p_ref[:, 1:2], p_ref[:, 2:3])
    # TODO(synk): nn.Dropout(p_dropout) is identity in eval mode; training-mode stochastic
    #             masking (pltpu.prng_*) is not implemented here.

    # ---- stage 2 ----
    for k in range(ksize):
        _write_tap_slab(im2_ref, k * hch, acc, mk_ref[k:k + 1, :], k - pad)
    acc2 = jnp.dot(w2_ref[...], im2_ref[...], preferred_element_type=jnp.float32)  # [H, L]
    acc2 = acc2 + p_ref[:, 3:4]                                 # + conv_2 bias
    acc2 = _gelu(acc2)

    # ---- LayerNorm-2 with the Cout=1 projection folded into its affine ----
    mu = jnp.mean(acc2, axis=0, keepdims=True)
    var = jnp.mean(jnp.square(acc2 - mu), axis=0, keepdims=True)
    hnorm = (acc2 - mu) * jax.lax.rsqrt(var + LN_EPS)           # [H, L]

    mask = mk_ref[pad:pad + 1, :]                               # d = 0 row == the raw mask
    s = jnp.sum(hnorm * p_ref[:, 4:5], axis=0, keepdims=True)   # sum_c (proj_w*ln2_g)[c]*hn
    # proj((hnorm*g2+b2)*mask) * mask == ((s + c_beta)*mask + proj_b) * mask
    y = ((s + p_ref[0:1, 5:6]) * mask + p_ref[0:1, 6:7]) * mask
    o_ref[...] = y.astype(o_ref.dtype)


# ------------------------- wrapper -------------------------

def duration_predictor_forward(params, x, x_mask, g=None, *,
                               matmul_dtype=jnp.bfloat16, batch_tile=None):
    """x: [B, Cin, T], x_mask: [B, 1, T], optional g: [B, gin, T] -> [B, 1, T]."""
    B, Cin, T = x.shape
    H, _, K = params["w1"].shape
    pad = K // 2
    out_dtype = x.dtype

    if g is not None:
        # cond is a 1x1 Conv1d (zero-initialized in the module); done in plain JAX so the
        # Pallas kernel stays focused on the main path.
        cw, cb = params["cond_w"], params["cond_b"]
        x = x + jnp.einsum("oc,bct->bot", cw[:, :, 0], g) + cb[None, :, None]

    # ---- lane-dense packing: pad T to a multiple of 128, pack Bt batches per grid step ----
    T_pad = ((T + 127) // 128) * 128
    if batch_tile is None:
        # target >= ~512 lanes per step so step overhead amortizes and the MXU N-dim fills.
        # TODO(synk): prefer an even number of grid steps on v7x (2 TensorCores).
        batch_tile = max(1, min(B, 512 // T_pad))
    Bt = batch_tile
    nblk = -(-B // Bt)
    B_pad = nblk * Bt
    Lb = Bt * T_pad

    mask2 = jnp.pad(x_mask.reshape(B, T).astype(jnp.float32),
                    ((0, B_pad - B), (0, T_pad - T)))
    xp = jnp.pad(x, ((0, B_pad - B), (0, 0), (0, T_pad - T))).astype(matmul_dtype)
    # [B_pad, Cin, T_pad] -> [nblk, Cin, Bt*T_pad]  (batches packed along the lane axis)
    xp = xp.reshape(nblk, Bt, Cin, T_pad).transpose(0, 2, 1, 3).reshape(nblk, Cin, Lb)

    # per-tap shifted masks with batch-boundary zeros: mk[k, b, t] = mask[b, t+k-pad] or 0
    mks = []
    for k in range(K):
        d = k - pad
        if d == 0:
            mks.append(mask2)
        elif d > 0:
            mks.append(jnp.pad(mask2[:, d:], ((0, 0), (0, d))))
        else:
            mks.append(jnp.pad(mask2[:, :d], ((0, 0), (-d, 0))))
    mk = jnp.stack(mks, axis=0)                                          # [K, B_pad, T_pad]
    mk = mk.reshape(K, nblk, Bt, T_pad).transpose(1, 0, 2, 3).reshape(nblk, K, Lb)

    # conv weights [H, Cin/H, K] -> [H, K*Cin/H] (row-block per tap k) in matmul dtype
    w1p = jnp.transpose(params["w1"], (0, 2, 1)).reshape(H, K * Cin).astype(matmul_dtype)
    w2p = jnp.transpose(params["w2"], (0, 2, 1)).reshape(H, K * H).astype(matmul_dtype)

    # per-channel params packed into one [H, 8] matrix; proj folded into the LN2 affine.
    pw = params["proj_w"][0, :, 0]                                       # [H]
    gp = params["ln2_gamma"] * pw
    c_beta = jnp.sum(pw * params["ln2_beta"])
    pmat = jnp.zeros((H, 8), jnp.float32)
    pmat = pmat.at[:, 0].set(params["b1"])
    pmat = pmat.at[:, 1].set(params["ln1_gamma"])
    pmat = pmat.at[:, 2].set(params["ln1_beta"])
    pmat = pmat.at[:, 3].set(params["b2"])
    pmat = pmat.at[:, 4].set(gp)
    pmat = pmat.at[0, 5].set(c_beta)
    pmat = pmat.at[0, 6].set(params["proj_b"][0])

    kern = partial(_duration_predictor_kernel, ksize=K, pad=pad)

    out = pl.pallas_call(
        kern,
        out_shape=jax.ShapeDtypeStruct((nblk, 1, Lb), jnp.float32),
        grid=(nblk,),
        in_specs=[
            pl.BlockSpec((None, Cin, Lb), lambda i: (i, 0, 0)),   # x (lane-packed batches)
            pl.BlockSpec((None, K, Lb), lambda i: (i, 0, 0)),     # per-tap masks
            pl.BlockSpec((H, K * Cin), lambda i: (0, 0)),         # w1 (im2col layout)
            pl.BlockSpec((H, K * H), lambda i: (0, 0)),           # w2 (im2col layout)
            pl.BlockSpec((H, 8), lambda i: (0, 0)),               # packed per-channel params
        ],
        out_specs=pl.BlockSpec((None, 1, Lb), lambda i: (i, 0, 0)),
        scratch_shapes=[
            pltpu.VMEM((K * Cin, Lb), matmul_dtype),              # stage-1 im2col operand
            pltpu.VMEM((K * H, Lb), matmul_dtype),                # stage-2 im2col operand
        ],
        compiler_params=pltpu.CompilerParams(
            dimension_semantics=("parallel",),                    # blocks shard across TCs
            vmem_limit_bytes=32 * 1024 * 1024,                    # safe on v7x's 64 MiB VMEM
        ),
    )(xp, mk, w1p, w2p, pmat)

    out = out.reshape(B_pad, T_pad)[:B, :T].reshape(B, 1, T).astype(out_dtype)
    return out


# ------------------------- plain-JAX reference (correctness check) -------------------------

def duration_predictor_reference(params, x, x_mask, g=None):
    if g is not None:
        cw, cb = params["cond_w"], params["cond_b"]
        x = x + jnp.einsum("oc,bct->bot", cw[:, :, 0], g) + cb[None, :, None]

    def conv1d(h, w, b):
        k = w.shape[-1]
        y = jax.lax.conv_general_dilated(
            h, w, window_strides=(1,), padding=[(k // 2, k // 2)],
            dimension_numbers=("NCH", "OIH", "NCH"))
        return y + b[None, :, None]

    def ln(h, gamma, beta):
        mu = h.mean(axis=1, keepdims=True)
        var = ((h - mu) ** 2).mean(axis=1, keepdims=True)
        return (h - mu) * jax.lax.rsqrt(var + LN_EPS) * gamma[None, :, None] + beta[None, :, None]

    h = conv1d(x * x_mask, params["w1"], params["b1"])
    h = ln(jax.nn.gelu(h, approximate=False), params["ln1_gamma"], params["ln1_beta"])
    h = conv1d(h * x_mask, params["w2"], params["b2"])
    h = ln(jax.nn.gelu(h, approximate=False), params["ln2_gamma"], params["ln2_beta"])
    y = conv1d(h * x_mask, params["proj_w"], params["proj_b"])
    return y * x_mask


# ------------------------- deterministic parameter init (mirrors the torch module) ----------

def init_params(key, in_channels, hidden_channels, kernel_size):
    k1, k2, k3, k4, k5 = jax.random.split(key, 5)
    gain = math.sqrt(2.0)                                        # kaiming gain, 'relu'
    std = gain / math.sqrt(hidden_channels * kernel_size)        # fan_out = Cout * K
    b1_bound = 1.0 / math.sqrt(in_channels * kernel_size)        # torch default bias init
    b2_bound = 1.0 / math.sqrt(hidden_channels * kernel_size)
    bp_bound = 1.0 / math.sqrt(hidden_channels)
    return {
        "w1": jax.random.normal(k1, (hidden_channels, in_channels, kernel_size), jnp.float32) * std,
        "b1": jax.random.uniform(k2, (hidden_channels,), jnp.float32, -b1_bound, b1_bound),
        "ln1_gamma": jnp.ones((hidden_channels,), jnp.float32),
        "ln1_beta": jnp.zeros((hidden_channels,), jnp.float32),
        "w2": jax.random.normal(k3, (hidden_channels, hidden_channels, kernel_size), jnp.float32) * std,
        "b2": jax.random.uniform(k4, (hidden_channels,), jnp.float32, -b2_bound, b2_bound),
        "ln2_gamma": jnp.ones((hidden_channels,), jnp.float32),
        "ln2_beta": jnp.zeros((hidden_channels,), jnp.float32),
        "proj_w": jnp.zeros((1, hidden_channels, 1), jnp.float32),   # nn.init.zeros_
        "proj_b": jax.random.uniform(k5, (1,), jnp.float32, -bp_bound, bp_bound),
    }


# ------------------------- demo -------------------------

if __name__ == "__main__":
    key = jax.random.PRNGKey(0)
    kp, kx, kw = jax.random.split(key, 3)

    B, CIN, HID, K, T = 2, 32, 64, 3, 100            # T deliberately not a multiple of 128
    params = init_params(kp, CIN, HID, K)
    # The module inits proj.weight to zero (output = masked bias); perturb it here so the
    # numerical check actually exercises the full conv->gelu->LN->conv->gelu->LN->proj path.
    params["proj_w"] = 0.05 * jax.random.normal(kw, (1, HID, 1), jnp.float32)

    x = jax.random.normal(kx, (B, CIN, T), jnp.float32)
    lengths = jnp.array([T, 72], jnp.int32)
    x_mask = (jax.lax.broadcasted_iota(jnp.int32, (B, 1, T), 2)
              < lengths[:, None, None]).astype(jnp.float32)

    ref = duration_predictor_reference(params, x, x_mask)

    # f32 matmul-operand path: tight check against the XLA reference.
    out_f32 = duration_predictor_forward(params, x, x_mask, matmul_dtype=jnp.float32)
    jax.block_until_ready((out_f32, ref))
    assert out_f32.shape == (B, 1, T)
    err32 = float(jnp.max(jnp.abs(out_f32 - ref)))
    assert bool(jnp.allclose(out_f32, ref, atol=5e-3, rtol=5e-3)), f"f32 max abs err {err32}"

    # default bf16 matmul operands (f32 accumulation): looser tolerance.
    out_bf16 = duration_predictor_forward(params, x, x_mask)
    jax.block_until_ready(out_bf16)
    assert bool(jnp.all(jnp.isfinite(out_bf16)))
    errbf = float(jnp.max(jnp.abs(out_bf16 - ref)))
    assert bool(jnp.allclose(out_bf16, ref, atol=8e-2, rtol=5e-2)), f"bf16 max abs err {errbf}"

    print("KERNEL_OK")
</pallas_src>

<mosaic_0001>
module attributes {stable_mosaic.version = 11 : i64} {
  func.func @_duration_predictor_kernel(%arg0: i32, %arg1: memref<1x32x256xf32, #tpu.memory_space<vmem>>, %arg2: memref<1x3x256xf32, #tpu.memory_space<vmem>>, %arg3: memref<64x96xf32, #tpu.memory_space<vmem>>, %arg4: memref<64x192xf32, #tpu.memory_space<vmem>>, %arg5: memref<64x8xf32, #tpu.memory_space<vmem>>, %arg6: memref<1x1x256xf32, #tpu.memory_space<vmem>>, %arg7: memref<96x256xf32, #tpu.memory_space<vmem>>, %arg8: memref<192x256xf32, #tpu.memory_space<vmem>>) attributes {dimension_semantics = [#tpu.dimension_semantics<parallel>], iteration_bounds = array<i64: 1>, scalar_prefetch = 0 : i64, scratch_operands = 2 : i64, tpu.core_type = #tpu.core_type<tc>, window_params = [{transform_indices = @transform_0, window_bounds = array<i64: 1, 32, 256>}, {transform_indices = @transform_1, window_bounds = array<i64: 1, 3, 256>}, {pipeline_mode = #tpu.pipeline_mode<synchronous>, transform_indices = @transform_2, window_bounds = array<i64: 64, 96>}, {pipeline_mode = #tpu.pipeline_mode<synchronous>, transform_indices = @transform_3, window_bounds = array<i64: 64, 192>}, {pipeline_mode = #tpu.pipeline_mode<synchronous>, transform_indices = @transform_4, window_bounds = array<i64: 64, 8>}, {transform_indices = @transform_5, window_bounds = array<i64: 1, 1, 256>}]} {
    %c0 = arith.constant 0 : index
    %c0_0 = arith.constant 0 : index
    %c0_1 = arith.constant 0 : index
    %0 = vector.load %arg1[%c0, %c0_0, %c0_1] : memref<1x32x256xf32, #tpu.memory_space<vmem>>, vector<1x32x256xf32>
    %1 = vector.shape_cast %0 : vector<1x32x256xf32> to vector<32x256xf32>
    %c0_2 = arith.constant 0 : index
    %c0_3 = arith.constant 0 : index
    %c0_4 = arith.constant 0 : index
    %2 = vector.load %arg2[%c0_2, %c0_3, %c0_4] : memref<1x3x256xf32, #tpu.memory_space<vmem>>, vector<1x1x256xf32>
    %3 = vector.shape_cast %2 : vector<1x1x256xf32> to vector<1x256xf32>
    %4 = vector.extract_strided_slice %1 {offsets = [0, 0], sizes = [32, 255], strides = [1, 1]} : vector<32x256xf32> to vector<32x255xf32>
    %5 = vector.extract_strided_slice %3 {offsets = [0, 1], sizes = [1, 255], strides = [1, 1]} : vector<1x256xf32> to vector<1x255xf32>
    %6 = vector.broadcast %5 : vector<1x255xf32> to vector<32x255xf32>
    %7 = arith.mulf %4, %6 : vector<32x255xf32>
    %c0_5 = arith.constant 0 : index
    %c1 = arith.constant 1 : index
    %8 = vector.load %arg7[%c0_5, %c1] : memref<96x256xf32, #tpu.memory_space<vmem>>, vector<32x255xf32>
    tpu.vector_store %arg7[%c0_5, %c1], %7 {strides = array<i32>} : memref<96x256xf32, #tpu.memory_space<vmem>>, vector<32x255xf32>,
    %cst = arith.constant 0.000000e+00 : f32
    %9 = vector.broadcast %cst : f32 to vector<32x1xf32>
    %c0_6 = arith.constant 0 : index
    %c0_7 = arith.constant 0 : index
    %10 = vector.load %arg7[%c0_6, %c0_7] : memref<96x256xf32, #tpu.memory_space<vmem>>, vector<32x1xf32>
    tpu.vector_store %arg7[%c0_6, %c0_7], %9 {strides = array<i32>} : memref<96x256xf32, #tpu.memory_space<vmem>>, vector<32x1xf32>,
    %c0_8 = arith.constant 0 : index
    %c1_9 = arith.constant 1 : index
    %c0_10 = arith.constant 0 : index
    %11 = vector.load %arg2[%c0_8, %c1_9, %c0_10] : memref<1x3x256xf32, #tpu.memory_space<vmem>>, vector<1x1x256xf32>
    %12 = vector.shape_cast %11 : vector<1x1x256xf32> to vector<1x256xf32>
    %13 = vector.broadcast %12 : vector<1x256xf32> to vector<32x256xf32>
    %14 = arith.mulf %1, %13 : vector<32x256xf32>
    %c32 = arith.constant 32 : index
    %c0_11 = arith.constant 0 : index
    %15 = vector.load %arg7[%c32, %c0_11] : memref<96x256xf32, #tpu.memory_space<vmem>>, vector<32x256xf32>
    tpu.vector_store %arg7[%c32, %c0_11], %14 {strides = array<i32>} : memref<96x256xf32, #tpu.memory_space<vmem>>, vector<32x256xf32>,
    %c0_12 = arith.constant 0 : index
    %c2 = arith.constant 2 : index
    %c0_13 = arith.constant 0 : index
    %16 = vector.load %arg2[%c0_12, %c2, %c0_13] : memref<1x3x256xf32, #tpu.memory_space<vmem>>, vector<1x1x256xf32>
    %17 = vector.shape_cast %16 : vector<1x1x256xf32> to vector<1x256xf32>
    %18 = vector.extract_strided_slice %1 {offsets = [0, 1], sizes = [32, 255], strides = [1, 1]} : vector<32x256xf32> to vector<32x255xf32>
    %19 = vector.extract_strided_slice %17 {offsets = [0, 0], sizes = [1, 255], strides = [1, 1]} : vector<1x256xf32> to vector<1x255xf32>
    %20 = vector.broadcast %19 : vector<1x255xf32> to vector<32x255xf32>
    %21 = arith.mulf %18, %20 : vector<32x255xf32>
    %c64 = arith.constant 64 : index
    %c0_14 = arith.constant 0 : index
    %22 = vector.load %arg7[%c64, %c0_14] : memref<96x256xf32, #tpu.memory_space<vmem>>, vector<32x255xf32>
    tpu.vector_store %arg7[%c64, %c0_14], %21 {strides = array<i32>} : memref<96x256xf32, #tpu.memory_space<vmem>>, vector<32x255xf32>,
    %cst_15 = arith.constant 0.000000e+00 : f32
    %23 = vector.broadcast %cst_15 : f32 to vector<32x1xf32>
    %c64_16 = arith.constant 64 : index
    %c255 = arith.constant 255 : index
    %24 = vector.load %arg7[%c64_16, %c255] : memref<96x256xf32, #tpu.memory_space<vmem>>, vector<32x1xf32>
    tpu.vector_store %arg7[%c64_16, %c255], %23 {strides = array<i32>} : memref<96x256xf32, #tpu.memory_space<vmem>>, vector<32x1xf32>,
    %c0_17 = arith.constant 0 : index
    %c0_18 = arith.constant 0 : index
    %25 = vector.load %arg3[%c0_17, %c0_18] : memref<64x96xf32, #tpu.memory_space<vmem>>, vector<64x96xf32>
    %c0_19 = arith.constant 0 : index
    %c0_20 = arith.constant 0 : index
    %26 = vector.load %arg7[%c0_19, %c0_20] : memref<96x256xf32, #tpu.memory_space<vmem>>, vector<96x256xf32>
    %cst_21 = arith.constant dense<0.000000e+00> : vector<64x256xf32>
    %27 = tpu.matmul %25, %26, %cst_21 {dimension_numbers = #tpu.dot_dimension_numbers<[1], [0], [0], [1], [0, 0, 1, 1], [], []>} : vector<64x96xf32>, vector<96x256xf32>, vector<64x256xf32> -> vector<64x256xf32>
    %c0_22 = arith.constant 0 : index
    %c0_23 = arith.constant 0 : index
    %28 = vector.load %arg5[%c0_22, %c0_23] : memref<64x8xf32, #tpu.memory_space<vmem>>, vector<64x1xf32>
    %29 = vector.broadcast %28 : vector<64x1xf32> to vector<64x256xf32>
    %30 = arith.addf %27, %29 : vector<64x256xf32>
    %cst_24 = arith.constant 5.000000e-01 : f32
    %31 = vector.broadcast %cst_24 : f32 to vector<64x256xf32>
    %32 = arith.mulf %31, %30 : vector<64x256xf32>
    %cst_25 = arith.constant 0.707106769 : f32
    %33 = vector.broadcast %cst_25 : f32 to vector<64x256xf32>
    %34 = arith.mulf %30, %33 : vector<64x256xf32>
    %35 = math.absf %34 : vector<64x256xf32>
    %cst_26 = arith.constant 0.327591091 : f32
    %36 = vector.broadcast %cst_26 : f32 to vector<64x256xf32>
    %37 = arith.mulf %36, %35 : vector<64x256xf32>
    %cst_27 = arith.constant 1.000000e+00 : f32
    %38 = vector.broadcast %cst_27 : f32 to vector<64x256xf32>
    %39 = arith.addf %38, %37 : vector<64x256xf32>
    %40 = tpu.reciprocal %39 {approx = true} : vector<64x256xf32> -> vector<64x256xf32>
    %cst_28 = arith.constant 1.06140542 : f32
    %41 = vector.broadcast %cst_28 : f32 to vector<64x256xf32>
    %42 = arith.mulf %41, %40 : vector<64x256xf32>
    %cst_29 = arith.constant -1.45315206 : f32
    %43 = vector.broadcast %cst_29 : f32 to vector<64x256xf32>
    %44 = arith.addf %42, %43 : vector<64x256xf32>
    %45 = arith.mulf %44, %40 : vector<64x256xf32>
    %cst_30 = arith.constant 1.42141378 : f32
    %46 = vector.broadcast %cst_30 : f32 to vector<64x256xf32>
    %47 = arith.addf %45, %46 : vector<64x256xf32>
    %48 = arith.mulf %47, %40 : vector<64x256xf32>
    %cst_31 = arith.constant -0.284496725 : f32
    %49 = vector.broadcast %cst_31 : f32 to vector<64x256xf32>
    %50 = arith.addf %48, %49 : vector<64x256xf32>
    %51 = arith.mulf %50, %40 : vector<64x256xf32>
    %cst_32 = arith.constant 0.254829586 : f32
    %52 = vector.broadcast %cst_32 : f32 to vector<64x256xf32>
    %53 = arith.addf %51, %52 : vector<64x256xf32>
    %54 = arith.mulf %53, %40 : vector<64x256xf32>
    %cst_33 = arith.constant 0.000000e+00 : f32
    %55 = vector.broadcast %cst_33 : f32 to vector<64x256xf32>
    %56 = arith.subf %55, %35 : vector<64x256xf32>
    %57 = arith.mulf %56, %35 : vector<64x256xf32>
    %58 = math.exp %57 : vector<64x256xf32>
    %59 = arith.mulf %54, %58 : vector<64x256xf32>
    %cst_34 = arith.constant 1.000000e+00 : f32
    %60 = vector.broadcast %cst_34 : f32 to vector<64x256xf32>
    %61 = arith.subf %60, %59 : vector<64x256xf32>
    %cst_35 = arith.constant 0.000000e+00 : f32
    %62 = vector.broadcast %cst_35 : f32 to vector<64x256xf32>
    %63 = arith.cmpf oge, %34, %62 : vector<64x256xf32>
    %cst_36 = arith.constant 0.000000e+00 : f32
    %64 = vector.broadcast %cst_36 : f32 to vector<64x256xf32>
    %65 = arith.subf %64, %61 : vector<64x256xf32>
    %66 = arith.select %63, %61, %65 : vector<64x256xi1>, vector<64x256xf32>
    %cst_37 = arith.constant 1.000000e+00 : f32
    %67 = vector.broadcast %cst_37 : f32 to vector<64x256xf32>
    %68 = arith.addf %67, %66 : vector<64x256xf32>
    %69 = arith.mulf %32, %68 : vector<64x256xf32>
    %c0_38 = arith.constant 0 : index
    %c1_39 = arith.constant 1 : index
    %70 = vector.load %arg5[%c0_38, %c1_39] : memref<64x8xf32, #tpu.memory_space<vmem>>, vector<64x1xf32>
    %c0_40 = arith.constant 0 : index
    %c2_41 = arith.constant 2 : index
    %71 = vector.load %arg5[%c0_40, %c2_41] : memref<64x8xf32, #tpu.memory_space<vmem>>, vector<64x1xf32>
    %cst_42 = arith.constant dense<0.000000e+00> : vector<256xf32>
    %72 = vector.multi_reduction <add>, %69, %cst_42 [0] : vector<64x256xf32> to vector<256xf32>
    %73 = vector.shape_cast %72 : vector<256xf32> to vector<1x256xf32>
    %cst_43 = arith.constant 6.400000e+01 : f32
    %74 = vector.broadcast %cst_43 : f32 to vector<1x256xf32>
    %75 = arith.divf %73, %74 : vector<1x256xf32>
    %76 = vector.broadcast %75 : vector<1x256xf32> to vector<64x256xf32>
    %77 = arith.subf %69, %76 : vector<64x256xf32>
    %78 = arith.mulf %77, %77 : vector<64x256xf32>
    %cst_44 = arith.constant dense<0.000000e+00> : vector<256xf32>
    %79 = vector.multi_reduction <add>, %78, %cst_44 [0] : vector<64x256xf32> to vector<256xf32>
    %80 = vector.shape_cast %79 : vector<256xf32> to vector<1x256xf32>
    %cst_45 = arith.constant 6.400000e+01 : f32
    %81 = vector.broadcast %cst_45 : f32 to vector<1x256xf32>
    %82 = arith.divf %80, %81 : vector<1x256xf32>
    %83 = vector.broadcast %75 : vector<1x256xf32> to vector<64x256xf32>
    %84 = arith.subf %69, %83 : vector<64x256xf32>
    %cst_46 = arith.constant 9.99999974E-6 : f32
    %85 = vector.broadcast %cst_46 : f32 to vector<1x256xf32>
    %86 = arith.addf %82, %85 : vector<1x256xf32>
    %87 = math.rsqrt %86 : vector<1x256xf32>
    %88 = vector.broadcast %87 : vector<1x256xf32> to vector<64x256xf32>
    %89 = arith.mulf %84, %88 : vector<64x256xf32>
    %90 = vector.broadcast %70 : vector<64x1xf32> to vector<64x256xf32>
    %91 = arith.mulf %89, %90 : vector<64x256xf32>
    %92 = vector.broadcast %71 : vector<64x1xf32> to vector<64x256xf32>
    %93 = arith.addf %91, %92 : vector<64x256xf32>
    %c0_47 = arith.constant 0 : index
    %c0_48 = arith.constant 0 : index
    %c0_49 = arith.constant 0 : index
    %94 = vector.load %arg2[%c0_47, %c0_48, %c0_49] : memref<1x3x256xf32, #tpu.memory_space<vmem>>, vector<1x1x256xf32>
    %95 = vector.shape_cast %94 : vector<1x1x256xf32> to vector<1x256xf32>
    %96 = vector.extract_strided_slice %93 {offsets = [0, 0], sizes = [64, 255], strides = [1, 1]} : vector<64x256xf32> to vector<64x255xf32>
    %97 = vector.extract_strided_slice %95 {offsets = [0, 1], sizes = [1, 255], strides = [1, 1]} : vector<1x256xf32> to vector<1x255xf32>
    %98 = vector.broadcast %97 : vector<1x255xf32> to vector<64x255xf32>
    %99 = arith.mulf %96, %98 : vector<64x255xf32>
    %c0_50 = arith.constant 0 : index
    %c1_51 = arith.constant 1 : index
    %100 = vector.load %arg8[%c0_50, %c1_51] : memref<192x256xf32, #tpu.memory_space<vmem>>, vector<64x255xf32>
    tpu.vector_store %arg8[%c0_50, %c1_51], %99 {strides = array<i32>} : memref<192x256xf32, #tpu.memory_space<vmem>>, vector<64x255xf32>,
    %cst_52 = arith.constant 0.000000e+00 : f32
    %101 = vector.broadcast %cst_52 : f32 to vector<64x1xf32>
    %c0_53 = arith.constant 0 : index
    %c0_54 = arith.constant 0 : index
    %102 = vector.load %arg8[%c0_53, %c0_54] : memref<192x256xf32, #tpu.memory_space<vmem>>, vector<64x1xf32>
    tpu.vector_store %arg8[%c0_53, %c0_54], %101 {strides = array<i32>} : memref<192x256xf32, #tpu.memory_space<vmem>>, vector<64x1xf32>,
    %c0_55 = arith.constant 0 : index
    %c1_56 = arith.constant 1 : index
    %c0_57 = arith.constant 0 : index
    %103 = vector.load %arg2[%c0_55, %c1_56, %c0_57] : memref<1x3x256xf32, #tpu.memory_space<vmem>>, vector<1x1x256xf32>
    %104 = vector.shape_cast %103 : vector<1x1x256xf32> to vector<1x256xf32>
    %105 = vector.broadcast %104 : vector<1x256xf32> to vector<64x256xf32>
    %106 = arith.mulf %93, %105 : vector<64x256xf32>
    %c64_58 = arith.constant 64 : index
    %c0_59 = arith.constant 0 : index
    %107 = vector.load %arg8[%c64_58, %c0_59] : memref<192x256xf32, #tpu.memory_space<vmem>>, vector<64x256xf32>
    tpu.vector_store %arg8[%c64_58, %c0_59], %106 {strides = array<i32>} : memref<192x256xf32, #tpu.memory_space<vmem>>, vector<64x256xf32>,
    %c0_60 = arith.constant 0 : index
    %c2_61 = arith.constant 2 : index
    %c0_62 = arith.constant 0 : index
    %108 = vector.load %arg2[%c0_60, %c2_61, %c0_62] : memref<1x3x256xf32, #tpu.memory_space<vmem>>, vector<1x1x256xf32>
    %109 = vector.shape_cast %108 : vector<1x1x256xf32> to vector<1x256xf32>
    %110 = vector.extract_strided_slice %93 {offsets = [0, 1], sizes = [64, 255], strides = [1, 1]} : vector<64x256xf32> to vector<64x255xf32>
    %111 = vector.extract_strided_slice %109 {offsets = [0, 0], sizes = [1, 255], strides = [1, 1]} : vector<1x256xf32> to vector<1x255xf32>
    %112 = vector.broadcast %111 : vector<1x255xf32> to vector<64x255xf32>
    %113 = arith.mulf %110, %112 : vector<64x255xf32>
    %c128 = arith.constant 128 : index
    %c0_63 = arith.constant 0 : index
    %114 = vector.load %arg8[%c128, %c0_63] : memref<192x256xf32, #tpu.memory_space<vmem>>, vector<64x255xf32>
    tpu.vector_store %arg8[%c128, %c0_63], %113 {strides = array<i32>} : memref<192x256xf32, #tpu.memory_space<vmem>>, vector<64x255xf32>,
    %cst_64 = arith.constant 0.000000e+00 : f32
    %115 = vector.broadcast %cst_64 : f32 to vector<64x1xf32>
    %c128_65 = arith.constant 128 : index
    %c255_66 = arith.constant 255 : index
    %116 = vector.load %arg8[%c128_65, %c255_66] : memref<192x256xf32, #tpu.memory_space<vmem>>, vector<64x1xf32>
    tpu.vector_store %arg8[%c128_65, %c255_66], %115 {strides = array<i32>} : memref<192x256xf32, #tpu.memory_space<vmem>>, vector<64x1xf32>,
    %c0_67 = arith.constant 0 : index
    %c0_68 = arith.constant 0 : index
    %117 = vector.load %arg4[%c0_67, %c0_68] : memref<64x192xf32, #tpu.memory_space<vmem>>, vector<64x192xf32>
    %c0_69 = arith.constant 0 : index
    %c0_70 = arith.constant 0 : index
    %118 = vector.load %arg8[%c0_69, %c0_70] : memref<192x256xf32, #tpu.memory_space<vmem>>, vector<192x256xf32>
    %cst_71 = arith.constant dense<0.000000e+00> : vector<64x256xf32>
    %119 = tpu.matmul %117, %118, %cst_71 {dimension_numbers = #tpu.dot_dimension_numbers<[1], [0], [0], [1], [0, 0, 1, 1], [], []>} : vector<64x192xf32>, vector<192x256xf32>, vector<64x256xf32> -> vector<64x256xf32>
    %c0_72 = arith.constant 0 : index
    %c3 = arith.constant 3 : index
    %120 = vector.load %arg5[%c0_72, %c3] : memref<64x8xf32, #tpu.memory_space<vmem>>, vector<64x1xf32>
    %121 = vector.broadcast %120 : vector<64x1xf32> to vector<64x256xf32>
    %122 = arith.addf %119, %121 : vector<64x256xf32>
    %cst_73 = arith.constant 5.000000e-01 : f32
    %123 = vector.broadcast %cst_73 : f32 to vector<64x256xf32>
    %124 = arith.mulf %123, %122 : vector<64x256xf32>
    %cst_74 = arith.constant 0.707106769 : f32
    %125 = vector.broadcast %cst_74 : f32 to vector<64x256xf32>
    %126 = arith.mulf %122, %125 : vector<64x256xf32>
    %127 = math.absf %126 : vector<64x256xf32>
    %cst_75 = arith.constant 0.327591091 : f32
    %128 = vector.broadcast %cst_75 : f32 to vector<64x256xf32>
    %129 = arith.mulf %128, %127 : vector<64x256xf32>
    %cst_76 = arith.constant 1.000000e+00 : f32
    %130 = vector.broadcast %cst_76 : f32 to vector<64x256xf32>
    %131 = arith.addf %130, %129 : vector<64x256xf32>
    %132 = tpu.reciprocal %131 {approx = true} : vector<64x256xf32> -> vector<64x256xf32>
    %cst_77 = arith.constant 1.06140542 : f32
    %133 = vector.broadcast %cst_77 : f32 to vector<64x256xf32>
    %134 = arith.mulf %133, %132 : vector<64x256xf32>
    %cst_78 = arith.constant -1.45315206 : f32
    %135 = vector.broadcast %cst_78 : f32 to vector<64x256xf32>
    %136 = arith.addf %134, %135 : vector<64x256xf32>
    %137 = arith.mulf %136, %132 : vector<64x256xf32>
    %cst_79 = arith.constant 1.42141378 : f32
    %138 = vector.broadcast %cst_79 : f32 to vector<64x256xf32>
    %139 = arith.addf %137, %138 : vector<64x256xf32>
    %140 = arith.mulf %139, %132 : vector<64x256xf32>
    %cst_80 = arith.constant -0.284496725 : f32
    %141 = vector.broadcast %cst_80 : f32 to vector<64x256xf32>
    %142 = arith.addf %140, %141 : vector<64x256xf32>
    %143 = arith.mulf %142, %132 : vector<64x256xf32>
    %cst_81 = arith.constant 0.254829586 : f32
    %144 = vector.broadcast %cst_81 : f32 to vector<64x256xf32>
    %145 = arith.addf %143, %144 : vector<64x256xf32>
    %146 = arith.mulf %145, %132 : vector<64x256xf32>
    %cst_82 = arith.constant 0.000000e+00 : f32
    %147 = vector.broadcast %cst_82 : f32 to vector<64x256xf32>
    %148 = arith.subf %147, %127 : vector<64x256xf32>
    %149 = arith.mulf %148, %127 : vector<64x256xf32>
    %150 = math.exp %149 : vector<64x256xf32>
    %151 = arith.mulf %146, %150 : vector<64x256xf32>
    %cst_83 = arith.constant 1.000000e+00 : f32
    %152 = vector.broadcast %cst_83 : f32 to vector<64x256xf32>
    %153 = arith.subf %152, %151 : vector<64x256xf32>
    %cst_84 = arith.constant 0.000000e+00 : f32
    %154 = vector.broadcast %cst_84 : f32 to vector<64x256xf32>
    %155 = arith.cmpf oge, %126, %154 : vector<64x256xf32>
    %cst_85 = arith.constant 0.000000e+00 : f32
    %156 = vector.broadcast %cst_85 : f32 to vector<64x256xf32>
    %157 = arith.subf %156, %153 : vector<64x256xf32>
    %158 = arith.select %155, %153, %157 : vector<64x256xi1>, vector<64x256xf32>
    %cst_86 = arith.constant 1.000000e+00 : f32
    %159 = vector.broadcast %cst_86 : f32 to vector<64x256xf32>
    %160 = arith.addf %159, %158 : vector<64x256xf32>
    %161 = arith.mulf %124, %160 : vector<64x256xf32>
    %cst_87 = arith.constant dense<0.000000e+00> : vector<256xf32>
    %162 = vector.multi_reduction <add>, %161, %cst_87 [0] : vector<64x256xf32> to vector<256xf32>
    %163 = vector.shape_cast %162 : vector<256xf32> to vector<1x256xf32>
    %cst_88 = arith.constant 6.400000e+01 : f32
    %164 = vector.broadcast %cst_88 : f32 to vector<1x256xf32>
    %165 = arith.divf %163, %164 : vector<1x256xf32>
    %166 = vector.broadcast %165 : vector<1x256xf32> to vector<64x256xf32>
    %167 = arith.subf %161, %166 : vector<64x256xf32>
    %168 = arith.mulf %167, %167 : vector<64x256xf32>
    %cst_89 = arith.constant dense<0.000000e+00> : vector<256xf32>
    %169 = vector.multi_reduction <add>, %168, %cst_89 [0] : vector<64x256xf32> to vector<256xf32>
    %170 = vector.shape_cast %169 : vector<256xf32> to vector<1x256xf32>
    %cst_90 = arith.constant 6.400000e+01 : f32
    %171 = vector.broadcast %cst_90 : f32 to vector<1x256xf32>
    %172 = arith.divf %170, %171 : vector<1x256xf32>
    %173 = vector.broadcast %165 : vector<1x256xf32> to vector<64x256xf32>
    %174 = arith.subf %161, %173 : vector<64x256xf32>
    %cst_91 = arith.constant 9.99999974E-6 : f32
    %175 = vector.broadcast %cst_91 : f32 to vector<1x256xf32>
    %176 = arith.addf %172, %175 : vector<1x256xf32>
    %177 = math.rsqrt %176 : vector<1x256xf32>
    %178 = vector.broadcast %177 : vector<1x256xf32> to vector<64x256xf32>
    %179 = arith.mulf %174, %178 : vector<64x256xf32>
    %c0_92 = arith.constant 0 : index
    %c1_93 = arith.constant 1 : index
    %c0_94 = arith.constant 0 : index
    %180 = vector.load %arg2[%c0_92, %c1_93, %c0_94] : memref<1x3x256xf32, #tpu.memory_space<vmem>>, vector<1x1x256xf32>
    %181 = vector.shape_cast %180 : vector<1x1x256xf32> to vector<1x256xf32>
    %c0_95 = arith.constant 0 : index
    %c4 = arith.constant 4 : index
    %182 = vector.load %arg5[%c0_95, %c4] : memref<64x8xf32, #tpu.memory_space<vmem>>, vector<64x1xf32>
    %183 = vector.broadcast %182 : vector<64x1xf32> to vector<64x256xf32>
    %184 = arith.mulf %179, %183 : vector<64x256xf32>
    %cst_96 = arith.constant dense<0.000000e+00> : vector<256xf32>
    %185 = vector.multi_reduction <add>, %184, %cst_96 [0] : vector<64x256xf32> to vector<256xf32>
    %186 = vector.shape_cast %185 : vector<256xf32> to vector<1x256xf32>
    %c0_97 = arith.constant 0 : index
    %c5 = arith.constant 5 : index
    %187 = vector.load %arg5[%c0_97, %c5] : memref<64x8xf32, #tpu.memory_space<vmem>>, vector<1x1xf32>
    %188 = vector.broadcast %187 : vector<1x1xf32> to vector<1x256xf32>
    %189 = arith.addf %186, %188 : vector<1x256xf32>
    %190 = arith.mulf %189, %181 : vector<1x256xf32>
    %c0_98 = arith.constant 0 : index
    %c6 = arith.constant 6 : index
    %191 = vector.load %arg5[%c0_98, %c6] : memref<64x8xf32, #tpu.memory_space<vmem>>, vector<1x1xf32>
    %192 = vector.broadcast %191 : vector<1x1xf32> to vector<1x256xf32>
    %193 = arith.addf %190, %192 : vector<1x256xf32>
    %194 = arith.mulf %193, %181 : vector<1x256xf32>
    %c0_99 = arith.constant 0 : index
    %c0_100 = arith.constant 0 : index
    %c0_101 = arith.constant 0 : index
    %195 = vector.load %arg6[%c0_99, %c0_100, %c0_101] : memref<1x1x256xf32, #tpu.memory_space<vmem>>, vector<1x1x256xf32>
    %196 = vector.shape_cast %195 : vector<1x1x256xf32> to vector<1x256xf32>
    %197 = vector.shape_cast %194 : vector<1x256xf32> to vector<1x1x256xf32>
    tpu.vector_store %arg6[%c0_99, %c0_100, %c0_101], %197 {strides = array<i32>} : memref<1x1x256xf32, #tpu.memory_space<vmem>>, vector<1x1x256xf32>,
    return
  }
  func.func @transform_0(%arg0: i32) -> (i32, i32, i32) {
    %c0_i32 = arith.constant 0 : i32
    %c0_i32_0 = arith.constant 0 : i32
    %c0_i32_1 = arith.constant 0 : i32
    return %arg0, %c0_i32, %c0_i32_0 : i32, i32, i32
  }
  func.func @transform_1(%arg0: i32) -> (i32, i32, i32) {
    %c0_i32 = arith.constant 0 : i32
    %c0_i32_0 = arith.constant 0 : i32
    %c0_i32_1 = arith.constant 0 : i32
    return %arg0, %c0_i32, %c0_i32_0 : i32, i32, i32
  }
  func.func @transform_2(%arg0: i32) -> (i32, i32) {
    %c0_i32 = arith.constant 0 : i32
    %c0_i32_0 = arith.constant 0 : i32
    %c0_i32_1 = arith.constant 0 : i32
    return %c0_i32, %c0_i32_0 : i32, i32
  }
  func.func @transform_3(%arg0: i32) -> (i32, i32) {
    %c0_i32 = arith.constant 0 : i32
    %c0_i32_0 = arith.constant 0 : i32
    %c0_i32_1 = arith.constant 0 : i32
    return %c0_i32, %c0_i32_0 : i32, i32
  }
  func.func @transform_4(%arg0: i32) -> (i32, i32) {
    %c0_i32 = arith.constant 0 : i32
    %c0_i32_0 = arith.constant 0 : i32
    %c0_i32_1 = arith.constant 0 : i32
    return %c0_i32, %c0_i32_0 : i32, i32
  }
  func.func @transform_5(%arg0: i32) -> (i32, i32, i32) {
    %c0_i32 = arith.constant 0 : i32
    %c0_i32_0 = arith.constant 0 : i32
    %c0_i32_1 = arith.constant 0 : i32
    return %arg0, %c0_i32, %c0_i32_0 : i32, i32, i32
  }
}

</mosaic_0001>

<bundles_post_ra>
// kernel: tpu_custom_call.1
= control target key start
LH: loop header
LB: loop body
LE: loop exit
PB: predicated region body
PF: predicated region fallthrough
CT: control target
= control target key end

     0   :  { %10 = vsyncpa [#allocation5], 0  ;;  %s4138_s0 = inlined_call_operand.vmem [shape: f32[1,32,256], index: 0, kind: input, shape index: {}]   ;;  %s4139_s1 = inlined_call_operand.vmem [shape: f32[1,3,256], index: 1, kind: input, shape index: {}]   ;;  %s4140_s2 = inlined_call_operand.hbm [shape: f32[64,96], index: 2, kind: input, shape index: {}]   ;;  %s4141_s3 = inlined_call_operand.hbm [shape: f32[64,192], index: 3, kind: input, shape index: {}]   ;;  %s4142_s4 = inlined_call_operand.vmem [shape: f32[64,8], index: 4, kind: input, shape index: {}]   ;;  %s4143_s5 = inlined_call_operand.hbm [shape: f32[1,1,256], index: 5, kind: output, shape index: {}]  }
   0x1   :  { %11 = vsyncpa [#allocation8], 0 }
   0x2   :  { %12 = vsyncpa [#allocation6], 0  ;;  %s2657_s18 = smov [#allocation4]   ;;  %s2585_s22 = scalar_lea.hbm %s4140_s2, 1024 }
   0x3   :  { %s22_s19 = sshll.u32 %s2657_s18, 4  ;;  %p2586_p0 = scmp.ne.s32.totalorder %s4140_s2, %s2585_s22  ;;  %s23_s19 = int_to_ptr.vmem [resolvable:$true] %s22_s19 }
   0x4   :  { %p2589_p1 = scmp.lt.u32.totalorder %s2585_s22, %s4140_s2 }
   0x6   :  { %p2591_p2 = pnand %p2589_p1, %p2586_p0 }
   0x8   :  { %2594 = shalt.err (!%p2591_p2)
}
   0x9   :  { %s2595_s27 = scalar_lea.vmem %s23_s19, 1024  ;;  %p2600_p4 = scmp.lt.s32.totalorder %s23_s19, %s23_s19 }
   0xa   :  { %p2596_p3 = scmp.ne.s32.totalorder %s23_s19, %s2595_s27  ;;  %p2601_p5 = scmp.lt.s32.totalorder %s2595_s27, %s2595_s27 }
   0xc   :  { %p2602_p6 = por %p2601_p5, %p2600_p4 }
   0xe   :  { %p2603_p7 = pnand %p2602_p6, %p2596_p3 }
  0x10   :  { %2606 = shalt.err (!%p2603_p7)
}
  0x11   :  { %s2658_s28 = smov 128   ;;  %s2659_s29 = smov 8  }
  0x12   :  { %28 = dma.hbm_to_vmem [thread:$0]  %s4140_s2, 1024, %s23_s19, [#allocation5], %s2658_s28, %s2658_s28, %s2659_s29  }
  0x13   :  { %s2660_s7 = smov [#allocation7]   ;;  %s2607_s11 = scalar_lea.hbm %s4141_s3, 2048 }
  0x14   :  { %s34_s8 = sshll.u32 %s2660_s7, 4  ;;  %p2608_p8 = scmp.ne.s32.totalorder %s4141_s3, %s2607_s11  ;;  %s35_s8 = int_to_ptr.vmem [resolvable:$true] %s34_s8 }
  0x15   :  { %p2611_p9 = scmp.lt.u32.totalorder %s2607_s11, %s4141_s3 }
  0x17   :  { %p2613_p10 = pnand %p2611_p9, %p2608_p8 }
  0x19   :  { %2616 = shalt.err (!%p2613_p10)
}
  0x1a   :  { %s2617_s16 = scalar_lea.vmem %s35_s8, 2048  ;;  %p2622_p12 = scmp.lt.s32.totalorder %s35_s8, %s35_s8 }
  0x1b   :  { %p2618_p11 = scmp.ne.s32.totalorder %s35_s8, %s2617_s16  ;;  %p2623_p13 = scmp.lt.s32.totalorder %s2617_s16, %s2617_s16 }
  0x1d   :  { %p2624_p0 = por %p2623_p13, %p2622_p12 }
  0x1f   :  { %p2625_p1 = pnand %p2624_p0, %p2618_p11 }
  0x21   :  { %2628 = shalt.err (!%p2625_p1)
}
  0x22   :  { %s2661_s2 = smov 256   ;;  %s2662_s17 = smov 16  }
  0x23   :  { %40 = dma.hbm_to_vmem [thread:$0]  %s4141_s3, 2048, %s35_s8, [#allocation8], %s2661_s2, %s2661_s2, %s2662_s17  }
  0x24   :  { %2651 = dma.done.wait [#allocation5], 1024  }
  0x25   :  { %2652 = vsyncadd [#allocation5], 4294966272 }
  0x26   :  { %2653 = dma.done.wait [#allocation8], 2048  }
  0x27   :  { %2654 = vsyncadd [#allocation8], 4294965248  ;;  %v4144_v0 = vlaneseq  ;;  %v57_v4 = vld [vmem:[%s4139_s1] ss:$4 sm:$0x3]  ;;  %v50_v9 = vld [vmem:[%s4138_s0 + $0x8] sm:$0xff] }
  0x28   :  { %v2296_v5 = vld [vmem:[%s4139_s1 + $0x2] ss:$4 sm:$0x3]  ;;  %v2295_v8 = vld [vmem:[%s4139_s1 + $0x1] ss:$4 sm:$0x3] }
  0x29   :  { %v2730_v1 = vshrl.u32 %v4144_v0, 7  ;;  %v49_v11 = vld [vmem:[%s4138_s0] sm:$0xff]  ;;  %s2663_s29 = smov 127   ;;  %s2664_s30 = smov 1   ;;  %v52_v15 = vld [vmem:[%s4138_s0 + $0x18] sm:$0xff]  ;;  %v51_v16 = vld [vmem:[%s4138_s0 + $0x10] sm:$0xff] }
  0x2a   :  { %v54_v21 = vld [vmem:[%s4138_s0 + $0x28] sm:$0xff]  ;;  %v53_v22 = vld [vmem:[%s4138_s0 + $0x20] sm:$0xff]  ;;  %v56_v23 = vld [vmem:[%s4138_s0 + $0x38] sm:$0xff]  ;;  %v2665_v29 = vmov 0.0   ;;  %vm71_vm0 = vcmask 1039360   ;;  %vm107_vm1 = vcmask 7168  }
  0x2b   :  { %v2733_v2 = vsub.s32 0, %v2730_v1  ;;  %v2736_v3 = vsub.s32 1, %v2730_v1  ;;  %v55_v27 = vld [vmem:[%s4138_s0 + $0x30] sm:$0xff]  ;;  %406 = vmatprep.mubr.f32.mxu0 %v2665_v29  ;;  %v269_v52 = vld [vmem:[%s4142_s4] sm:$0xff]  ;;  %v270_v53 = vld [vmem:[%s4142_s4 + $0x8] sm:$0xff]  ;;  %v2666_v54 = vmov 0  }
  0x2c   :  { %2430 = vset.pattern.permute.xlu0 %v2666_v54  ;;  %2431 = vset.pattern.permute.xlu1 %v2666_v54  ;;  %v271_v55 = vld [vmem:[%s4142_s4 + $0x10] sm:$0xff]  ;;  %v272_v56 = vld [vmem:[%s4142_s4 + $0x18] sm:$0xff]  ;;  %v273_v57 = vld [vmem:[%s4142_s4 + $0x20] sm:$0xff]  ;;  %v2667_v61 = vmov 1   ;;  %v2668_v62 = vmov 2   ;;  %vm120_vm2 = vcmask 1047560  }
  0x2d   :  { %v62_v6 = vrot.slane %v57_v4, %v2733_v2  ;;  %v168_v7 = vrot.slane %v2296_v5, %v2733_v2  ;;  %v143_v10 = vrot.slane %v2295_v8, %v2736_v3  ;;  %v139_v12 = vrot.slane %v2295_v8, %v2733_v2  ;;  %v274_v58 = vld [vmem:[%s4142_s4 + $0x28] sm:$0xff]  ;;  %v2837_v59 = vld [vmem:[%s4142_s4 + $0x30] sm:$0xff]  ;;  %v2842_v60 = vld [vmem:[%s4142_s4 + $0x38] sm:$0xff] }
  0x2e   :  { %v66_v13 = vrot.slane %v57_v4, %v2736_v3  ;;  %v172_v14 = vrot.slane %v2296_v5, %v2736_v3  ;;  %vm232_vm3 = vcmask 1048568   ;;  %vm317_vm4 = vcmask 785408   ;;  %v243_v54 = vld [vmem:[#allocation4 + $0x30] sm:$0xff] }
  0x2f   :  { %67 = vrot.lane.b32.xlu0 %v62_v6, %s2663_s29  ;;  %173 = vrot.lane.b32.xlu1 %v168_v7, %s2664_s30  ;;  %v2767_v17 = vmul.f32 %v143_v10, %v50_v9  ;;  %v2769_v18 = vmul.f32 %v139_v12, %v49_v11  ;;  %v2771_v19 = vmul.f32 %v143_v10, %v52_v15 }
  0x30   :  { %v2773_v20 = vmul.f32 %v139_v12, %v51_v16  ;;  %v2784_v24 = vmul.f32 %v143_v10, %v54_v21  ;;  %v2786_v25 = vmul.f32 %v139_v12, %v53_v22  ;;  %v2788_v26 = vmul.f32 %v143_v10, %v56_v23 }
  0x31   :  { %v2795_v28 = vmul.f32 %v139_v12, %v55_v27 }
  0x33   :  { %69 = vrot.lane.b32.xlu0 %v66_v13, %s2663_s29  ;;  %175 = vrot.lane.b32.xlu1 %v172_v14, %s2664_s30 }
  0xa1   :  { %v68_v30 = vpop.permute.xlu0 %67  ;;  %v174_v37 = vpop.permute.xlu1 %173 }
  0xa2   :  { %v182_v43 = vmul.f32 %v174_v37, %v51_v16  ;;  %v180_v45 = vmul.f32 %v174_v37, %v49_v11  ;;  %v186_v50 = vmul.f32 %v174_v37, %v55_v27  ;;  %v184_v51 = vmul.f32 %v174_v37, %v53_v22 }
  0xa5   :  { %v70_v31 = vpop.permute.xlu0 %69  ;;  %v176_v41 = vpop.permute.xlu1 %175 }
  0xa6   :  { %v76_v32 = vmul.f32 %v70_v31, %v50_v9  ;;  %v72_v33 = vsel %vm71_vm0, %v68_v30, %v70_v31  ;;  %v78_v35 = vmul.f32 %v70_v31, %v52_v15  ;;  %v80_v38 = vmul.f32 %v70_v31, %v54_v21 }
  0xa7   :  { %v75_v34 = vmul.f32 %v72_v33, %v49_v11  ;;  %v77_v36 = vmul.f32 %v72_v33, %v51_v16  ;;  %v79_v39 = vmul.f32 %v72_v33, %v53_v22  ;;  %v82_v40 = vmul.f32 %v70_v31, %v56_v23 }
  0xa8   :  { %93 = vrot.lane.b32.xlu1 %v76_v32, %s2664_s30  ;;  %v81_v42 = vmul.f32 %v72_v33, %v55_v27  ;;  %v177_v44 = vsel %vm107_vm1, %v174_v37, %v176_v41  ;;  %v2324_v37 = vpack.c.bf16 %v2771_v19, %v2767_v17  ;;  %v2326_v41 = vpack.c.bf16 %v2773_v20, %v2769_v18 }
  0xa9   :  { %91 = vrot.lane.b32.xlu0 %v75_v34, %s2664_s30  ;;  %v183_v46 = vmul.f32 %v177_v44, %v52_v15  ;;  %v181_v47 = vmul.f32 %v177_v44, %v50_v9  ;;  %v187_v48 = vmul.f32 %v177_v44, %v56_v23  ;;  %v185_v49 = vmul.f32 %v177_v44, %v54_v21 }
  0xaa   :  { %v2328_v17 = vpack.c.bf16 %v2788_v26, %v2784_v24  ;;  %v2330_v18 = vpack.c.bf16 %v2795_v28, %v2786_v25  ;;  %v238_v25 = vld [vmem:[#allocation4 + $0x8] sm:$0xff]  ;;  %v239_v28 = vld [vmem:[#allocation4 + $0x10] sm:$0xff] }
  0xac   :  { %97 = vrot.lane.b32.xlu1 %v78_v35, %s2664_s30 }
  0xad   :  { %95 = vrot.lane.b32.xlu0 %v77_v36, %s2664_s30 }
  0xb0   :  { %101 = vrot.lane.b32.xlu1 %v80_v38, %s2664_s30 }
  0xb1   :  { %99 = vrot.lane.b32.xlu0 %v79_v39, %s2664_s30 }
  0xb4   :  { %105 = vrot.lane.b32.xlu1 %v82_v40, %s2664_s30 }
  0xb5   :  { %103 = vrot.lane.b32.xlu0 %v81_v42, %s2664_s30 }
  0xb8   :  { %200 = vrot.lane.b32.xlu1 %v182_v43, %s2663_s29 }
  0xb9   :  { %196 = vrot.lane.b32.xlu0 %v180_v45, %s2663_s29 }
  0xbc   :  { %202 = vrot.lane.b32.xlu1 %v183_v46, %s2663_s29 }
  0xbd   :  { %198 = vrot.lane.b32.xlu0 %v181_v47, %s2663_s29 }
  0xc0   :  { %210 = vrot.lane.b32.xlu1 %v187_v48, %s2663_s29 }
  0xc1   :  { %206 = vrot.lane.b32.xlu0 %v185_v49, %s2663_s29 }
  0xc4   :  { %208 = vrot.lane.b32.xlu1 %v186_v50, %s2663_s29  ;;  %v237_v50 = vld [vmem:[#allocation4] sm:$0xff] }
  0xc5   :  { %204 = vrot.lane.b32.xlu0 %v184_v51, %s2663_s29  ;;  %v240_v51 = vld [vmem:[#allocation4 + $0x18] sm:$0xff] }
  0xc8   :  { %284 = vperm.xlu1 %2431, %v270_v53  }
  0xc9   :  { %279 = vperm.xlu0 %2430, %v269_v52  }
  0xcc   :  { %289 = vperm.xlu1 %2431, %v271_v55  }
  0xcd   :  { %294 = vperm.xlu0 %2430, %v272_v56  }
  0xd0   :  { %299 = vperm.xlu1 %2431, %v273_v57  }
  0xd1   :  { %304 = vperm.xlu0 %2430, %v274_v58  }
  0xd4   :  { %309 = vperm.xlu1 %2431, %v2837_v59  }
  0xd5   :  { %314 = vperm.xlu0 %2430, %v2842_v60  }
  0xd8   :  { %2432 = vset.pattern.permute.xlu1 %v2667_v61 }
  0xd9   :  { %2435 = vset.pattern.permute.xlu0 %v2668_v62  ;;  %981 = vperm.xlu1 %2432, %v269_v52  }
  0xda   :  { %1037 = vperm.xlu0 %2435, %v271_v55  }
  0xdd   :  { %2433 = vset.pattern.permute.xlu1 %v2668_v62 }
  0xde   :  { %2436 = vset.pattern.permute.xlu0 %v2667_v61  ;;  %1029 = vperm.xlu1 %2433, %v269_v52   ;;  %v241_v52 = vld [vmem:[#allocation4 + $0x20] sm:$0xff] }
  0xdf   :  { %985 = vperm.xlu0 %2436, %v270_v53  }
  0xe2   :  { %1033 = vperm.xlu1 %2433, %v270_v53   ;;  %v242_v53 = vld [vmem:[#allocation4 + $0x28] sm:$0xff] }
  0xe3   :  { %989 = vperm.xlu0 %2436, %v271_v55   ;;  %v244_v55 = vld [vmem:[#allocation4 + $0x38] sm:$0xff] }
  0xe6   :  { %2434 = vset.pattern.permute.xlu1 %v2667_v61 }
  0xe7   :  { %1001 = vperm.xlu0 %2436, %v274_v58   ;;  %993 = vperm.xlu1 %2434, %v272_v56  }
  0xeb   :  { %2437 = vset.pattern.permute.xlu1 %v2668_v62 }
  0xec   :  { %1041 = vperm.xlu1 %2437, %v272_v56   ;;  %v1076_v56 = vld [vmem:[%s4139_s1] ss:$4 sm:$0x3] }
  0xf0   :  { %2438 = vset.pattern.permute.xlu1 %v2667_v61 }
  0xf1   :  { %997 = vperm.xlu1 %2438, %v273_v57  }
  0xf5   :  { %2439 = vset.pattern.permute.xlu1 %v2668_v62 }
  0xf6   :  { %1045 = vperm.xlu1 %2439, %v273_v57   ;;  %v1081_v57 = vrot.slane %v1076_v56, %v2733_v2 }
  0xf8   :  { %1086 = vrot.lane.b32.xlu0 %v1081_v57, %s2663_s29 }
  0xfa   :  { %1049 = vperm.xlu1 %2439, %v274_v58   ;;  %v1085_v58 = vrot.slane %v1076_v56, %v2736_v3 }
  0xfc   :  { %1005 = vperm.xlu0 %2436, %v2837_v59  }
  0xfe   :  { %2440 = vset.pattern.permute.xlu1 %v2667_v61  ;;  %v2306_v61 = vld [vmem:[%s4139_s1 + $0x2] ss:$4 sm:$0x3] }
  0xff   :  { %1088 = vrot.lane.b32.xlu1 %v1085_v58, %s2663_s29 }
 0x100   :  { %2441 = vset.pattern.permute.xlu0 %v2668_v62 }
 0x101   :  { %1053 = vperm.xlu0 %2441, %v2837_v59  }
 0x103   :  { %1009 = vperm.xlu1 %2440, %v2842_v60  }
 0x107   :  { %2442 = vset.pattern.permute.xlu1 %v2668_v62 }
 0x108   :  { %1057 = vperm.xlu1 %2442, %v2842_v60  }
 0x11a   :  { %v94_v63 = vpop.permute.xlu1 %93 }
 0x11b   :  { %v92_v4 = vpop.permute.xlu0 %91 }
 0x11c   :  { %v108_v5 = vsel %vm107_vm1, %v92_v4, %v94_v63  ;;  %121 = vst.msk [vmem:[#allocation2] sm:$0xff] %vm120_vm2, %v92_v4  ;;  %v1254_v63 = vrot.slane %v2306_v61, %v2733_v2  ;;  %v1258_v4 = vrot.slane %v2306_v61, %v2736_v3 }
 0x11d   :  { %129 = vst.msk [vmem:[#allocation2] sm:$0xff] %vm107_vm1, %v2665_v29 }
 0x11e   :  { %v98_v6 = vpop.permute.xlu1 %97  ;;  %1259 = vrot.lane.b32.xlu1 %v1254_v63, %s2664_s30  ;;  %1261 = vrot.lane.b32.xlu0 %v1258_v4, %s2664_s30 }
 0x11f   :  { %v96_v7 = vpop.permute.xlu0 %95 }
 0x120   :  { %v109_v8 = vsel %vm107_vm1, %v96_v7, %v98_v6  ;;  %123 = vst.msk [vmem:[#allocation2 + $0x10] sm:$0xff] %vm120_vm2, %v96_v7 }
 0x121   :  { %130 = vst.msk [vmem:[#allocation2 + $0x10] sm:$0xff] %vm107_vm1, %v2665_v29  ;;  %v2316_v9 = vpack.c.bf16 %v109_v8, %v108_v5 }
 0x122   :  { %v102_v10 = vpop.permute.xlu1 %101 }
 0x123   :  { %v100_v11 = vpop.permute.xlu0 %99  ;;  %2317 = vmatprep.subr.bf16.mxu0 %v2316_v9 }
 0x124   :  { %v110_v12 = vsel %vm107_vm1, %v100_v11, %v102_v10  ;;  %125 = vst.msk [vmem:[#allocation2 + $0x20] sm:$0xff] %vm120_vm2, %v100_v11  ;;  %v245_v14 = vld [vmem:[#allocation2] sm:$0xff] }
 0x125   :  { %131 = vst.msk [vmem:[#allocation2 + $0x20] sm:$0xff] %vm107_vm1, %v2665_v29 }
 0x126   :  { %v106_v13 = vpop.permute.xlu1 %105 }
 0x127   :  { %v104_v15 = vpop.permute.xlu0 %103 }
 0x128   :  { %v111_v16 = vsel %vm107_vm1, %v104_v15, %v106_v13  ;;  %127 = vst.msk [vmem:[#allocation2 + $0x30] sm:$0xff] %vm120_vm2, %v104_v15  ;;  %v247_v21 = vld [vmem:[#allocation2 + $0x10] sm:$0xff] }
 0x129   :  { %132 = vst.msk [vmem:[#allocation2 + $0x30] sm:$0xff] %vm107_vm1, %v2665_v29  ;;  %v2318_v22 = vpack.c.bf16 %v247_v21, %v245_v14  ;;  %v2320_v23 = vpack.c.bf16 %v111_v16, %v110_v12 }
 0x12a   :  { %v201_v27 = vpop.permute.xlu1 %200 }
 0x12b   :  { %v197_v30 = vpop.permute.xlu0 %196  ;;  %2319 = vmatpush1.bf16.msra.mxu0 %v2318_v22 }
 0x12c   :  { %2321 = vmatprep.subr.bf16.mxu0 %v2320_v23  ;;  %v249_v32 = vld [vmem:[#allocation2 + $0x20] sm:$0xff] }
 0x12e   :  { %v203_v31 = vpop.permute.xlu1 %202 }
 0x12f   :  { %v213_v33 = vsel %vm71_vm0, %v201_v27, %v203_v31  ;;  %227 = vst.msk [vmem:[#allocation2 + $0x98] sm:$0xff] %vm71_vm0, %v203_v31  ;;  %v199_v34 = vpop.permute.xlu0 %198 }
 0x130   :  { %234 = vst.msk [vmem:[#allocation2 + $0x98] sm:$0xff] %vm232_vm3, %v2665_v29  ;;  %v212_v35 = vsel %vm71_vm0, %v197_v30, %v199_v34  ;;  %v251_v36 = vld [vmem:[#allocation2 + $0x30] sm:$0xff] }
 0x131   :  { %225 = vst.msk [vmem:[#allocation2 + $0x88] sm:$0xff] %vm71_vm0, %v199_v34  ;;  %v2322_v38 = vpack.c.bf16 %v251_v36, %v249_v32  ;;  %v2334_v26 = vpack.c.bf16 %v213_v33, %v212_v35 }
 0x132   :  { %233 = vst.msk [vmem:[#allocation2 + $0x88] sm:$0xff] %vm232_vm3, %v2665_v29  ;;  %v211_v39 = vpop.permute.xlu1 %210 }
 0x133   :  { %231 = vst.msk [vmem:[#allocation2 + $0xb8] sm:$0xff] %vm71_vm0, %v211_v39  ;;  %v207_v40 = vpop.permute.xlu0 %206  ;;  %2323 = vmatpush1.bf16.msra.mxu0 %v2322_v38 }
 0x134   :  { %236 = vst.msk [vmem:[#allocation2 + $0xb8] sm:$0xff] %vm232_vm3, %v2665_v29  ;;  %2325 = vmatprep.subr.bf16.mxu0 %v2324_v37 }
 0x135   :  { %229 = vst.msk [vmem:[#allocation2 + $0xa8] sm:$0xff] %vm71_vm0, %v207_v40 }
 0x136   :  { %235 = vst.msk [vmem:[#allocation2 + $0xa8] sm:$0xff] %vm232_vm3, %v2665_v29  ;;  %v209_v19 = vpop.permute.xlu1 %208 }
 0x137   :  { %v215_v42 = vsel %vm71_vm0, %v209_v19, %v211_v39  ;;  %v205_v43 = vpop.permute.xlu0 %204  ;;  %2327 = vmatpush1.bf16.msra.mxu0 %v2326_v41  ;;  %v264_v20 = vld [vmem:[#allocation2 + $0x98] sm:$0xff] }
 0x138   :  { %v214_v44 = vsel %vm71_vm0, %v205_v43, %v207_v40  ;;  %2329 = vmatprep.subr.bf16.mxu0 %v2328_v17 }
 0x139   :  { %v262_v45 = vld [vmem:[#allocation2 + $0x88] sm:$0xff]  ;;  %v2338_v49 = vpack.c.bf16 %v215_v42, %v214_v44 }
 0x13a   :  { %v2332_v46 = vpack.c.bf16 %v264_v20, %v262_v45 }
 0x13b   :  { %2331 = vmatpush1.bf16.msra.mxu0 %v2330_v18  ;;  %v268_v47 = vld [vmem:[#allocation2 + $0xb8] sm:$0xff] }
 0x13c   :  { %2333 = vmatprep.subr.bf16.mxu0 %v2332_v46 }
 0x13d   :  { %v266_v24 = vld [vmem:[#allocation2 + $0xa8] sm:$0xff] }
 0x13e   :  { %v2336_v48 = vpack.c.bf16 %v268_v47, %v266_v24 }
 0x13f   :  { %2335 = vmatpush1.bf16.msra.mxu0 %v2334_v26 }
 0x140   :  { %2337 = vmatprep.subr.bf16.mxu0 %v2336_v48 }
 0x143   :  { %2339 = vmatpush1.bf16.msra.mxu0 %v2338_v49 }
 0x146   :  { %2297 = vmatmul.mubr.msk.f32.vlgmr.msra.gmra.mrb[0].mxu0 %vm317_vm4, %v237_v50 }
 0x147   :  { %412 = vmatprep.mubr.f32.mxu0 %v2665_v29  ;;  %v285_v9 = vpop.permute.xlu1 %284 }
 0x148   :  { %v280_v5 = vpop.permute.xlu0 %279 }
 0x14a   :  { %2298 = vmatmul.mubr.msk.f32.gmra.mrb[2].mxu0 %vm317_vm4, %v238_v25 }
 0x14b   :  { %418 = vmatprep.mubr.f32.mxu0 %v2665_v29  ;;  %v290_v40 = vpop.permute.xlu1 %289 }
 0x14c   :  { %v295_v26 = vpop.permute.xlu0 %294 }
 0x14e   :  { %2299 = vmatmul.mubr.msk.f32.gmra.mrb[4].mxu0 %vm317_vm4, %v239_v28 }
 0x14f   :  { %424 = vmatprep.mubr.f32.mxu0 %v2665_v29 }
 0x152   :  { %2300 = vmatmul.mubr.msk.f32.gmra.mrb[6].mxu0 %vm317_vm4, %v240_v51 }
 0x153   :  { %430 = vmatprep.mubr.f32.mxu0 %v2665_v29 }
 0x156   :  { %2301 = vmatmul.mubr.msk.f32.gmra.mrb[8].mxu0 %vm317_vm4, %v241_v52 }
 0x157   :  { %436 = vmatprep.mubr.f32.mxu0 %v2665_v29 }
 0x15a   :  { %2302 = vmatmul.mubr.msk.f32.gmra.mrb[10].mxu0 %vm317_vm4, %v242_v53 }
 0x15b   :  { %442 = vmatprep.mubr.f32.mxu0 %v2665_v29 }
 0x15e   :  { %2303 = vmatmul.mubr.msk.f32.gmra.mrb[12].mxu0 %vm317_vm4, %v243_v54 }
 0x15f   :  { %448 = vmatprep.mubr.f32.mxu0 %v2665_v29 }
 0x162   :  { %2304 = vmatmul.mubr.msk.f32.gmra.mrb[14].mxu0 %vm317_vm4, %v244_v55 }
 0x219   :  { %v408_v6 = vpop.f32.mrb[0].mxu0 }
 0x21a   :  { %v409_v7 = vadd.f32 %v408_v6, %v280_v5  ;;  %v410_v59 = vpop.f32.mrb[1].mxu0 }
 0x21b   :  { %v411_v8 = vadd.f32 %v410_v59, %v280_v5 }
 0x21c   :  { %v2925_v62 = vmul.f32 0.70710677, %v409_v7  ;;  %v2958_v52 = vmul.f32 0.5, %v409_v7 }
 0x21d   :  { %v2927_v60 = vmul.f32 0.70710677, %v411_v8  ;;  %v414_v10 = vpop.f32.mrb[2].mxu0  ;;  %v2960_v53 = vmul.f32 0.5, %v411_v8 }
 0x21e   :  { %v487_v11 = vand.u32 2147483647, %v2925_v62  ;;  %v2930_v12 = vadd.f32 %v414_v10, %v285_v9  ;;  %v416_v13 = vpop.f32.mrb[3].mxu0  ;;  %vm791_vm5 = vcmp.ge.f32.partialorder %v2925_v62, 0.0 }
 0x21f   :  { %v488_v14 = vand.u32 2147483647, %v2927_v60  ;;  %v2933_v15 = vadd.f32 %v416_v13, %v285_v9  ;;  %vm792_vm6 = vcmp.ge.f32.partialorder %v2927_v60, 0.0 }
 0x220   :  { %v503_v16 = vmul.f32 0.3275911, %v487_v11  ;;  %v2936_v21 = vmul.f32 0.70710677, %v2930_v12  ;;  %v695_v22 = vsub.f32 0.0, %v487_v11 }
 0x221   :  { %v504_v23 = vmul.f32 0.3275911, %v488_v14  ;;  %v2939_v27 = vmul.f32 0.70710677, %v2933_v15  ;;  %v696_v31 = vsub.f32 0.0, %v488_v14  ;;  %v420_v33 = vpop.f32.mrb[4].mxu0 }
 0x222   :  { %v519_v30 = vadd.f32 1.0, %v503_v16  ;;  %v489_v32 = vand.u32 2147483647, %v2936_v21  ;;  %v422_v36 = vpop.f32.mrb[5].mxu0  ;;  %v711_v38 = vmul.f32 %v695_v22, %v487_v11  ;;  %v2943_v43 = vadd.f32 %v420_v33, %v290_v40 }
 0x223   :  { %v520_v34 = vadd.f32 1.0, %v504_v23  ;;  %v490_v35 = vand.u32 2147483647, %v2939_v27  ;;  %v712_v17 = vmul.f32 %v696_v31, %v488_v14  ;;  %v2945_v44 = vadd.f32 %v422_v36, %v290_v40 }
 0x224   :  { %2449 = vrcp.f32 %v519_v30  ;;  %v505_v37 = vmul.f32 0.3275911, %v489_v32  ;;  %v697_v42 = vsub.f32 0.0, %v489_v32  ;;  %v2948_v46 = vmul.f32 0.70710677, %v2943_v43 }
 0x225   :  { %2451 = vrcp.f32 %v520_v34  ;;  %v506_v39 = vmul.f32 0.3275911, %v490_v35  ;;  %v426_v41 = vpop.f32.mrb[6].mxu0  ;;  %v698_v45 = vsub.f32 0.0, %v490_v35  ;;  %v727_v47 = vmul.f32 1.442695, %v711_v38 }
 0x226   :  { %v521_v19 = vadd.f32 1.0, %v505_v37  ;;  %v428_v18 = vpop.f32.mrb[7].mxu0  ;;  %v2951_v24 = vmul.f32 0.70710677, %v2945_v44  ;;  %v729_v49 = vmul.f32 1.442695, %v712_v17  ;;  %v713_v50 = vmul.f32 %v697_v42, %v489_v32 }
 0x227   :  { %v522_v20 = vadd.f32 1.0, %v506_v39  ;;  %v491_v25 = vand.u32 2147483647, %v2948_v46  ;;  %v2954_v28 = vadd.f32 %v426_v41, %v295_v26  ;;  %v2963_v55 = vadd.f32 %v428_v18, %v295_v26 }
 0x228   :  { %2453 = vrcp.f32 %v521_v19  ;;  %v492_v54 = vand.u32 2147483647, %v2951_v24  ;;  %v714_v56 = vmul.f32 %v698_v45, %v490_v35  ;;  %v731_v7 = vmul.f32 1.442695, %v713_v50 }
 0x229   :  { %2455 = vrcp.f32 %v522_v20  ;;  %v432_v48 = vpop.f32.mrb[8].mxu0  ;;  %v507_v57 = vmul.f32 0.3275911, %v491_v25  ;;  %v699_v58 = vsub.f32 0.0, %v491_v25  ;;  %v2966_v61 = vmul.f32 0.70710677, %v2954_v28 }
 0x22a   :  { %v2956_v51 = vpop.f32.mrb[9].mxu0  ;;  %2457 = vpow2.f32 %v727_v47  ;;  %v508_v63 = vmul.f32 0.3275911, %v492_v54  ;;  %v700_v4 = vsub.f32 0.0, %v492_v54  ;;  %v2969_v5 = vmul.f32 0.70710677, %v2963_v55  ;;  %v300_v47 = vpop.permute.xlu1 %299 }
 0x22b   :  { %2459 = vpow2.f32 %v729_v49  ;;  %v523_v59 = vadd.f32 1.0, %v507_v57  ;;  %v493_v8 = vand.u32 2147483647, %v2966_v61  ;;  %v715_v13 = vmul.f32 %v699_v58, %v491_v25 }
 0x22c   :  { %v524_v14 = vadd.f32 1.0, %v508_v63  ;;  %v494_v16 = vand.u32 2147483647, %v2969_v5  ;;  %v733_v30 = vmul.f32 1.442695, %v714_v56  ;;  %v716_v33 = vmul.f32 %v700_v4, %v492_v54 }
 0x22d   :  { %v2974_v9 = vpop.f32.mrb[10].mxu0  ;;  %2461 = vrcp.f32 %v523_v59  ;;  %v509_v31 = vmul.f32 0.3275911, %v493_v8  ;;  %v701_v34 = vsub.f32 0.0, %v493_v8  ;;  %v735_v42 = vmul.f32 1.442695, %v715_v13 }
 0x22e   :  { %v2971_v6 = vpop.eup %2449  ;;  %v2980_v22 = vpop.f32.mrb[11].mxu0  ;;  %2463 = vrcp.f32 %v524_v14  ;;  %v510_v39 = vmul.f32 0.3275911, %v494_v16  ;;  %v737_v25 = vmul.f32 1.442695, %v716_v33  ;;  %v2995_v54 = vadd.f32 %v432_v48, %v300_v47 }
 0x22f   :  { %v2976_v10 = vpop.eup %2451  ;;  %v551_v11 = vmul.f32 1.0614054, %v2971_v6  ;;  %2465 = vpow2.f32 %v731_v7  ;;  %v525_v38 = vadd.f32 1.0, %v509_v31  ;;  %v717_v18 = vmul.f32 %v701_v34, %v493_v8 }
 0x230   :  { %v552_v23 = vmul.f32 1.0614054, %v2976_v10  ;;  %v526_v26 = vadd.f32 1.0, %v510_v39  ;;  %v702_v58 = vsub.f32 0.0, %v494_v16  ;;  %v3001_v59 = vmul.f32 0.5, %v2930_v12 }
 0x231   :  { %v567_v32 = vadd.f32 -1.4531521, %v551_v11  ;;  %v2983_v35 = vpop.f32.mrb[12].mxu0  ;;  %2467 = vrcp.f32 %v525_v38  ;;  %v3009_v34 = vmul.f32 0.70710677, %v2995_v54  ;;  %vm793_vm7 = vcmp.ge.f32.partialorder %v2936_v21, 0.0 }
 0x232   :  { %v2985_v36 = vpop.eup %2453  ;;  %v568_v37 = vadd.f32 -1.4531521, %v552_v23  ;;  %v2987_v40 = vpop.f32.mrb[13].mxu0  ;;  %2469 = vrcp.f32 %v526_v26  ;;  %v739_v23 = vmul.f32 1.442695, %v717_v18  ;;  %v718_v31 = vmul.f32 %v702_v58, %v494_v16 }
 0x233   :  { %v2989_v41 = vpop.eup %2455  ;;  %v583_v17 = vmul.f32 %v2971_v6, %v567_v32  ;;  %v553_v19 = vmul.f32 1.0614054, %v2985_v36  ;;  %2471 = vpow2.f32 %v733_v30  ;;  %v3014_v30 = vmul.f32 0.5, %v2933_v15 }
 0x234   :  { %v584_v20 = vmul.f32 %v2976_v10, %v568_v37  ;;  %v554_v45 = vmul.f32 1.0614054, %v2989_v41  ;;  %v2458_v4 = vpop.eup %2457  ;;  %2473 = vpow2.f32 %v735_v42  ;;  %v3021_v42 = vmul.f32 1.442695, %v718_v31 }
 0x235   :  { %v599_v49 = vadd.f32 1.4214138, %v583_v17  ;;  %v569_v50 = vadd.f32 -1.4531521, %v553_v19  ;;  %v2997_v63 = vpop.f32.mrb[14].mxu0  ;;  %v2460_v13 = vpop.eup %2459  ;;  %2475 = vpow2.f32 %v737_v25  ;;  %vm794_vm8 = vcmp.ge.f32.partialorder %v2939_v27, 0.0 }
 0x236   :  { %v600_v56 = vadd.f32 1.4214138, %v584_v20  ;;  %v570_v57 = vadd.f32 -1.4531521, %v554_v45  ;;  %v3004_v11 = vpop.f32.mrb[15].mxu0  ;;  %2477 = vpow2.f32 %v739_v23  ;;  %vm795_vm9 = vcmp.ge.f32.partialorder %v2948_v46, 0.0 }
 0x237   :  { %v615_v7 = vmul.f32 %v2971_v6, %v599_v49  ;;  %v585_v8 = vmul.f32 %v2985_v36, %v569_v50  ;;  %v3011_v12 = vpop.eup %2461  ;;  %v3027_v26 = vand.u32 2147483647, %v3009_v34  ;;  %2479 = vpow2.f32 %v3021_v42 }
 0x238   :  { %v616_v48 = vmul.f32 %v2976_v10, %v600_v56  ;;  %v586_v14 = vmul.f32 %v2989_v41, %v570_v57  ;;  %v3016_v39 = vpop.eup %2463  ;;  %v555_v19 = vmul.f32 1.0614054, %v3011_v12  ;;  %vm796_vm10 = vcmp.ge.f32.partialorder %v2951_v24, 0.0 }
 0x239   :  { %v631_v32 = vadd.f32 -0.28449672, %v615_v7  ;;  %v601_v33 = vadd.f32 1.4214138, %v585_v8  ;;  %v2466_v18 = vpop.eup %2465  ;;  %v556_v15 = vmul.f32 1.0614054, %v3016_v39  ;;  %v3033_v8 = vadd.f32 %v2956_v51, %v300_v47 }
 0x23a   :  { %v632_v37 = vadd.f32 -0.28449672, %v616_v48  ;;  %v602_v38 = vadd.f32 1.4214138, %v586_v14  ;;  %v571_v25 = vadd.f32 -1.4531521, %v555_v19 }
 0x23b   :  { %v647_v17 = vmul.f32 %v2971_v6, %v631_v32  ;;  %v617_v16 = vmul.f32 %v2985_v36, %v601_v33  ;;  %v3029_v56 = vpop.eup %2467  ;;  %v572_v7 = vadd.f32 -1.4531521, %v556_v15  ;;  %v511_v51 = vmul.f32 0.3275911, %v3027_v26 }
 0x23c   :  { %v648_v20 = vmul.f32 %v2976_v10, %v632_v37  ;;  %v618_v45 = vmul.f32 %v2989_v41, %v602_v38  ;;  %v587_v31 = vmul.f32 %v3011_v12, %v571_v25  ;;  %v557_v23 = vmul.f32 1.0614054, %v3029_v56  ;;  %v3040_v32 = vpop.eup %2469 }
 0x23d   :  { %v663_v49 = vadd.f32 0.2548296, %v647_v17  ;;  %v633_v50 = vadd.f32 -0.28449672, %v617_v16  ;;  %v588_v38 = vmul.f32 %v3016_v39, %v572_v7  ;;  %v2472_v47 = vpop.eup %2471  ;;  %vm797_vm11 = vcmp.ge.f32.partialorder %v2966_v61, 0.0 }
 0x23e   :  { %v664_v57 = vadd.f32 0.2548296, %v648_v20  ;;  %v634_v58 = vadd.f32 -0.28449672, %v618_v45  ;;  %v603_v16 = vadd.f32 1.4214138, %v587_v31 }
 0x23f   :  { %v679_v48 = vmul.f32 %v2971_v6, %v663_v49  ;;  %v649_v14 = vmul.f32 %v2985_v36, %v633_v50  ;;  %v573_v19 = vadd.f32 -1.4531521, %v557_v23  ;;  %v604_v15 = vadd.f32 1.4214138, %v588_v38  ;;  %v2474_v50 = vpop.eup %2473 }
 0x240   :  { %v680_v33 = vmul.f32 %v2976_v10, %v664_v57  ;;  %v650_v37 = vmul.f32 %v2989_v41, %v634_v58  ;;  %v558_v49 = vmul.f32 1.0614054, %v3040_v32  ;;  %v619_v57 = vmul.f32 %v3011_v12, %v603_v16  ;;  %v2476_v58 = vpop.eup %2475 }
 0x241   :  { %v759_v6 = vmul.f32 %v2458_v4, %v679_v48  ;;  %v665_v17 = vadd.f32 0.2548296, %v649_v14  ;;  %v589_v4 = vmul.f32 %v3029_v56, %v573_v19  ;;  %v620_v48 = vmul.f32 %v3016_v39, %v604_v15  ;;  %v2478_v0 = vpop.eup %2477 }
 0x242   :  { %v760_v20 = vmul.f32 %v2460_v13, %v680_v33  ;;  %v666_v45 = vadd.f32 0.2548296, %v650_v37  ;;  %v574_v14 = vadd.f32 -1.4531521, %v558_v49  ;;  %v635_v33 = vadd.f32 -0.28449672, %v619_v57 }
 0x243   :  { %v775_v10 = vsub.f32 1.0, %v759_v6  ;;  %v681_v25 = vmul.f32 %v2985_v36, %v665_v17  ;;  %v605_v37 = vadd.f32 1.4214138, %v589_v4  ;;  %v636_v36 = vadd.f32 -0.28449672, %v620_v48 }
 0x244   :  { %v776_v7 = vsub.f32 1.0, %v760_v20  ;;  %v682_v13 = vmul.f32 %v2989_v41, %v666_v45  ;;  %v590_v17 = vmul.f32 %v3040_v32, %v574_v14  ;;  %v651_v20 = vmul.f32 %v3011_v12, %v635_v33 }
 0x245   :  { %v807_v31 = vsub.f32 0.0, %v775_v10  ;;  %v761_v23 = vmul.f32 %v2466_v18, %v681_v25  ;;  %v621_v41 = vmul.f32 %v3029_v56, %v605_v37  ;;  %v652_v49 = vmul.f32 %v3016_v39, %v636_v36 }
 0x246   :  { %v808_v38 = vsub.f32 0.0, %v776_v7  ;;  %v762_v6 = vmul.f32 %v2472_v47, %v682_v13  ;;  %v667_v25 = vadd.f32 0.2548296, %v651_v20  ;;  %v606_v13 = vadd.f32 1.4214138, %v590_v17 }
 0x247   :  { %v823_v16 = vsel %vm791_vm5, %v775_v10, %v807_v31  ;;  %v777_v19 = vsub.f32 1.0, %v761_v23  ;;  %v637_v57 = vadd.f32 -0.28449672, %v621_v41  ;;  %v668_v10 = vadd.f32 0.2548296, %v652_v49  ;;  %v305_v41 = vpop.permute.xlu0 %304 }
 0x248   :  { %v839_v45 = vadd.f32 1.0, %v823_v16  ;;  %v824_v18 = vsel %vm792_vm6, %v776_v7, %v808_v38  ;;  %v778_v15 = vsub.f32 1.0, %v762_v6  ;;  %v683_v60 = vmul.f32 %v3011_v12, %v667_v25 }
 0x249   :  { %v809_v47 = vsub.f32 0.0, %v777_v19  ;;  %v840_v4 = vadd.f32 1.0, %v824_v18  ;;  %v653_v7 = vmul.f32 %v3029_v56, %v637_v57  ;;  %v684_v42 = vmul.f32 %v3016_v39, %v668_v10 }
 0x24a   :  { %v810_v62 = vsub.f32 0.0, %v778_v15  ;;  %v3064_v48 = vmul.f32 %v839_v45, %v2958_v52  ;;  %v622_v33 = vmul.f32 %v3040_v32, %v606_v13  ;;  %v763_v38 = vmul.f32 %v2474_v50, %v683_v60 }
 0x24b   :  { %v825_v14 = vsel %vm793_vm7, %v777_v19, %v809_v47  ;;  %v669_v6 = vadd.f32 0.2548296, %v653_v7  ;;  %v527_v52 = vadd.f32 1.0, %v511_v51  ;;  %v3075_v36 = vmul.f32 %v840_v4, %v2960_v53 }
 0x24c   :  { %v841_v31 = vadd.f32 1.0, %v825_v14  ;;  %v826_v23 = vsel %vm794_vm8, %v778_v15, %v810_v62  ;;  %v764_v12 = vmul.f32 %v2476_v58, %v684_v42  ;;  %v638_v17 = vadd.f32 -0.28449672, %v622_v33  ;;  %v2480_v15 = vpop.eup %2479 }
 0x24d   :  { %v842_v37 = vadd.f32 1.0, %v826_v23  ;;  %v779_v27 = vsub.f32 1.0, %v763_v38  ;;  %v685_v39 = vmul.f32 %v3029_v56, %v669_v6  ;;  %2481 = vrcp.f32 %v527_v52 }
 0x24e   :  { %v3078_v21 = vmul.f32 %v841_v31, %v3001_v59  ;;  %v459_v51 = vmul.f32 0.5, %v2943_v43  ;;  %v780_v19 = vsub.f32 1.0, %v764_v12  ;;  %v654_v53 = vmul.f32 %v3040_v32, %v638_v17  ;;  %v310_v12 = vpop.permute.xlu1 %309 }
 0x24f   :  { %v3081_v16 = vmul.f32 %v842_v37, %v3014_v30  ;;  %v811_v58 = vsub.f32 0.0, %v779_v27  ;;  %v460_v20 = vmul.f32 0.5, %v2945_v44  ;;  %v765_v30 = vmul.f32 %v2478_v0, %v685_v39 }
 0x250   :  { %v871_v50 = vadd.f32 %v3078_v21, %v3064_v48  ;;  %v812_v56 = vsub.f32 0.0, %v780_v19  ;;  %v670_v45 = vadd.f32 0.2548296, %v654_v53  ;;  %v3093_v18 = vadd.f32 %v2974_v9, %v305_v41 }
 0x251   :  { %v884_v59 = vadd.f32 %v3081_v16, %v3075_v36  ;;  %v827_v43 = vsel %vm795_vm9, %v779_v27, %v811_v58  ;;  %v781_v49 = vsub.f32 1.0, %v765_v30  ;;  %v3097_v47 = vmul.f32 0.70710677, %v3033_v8 }
 0x252   :  { %v843_v25 = vadd.f32 1.0, %v827_v43  ;;  %v828_v57 = vsel %vm796_vm10, %v780_v19, %v812_v56  ;;  %v461_v0 = vmul.f32 0.5, %v2954_v28  ;;  %v686_v44 = vmul.f32 %v3040_v32, %v670_v45  ;;  %v315_v45 = vpop.permute.xlu0 %314 }
 0x253   :  { %v844_v46 = vadd.f32 1.0, %v828_v57  ;;  %v813_v4 = vsub.f32 0.0, %v781_v49  ;;  %v703_v62 = vsub.f32 0.0, %v3027_v26  ;;  %v496_v9 = vand.u32 2147483647, %v3097_v47 }
 0x254   :  { %v3103_v10 = vmul.f32 %v843_v25, %v459_v51  ;;  %v766_v24 = vmul.f32 %v2480_v15, %v686_v44  ;;  %v3107_v13 = vmul.f32 0.70710677, %v3093_v18  ;;  %v3112_v32 = vadd.f32 %v2980_v22, %v305_v41 }
 0x255   :  { %v3109_v14 = vmul.f32 %v844_v46, %v460_v20  ;;  %v829_v60 = vsel %vm797_vm11, %v781_v49, %v813_v4  ;;  %v512_v28 = vmul.f32 0.3275911, %v496_v9  ;;  %v719_v37 = vmul.f32 %v703_v62, %v3027_v26 }
 0x256   :  { %v872_v7 = vadd.f32 %v871_v50, %v3103_v10  ;;  %v845_v31 = vadd.f32 1.0, %v829_v60  ;;  %v782_v23 = vsub.f32 1.0, %v766_v24  ;;  %v497_v42 = vand.u32 2147483647, %v3107_v13 }
 0x257   :  { %v3116_v33 = vpop.eup %2481  ;;  %v885_v61 = vadd.f32 %v884_v59, %v3109_v14  ;;  %v528_v38 = vadd.f32 1.0, %v512_v28  ;;  %vm798_vm12 = vcmp.ge.f32.partialorder %v2969_v5, 0.0  ;;  %v3125_v27 = vmul.f32 0.70710677, %v3112_v32 }
 0x258   :  { %v3120_v6 = vmul.f32 %v845_v31, %v461_v0  ;;  %v814_v52 = vsub.f32 0.0, %v782_v23  ;;  %v559_v22 = vmul.f32 1.0614054, %v3116_v33  ;;  %v513_v17 = vmul.f32 0.3275911, %v497_v42 }
 0x259   :  { %2483 = vrcp.f32 %v528_v38  ;;  %v3128_v39 = vadd.f32 %v2983_v35, %v310_v12  ;;  %v462_v53 = vmul.f32 0.5, %v2963_v55  ;;  %v743_v58 = vmul.f32 1.442695, %v719_v37 }
 0x25a   :  { %v3131_v50 = vadd.f32 %v872_v7, %v3120_v6  ;;  %v830_v26 = vsel %vm798_vm12, %v782_v23, %v814_v52  ;;  %v575_v51 = vadd.f32 -1.4531521, %v559_v22  ;;  %v529_v19 = vadd.f32 1.0, %v513_v17 }
 0x25b   :  { %v846_v59 = vadd.f32 1.0, %v830_v26  ;;  %v498_v20 = vand.u32 2147483647, %v3125_v27  ;;  %v704_v41 = vsub.f32 0.0, %v496_v9  ;;  %v3139_v15 = vmul.f32 0.70710677, %v3128_v39 }
 0x25c   :  { %v591_v5 = vmul.f32 %v3116_v33, %v575_v51  ;;  %2485 = vrcp.f32 %v529_v19  ;;  %v3142_v43 = vadd.f32 %v2987_v40, %v310_v12  ;;  %v3148_v25 = vadd.f32 %v2997_v63, %v315_v45 }
 0x25d   :  { %v3136_v30 = vmul.f32 %v846_v59, %v462_v53  ;;  %v514_v35 = vmul.f32 0.3275911, %v498_v20  ;;  %2487 = vpow2.f32 %v743_v58  ;;  %v705_v0 = vsub.f32 0.0, %v497_v42 }
 0x25e   :  { %v607_v56 = vadd.f32 1.4214138, %v591_v5  ;;  %v499_v44 = vand.u32 2147483647, %v3139_v15  ;;  %v720_v46 = vmul.f32 %v704_v41, %v496_v9  ;;  %v3153_v4 = vmul.f32 0.70710677, %v3142_v43 }
 0x25f   :  { %v3145_v55 = vadd.f32 %v885_v61, %v3136_v30  ;;  %v530_v49 = vadd.f32 1.0, %v514_v35  ;;  %v706_v62 = vsub.f32 0.0, %v498_v20  ;;  %v3161_v63 = vmul.f32 0.70710677, %v3148_v25 }
 0x260   :  { %v623_v57 = vmul.f32 %v3116_v33, %v607_v56  ;;  %v515_v24 = vmul.f32 0.3275911, %v499_v44  ;;  %v3158_v28 = vand.u32 2147483647, %v3153_v4  ;;  %v721_v9 = vmul.f32 %v705_v0, %v497_v42 }
 0x261   :  { %2489 = vrcp.f32 %v530_v49  ;;  %v745_v61 = vmul.f32 1.442695, %v720_v46  ;;  %v3167_v38 = vand.u32 2147483647, %v3161_v63  ;;  %v722_v17 = vmul.f32 %v706_v62, %v498_v20 }
 0x262   :  { %v639_v40 = vadd.f32 -0.28449672, %v623_v57  ;;  %v531_v23 = vadd.f32 1.0, %v515_v24  ;;  %v516_v37 = vmul.f32 0.3275911, %v3158_v28  ;;  %v3174_v42 = vadd.f32 %v3004_v11, %v315_v45 }
 0x263   :  { %v3155_v60 = vpop.eup %2483  ;;  %v517_v19 = vmul.f32 0.3275911, %v3167_v38  ;;  %v463_v53 = vmul.f32 0.5, %v2995_v54  ;;  %v747_v5 = vmul.f32 1.442695, %v721_v9  ;;  %v707_v56 = vsub.f32 0.0, %v499_v44 }
 0x264   :  { %v655_v7 = vmul.f32 %v3116_v33, %v639_v40  ;;  %v560_v31 = vmul.f32 1.0614054, %v3155_v60  ;;  %2491 = vrcp.f32 %v531_v23  ;;  %v532_v51 = vadd.f32 1.0, %v516_v37 }
 0x265   :  { %v533_v20 = vadd.f32 1.0, %v517_v19  ;;  %vm799_vm13 = vcmp.ge.f32.partialorder %v3009_v34, 0.0  ;;  %v3181_v57 = vmul.f32 0.5, %v3033_v8  ;;  %v3187_v0 = vmul.f32 0.70710677, %v3174_v42 }
 0x266   :  { %v3169_v52 = vpop.eup %2485  ;;  %v671_v12 = vadd.f32 0.2548296, %v655_v7  ;;  %v576_v22 = vadd.f32 -1.4531521, %v560_v31  ;;  %2493 = vrcp.f32 %v532_v51  ;;  %v723_v8 = vmul.f32 %v707_v56, %v499_v44 }
 0x267   :  { %v561_v26 = vmul.f32 1.0614054, %v3169_v52  ;;  %v2488_v41 = vpop.eup %2487  ;;  %2495 = vpow2.f32 %v745_v61  ;;  %v3192_v7 = vand.u32 2147483647, %v3187_v0  ;;  %v708_v61 = vsub.f32 0.0, %v3158_v28 }
 0x268   :  { %v687_v59 = vmul.f32 %v3116_v33, %v671_v12  ;;  %v592_v58 = vmul.f32 %v3155_v60, %v576_v22  ;;  %v749_v33 = vmul.f32 1.442695, %v722_v17  ;;  %2497 = vrcp.f32 %v533_v20 }
 0x269   :  { %v577_v35 = vadd.f32 -1.4531521, %v561_v26  ;;  %2499 = vpow2.f32 %v747_v5  ;;  %v3196_v37 = vmul.f32 0.5, %v3093_v18  ;;  %v518_v22 = vmul.f32 0.3275911, %v3192_v7 }
 0x26a   :  { %v767_v49 = vmul.f32 %v2488_v41, %v687_v59  ;;  %v608_v11 = vadd.f32 1.4214138, %v592_v58  ;;  %2501 = vpow2.f32 %v749_v33  ;;  %v709_v19 = vsub.f32 0.0, %v3167_v38 }
 0x26b   :  { %v3183_v45 = vpop.eup %2489  ;;  %v593_v54 = vmul.f32 %v3169_v52, %v577_v35  ;;  %v534_v5 = vadd.f32 1.0, %v518_v22  ;;  %v751_v56 = vmul.f32 1.442695, %v723_v8  ;;  %v724_v20 = vmul.f32 %v708_v61, %v3158_v28 }
 0x26c   :  { %v783_v46 = vsub.f32 1.0, %v767_v49  ;;  %v624_v40 = vmul.f32 %v3155_v60, %v608_v11  ;;  %v562_v62 = vmul.f32 1.0614054, %v3183_v45  ;;  %vm800_vm14 = vcmp.ge.f32.partialorder %v3097_v47, 0.0 }
 0x26d   :  { %v609_v24 = vadd.f32 1.4214138, %v593_v54  ;;  %2503 = vrcp.f32 %v534_v5  ;;  %v725_v8 = vmul.f32 %v709_v19, %v3167_v38  ;;  %v710_v38 = vsub.f32 0.0, %v3192_v7 }
 0x26e   :  { %v815_v31 = vsub.f32 0.0, %v783_v46  ;;  %v640_v9 = vadd.f32 -0.28449672, %v624_v40  ;;  %v578_v23 = vadd.f32 -1.4531521, %v562_v62  ;;  %v3200_v17 = vpop.eup %2491  ;;  %2505 = vpow2.f32 %v751_v56 }
 0x26f   :  { %v625_v12 = vmul.f32 %v3169_v52, %v609_v24  ;;  %v563_v18 = vmul.f32 1.0614054, %v3200_v17  ;;  %vm801_vm15 = vcmp.ge.f32.partialorder %v3107_v13, 0.0  ;;  %vm802_vm4 = vcmp.ge.f32.partialorder %v3125_v27, 0.0 }
 0x270   :  { %v831_v44 = vsel %vm799_vm13, %v783_v46, %v815_v31  ;;  %v656_v26 = vmul.f32 %v3155_v60, %v640_v9  ;;  %v594_v51 = vmul.f32 %v3183_v45, %v578_v23  ;;  %v3209_v49 = vpop.eup %2493  ;;  %vm803_vm5 = vcmp.ge.f32.partialorder %v3139_v15, 0.0 }
 0x271   :  { %v847_v59 = vadd.f32 1.0, %v831_v44  ;;  %v641_v58 = vadd.f32 -0.28449672, %v625_v12  ;;  %v579_v54 = vadd.f32 -1.4531521, %v563_v18  ;;  %v2496_v62 = vpop.eup %2495  ;;  %vm804_vm6 = vcmp.ge.f32.partialorder %v3153_v4, 0.0 }
 0x272   :  { %v672_v41 = vadd.f32 0.2548296, %v656_v26  ;;  %v610_v35 = vadd.f32 1.4214138, %v594_v51  ;;  %v564_v40 = vmul.f32 1.0614054, %v3209_v49  ;;  %v3224_v31 = vpop.eup %2497 }
 0x273   :  { %v3211_v34 = vmul.f32 %v847_v59, %v463_v53  ;;  %v657_v11 = vmul.f32 %v3169_v52, %v641_v58  ;;  %v595_v53 = vmul.f32 %v3200_v17, %v579_v54  ;;  %v2500_v61 = vpop.eup %2499  ;;  %v753_v44 = vmul.f32 1.442695, %v724_v20 }
 0x274   :  { %v688_v33 = vmul.f32 %v3155_v60, %v672_v41  ;;  %v626_v46 = vmul.f32 %v3183_v45, %v610_v35  ;;  %v580_v23 = vadd.f32 -1.4531521, %v564_v40  ;;  %v565_v26 = vmul.f32 1.0614054, %v3224_v31  ;;  %v2502_v19 = vpop.eup %2501 }
 0x275   :  { %v3220_v28 = vadd.f32 %v3131_v50, %v3211_v34  ;;  %v673_v24 = vadd.f32 0.2548296, %v657_v11  ;;  %v611_v22 = vadd.f32 1.4214138, %v595_v53  ;;  %v755_v41 = vmul.f32 1.442695, %v725_v8 }
 0x276   :  { %v768_v9 = vmul.f32 %v2496_v62, %v688_v33  ;;  %v642_v60 = vadd.f32 -0.28449672, %v626_v46  ;;  %v596_v59 = vmul.f32 %v3209_v49, %v580_v23  ;;  %v581_v5 = vadd.f32 -1.4531521, %v565_v26 }
 0x277   :  { %v689_v12 = vmul.f32 %v3169_v52, %v673_v24  ;;  %v627_v18 = vmul.f32 %v3200_v17, %v611_v22  ;;  %2507 = vpow2.f32 %v753_v44  ;;  %v726_v62 = vmul.f32 %v710_v38, %v3192_v7  ;;  %v3239_v24 = vpop.eup %2503 }
 0x278   :  { %v784_v50 = vsub.f32 1.0, %v768_v9  ;;  %v658_v51 = vmul.f32 %v3183_v45, %v642_v60  ;;  %v612_v56 = vadd.f32 1.4214138, %v596_v59  ;;  %v597_v54 = vmul.f32 %v3224_v31, %v581_v5  ;;  %v2506_v44 = vpop.eup %2505 }
 0x279   :  { %v769_v58 = vmul.f32 %v2500_v61, %v689_v12  ;;  %v643_v11 = vadd.f32 -0.28449672, %v627_v18  ;;  %2509 = vpow2.f32 %v755_v41  ;;  %v566_v12 = vmul.f32 1.0614054, %v3239_v24 }
 0x27a   :  { %v816_v35 = vsub.f32 0.0, %v784_v50  ;;  %v674_v52 = vadd.f32 0.2548296, %v658_v51  ;;  %v628_v40 = vmul.f32 %v3209_v49, %v612_v56  ;;  %v613_v60 = vadd.f32 1.4214138, %v597_v54 }
 0x27b   :  { %v785_v20 = vsub.f32 1.0, %v769_v58  ;;  %v659_v9 = vmul.f32 %v3200_v17, %v643_v11  ;;  %v582_v59 = vadd.f32 -1.4531521, %v566_v12  ;;  %v468_v15 = vmul.f32 0.5, %v3142_v43 }
 0x27c   :  { %v832_v33 = vsel %vm800_vm14, %v784_v50, %v816_v35  ;;  %v690_v46 = vmul.f32 %v3183_v45, %v674_v52  ;;  %v644_v61 = vadd.f32 -0.28449672, %v628_v40  ;;  %v629_v7 = vmul.f32 %v3224_v31, %v613_v60 }
 0x27d   :  { %v848_v53 = vadd.f32 1.0, %v832_v33  ;;  %v817_v8 = vsub.f32 0.0, %v785_v20  ;;  %v675_v22 = vadd.f32 0.2548296, %v659_v9  ;;  %v598_v41 = vmul.f32 %v3239_v24, %v582_v59 }
 0x27e   :  { %v770_v23 = vmul.f32 %v2502_v19, %v690_v46  ;;  %v660_v51 = vmul.f32 %v3209_v49, %v644_v61  ;;  %v645_v58 = vadd.f32 -0.28449672, %v629_v7  ;;  %v466_v35 = vmul.f32 0.5, %v3112_v32 }
 0x27f   :  { %v3244_v47 = vmul.f32 %v848_v53, %v3181_v57  ;;  %v833_v45 = vsel %vm801_vm15, %v785_v20, %v817_v8  ;;  %v691_v19 = vmul.f32 %v3200_v17, %v675_v22  ;;  %v757_v57 = vmul.f32 1.442695, %v726_v62 }
 0x280   :  { %v849_v26 = vadd.f32 1.0, %v833_v45  ;;  %v786_v50 = vsub.f32 1.0, %v770_v23  ;;  %v676_v5 = vadd.f32 0.2548296, %v660_v51  ;;  %v661_v56 = vmul.f32 %v3224_v31, %v645_v58 }
 0x281   :  { %v887_v38 = vadd.f32 %v3145_v55, %v3244_v47  ;;  %v771_v52 = vmul.f32 %v2506_v44, %v691_v19  ;;  %v614_v11 = vadd.f32 1.4214138, %v598_v41  ;;  %2511 = vpow2.f32 %v757_v57 }
 0x282   :  { %v3254_v18 = vmul.f32 %v849_v26, %v3196_v37  ;;  %v818_v13 = vsub.f32 0.0, %v786_v50  ;;  %v692_v20 = vmul.f32 %v3209_v49, %v676_v5  ;;  %v2508_v37 = vpop.eup %2507  ;;  %v677_v46 = vadd.f32 0.2548296, %v661_v56 }
 0x283   :  { %v787_v33 = vsub.f32 1.0, %v771_v52  ;;  %v630_v32 = vmul.f32 %v3239_v24, %v614_v11  ;;  %v2510_v8 = vpop.eup %2509  ;;  %v467_v61 = vmul.f32 0.5, %v3128_v39  ;;  %vm805_vm7 = vcmp.ge.f32.partialorder %v3161_v63, 0.0 }
 0x284   :  { %v875_v55 = vadd.f32 %v3220_v28, %v3254_v18  ;;  %v834_v17 = vsel %vm802_vm4, %v786_v50, %v818_v13  ;;  %v772_v40 = vmul.f32 %v2508_v37, %v692_v20  ;;  %v693_v53 = vmul.f32 %v3224_v31, %v677_v46 }
 0x285   :  { %v850_v54 = vadd.f32 1.0, %v834_v17  ;;  %v819_v27 = vsub.f32 0.0, %v787_v33  ;;  %v646_v9 = vadd.f32 -0.28449672, %v630_v32  ;;  %v469_v57 = vmul.f32 0.5, %v3148_v25 }
 0x286   :  { %v788_v28 = vsub.f32 1.0, %v772_v40  ;;  %v773_v23 = vmul.f32 %v2510_v8, %v693_v53  ;;  %vm806_vm8 = vcmp.ge.f32.partialorder %v3187_v0, 0.0  ;;  %v470_v63 = vmul.f32 0.5, %v3174_v42 }
 0x287   :  { %v3264_v62 = vmul.f32 %v850_v54, %v466_v35  ;;  %v835_v60 = vsel %vm803_vm5, %v787_v33, %v819_v27  ;;  %v662_v22 = vmul.f32 %v3239_v24, %v646_v9  ;;  %v3289_v9 = vpop.permute.xlu1 %981  ;;  %vm1490_vm9 = vcmask 523264  }
 0x288   :  { %v851_v12 = vadd.f32 1.0, %v835_v60  ;;  %v820_v45 = vsub.f32 0.0, %v788_v28  ;;  %v789_v7 = vsub.f32 1.0, %v773_v23 }
 0x289   :  { %v888_v49 = vadd.f32 %v887_v38, %v3264_v62  ;;  %v678_v26 = vadd.f32 0.2548296, %v662_v22 }
 0x28a   :  { %v867_v44 = vmul.f32 %v851_v12, %v467_v61  ;;  %v836_v31 = vsel %vm804_vm6, %v788_v28, %v820_v45  ;;  %v821_v51 = vsub.f32 0.0, %v789_v7 }
 0x28b   :  { %v852_v50 = vadd.f32 1.0, %v836_v31  ;;  %v694_v38 = vmul.f32 %v3239_v24, %v678_v26  ;;  %v2512_v39 = vpop.eup %2511 }
 0x28c   :  { %v876_v59 = vadd.f32 %v875_v55, %v867_v44  ;;  %v837_v58 = vsel %vm805_vm7, %v789_v7, %v821_v51  ;;  %v3306_v7 = vpop.permute.xlu1 %1029 }
 0x28d   :  { %v868_v19 = vmul.f32 %v852_v50, %v468_v15  ;;  %v853_v13 = vadd.f32 1.0, %v837_v58  ;;  %v774_v4 = vmul.f32 %v2512_v39, %v694_v38 }
 0x28f   :  { %v889_v5 = vadd.f32 %v888_v49, %v868_v19  ;;  %v869_v41 = vmul.f32 %v853_v13, %v469_v57  ;;  %v790_v35 = vsub.f32 1.0, %v774_v4 }
 0x291   :  { %v877_v52 = vadd.f32 %v876_v59, %v869_v41  ;;  %v822_v56 = vsub.f32 0.0, %v790_v35  ;;  %v3340_v59 = vpop.permute.xlu1 %1033 }
 0x293   :  { %v878_v43 = vrot.slane %v877_v52, 4  ;;  %v838_v55 = vsel %vm806_vm8, %v790_v35, %v822_v56 }
 0x294   :  { %v854_v17 = vadd.f32 1.0, %v838_v55 }
 0x295   :  { %v879_v24 = vadd.f32 %v878_v43, %v877_v52  ;;  %v3354_v43 = vpop.permute.xlu1 %993 }
 0x296   :  { %v870_v20 = vmul.f32 %v854_v17, %v470_v63 }
 0x297   :  { %v880_v11 = vrot.slane %v879_v24, 2 }
 0x298   :  { %v890_v37 = vadd.f32 %v889_v5, %v870_v20 }
 0x299   :  { %v881_v54 = vadd.f32 %v880_v11, %v879_v24 }
 0x29a   :  { %v891_v25 = vrot.slane %v890_v37, 4 }
 0x29b   :  { %v882_v33 = vrot.slane %v881_v54, 1 }
 0x29c   :  { %v892_v46 = vadd.f32 %v891_v25, %v890_v37 }
 0x29d   :  { %v883_v40 = vadd.f32 %v882_v33, %v881_v54  ;;  %v3362_v33 = vpop.permute.xlu0 %1037 }
 0x29e   :  { %v893_v32 = vrot.slane %v892_v46, 2 }
 0x29f   :  { %v898_v27 = vmul.f32 0.015625, %v883_v40 }
 0x2a0   :  { %v894_v53 = vadd.f32 %v893_v32, %v892_v46  ;;  %v1042_v46 = vpop.permute.xlu1 %1041 }
 0x2a1   :  { %v3279_v8 = vsub.f32 %v3120_v6, %v898_v27  ;;  %v3282_v0 = vsub.f32 %v3211_v34, %v898_v27  ;;  %v3285_v42 = vsub.f32 %v3254_v18, %v898_v27  ;;  %v3287_v28 = vsub.f32 %v869_v41, %v898_v27 }
 0x2a2   :  { %v895_v49 = vrot.slane %v894_v53, 1  ;;  %v3292_v60 = vsub.f32 %v3064_v48, %v898_v27  ;;  %v3295_v23 = vsub.f32 %v3078_v21, %v898_v27  ;;  %v3298_v6 = vsub.f32 %v3103_v10, %v898_v27 }
 0x2a3   :  { %v3300_v61 = vsub.f32 %v867_v44, %v898_v27  ;;  %v924_v38 = vmul.f32 %v3282_v0, %v3282_v0  ;;  %v926_v57 = vmul.f32 %v3285_v42, %v3285_v42  ;;  %v930_v55 = vmul.f32 %v3287_v28, %v3287_v28 }
 0x2a4   :  { %v896_v34 = vadd.f32 %v895_v49, %v894_v53  ;;  %v916_v18 = vmul.f32 %v3292_v60, %v3292_v60  ;;  %v918_v12 = vmul.f32 %v3295_v23, %v3295_v23 }
 0x2a5   :  { %v928_v41 = vmul.f32 %v3300_v61, %v3300_v61 }
 0x2a6   :  { %v899_v45 = vmul.f32 0.015625, %v896_v34  ;;  %v932_v22 = vadd.f32 %v918_v12, %v916_v18  ;;  %v986_v18 = vpop.permute.xlu0 %985  ;;  %v998_v12 = vpop.permute.xlu1 %997 }
 0x2a8   :  { %v3309_v48 = vsub.f32 %v3136_v30, %v899_v45  ;;  %v3312_v21 = vsub.f32 %v3244_v47, %v899_v45  ;;  %v3315_v10 = vsub.f32 %v3264_v62, %v899_v45  ;;  %v3317_v44 = vsub.f32 %v870_v20, %v899_v45 }
 0x2a9   :  { %v3320_v31 = vsub.f32 %v3075_v36, %v899_v45  ;;  %v3323_v26 = vsub.f32 %v3081_v16, %v899_v45  ;;  %v3326_v15 = vsub.f32 %v3109_v14, %v899_v45  ;;  %v3328_v50 = vsub.f32 %v868_v19, %v899_v45 }
 0x2aa   :  { %v920_v30 = vmul.f32 %v3298_v6, %v3298_v6  ;;  %v922_v36 = vmul.f32 %v3279_v8, %v3279_v8  ;;  %v923_v19 = vmul.f32 %v3309_v48, %v3309_v48  ;;  %v925_v4 = vmul.f32 %v3312_v21, %v3312_v21 }
 0x2ab   :  { %v917_v47 = vmul.f32 %v3320_v31, %v3320_v31  ;;  %v919_v62 = vmul.f32 %v3323_v26, %v3323_v26  ;;  %v921_v16 = vmul.f32 %v3326_v15, %v3326_v15  ;;  %v927_v52 = vmul.f32 %v3315_v10, %v3315_v10 }
 0x2ac   :  { %v933_v51 = vadd.f32 %v932_v22, %v920_v30  ;;  %v929_v17 = vmul.f32 %v3328_v50, %v3328_v50  ;;  %v931_v11 = vmul.f32 %v3317_v44, %v3317_v44 }
 0x2ad   :  { %v945_v14 = vadd.f32 %v919_v62, %v917_v47 }
 0x2ae   :  { %v934_v39 = vadd.f32 %v933_v51, %v922_v36  ;;  %v990_v51 = vpop.permute.xlu0 %989 }
 0x2af   :  { %v946_v58 = vadd.f32 %v945_v14, %v921_v16  ;;  %v1046_v16 = vpop.permute.xlu1 %1045 }
 0x2b0   :  { %v935_v13 = vadd.f32 %v934_v39, %v924_v38 }
 0x2b1   :  { %v947_v5 = vadd.f32 %v946_v58, %v923_v19 }
 0x2b2   :  { %v936_v35 = vadd.f32 %v935_v13, %v926_v57  ;;  %v1002_v19 = vpop.permute.xlu0 %1001  ;;  %v2305_v57 = vld [vmem:[%s4139_s1 + $0x1] ss:$4 sm:$0x3] }
 0x2b3   :  { %v948_v56 = vadd.f32 %v947_v5, %v925_v4  ;;  %v3364_v58 = vpop.permute.xlu1 %1049 }
 0x2b4   :  { %v937_v63 = vadd.f32 %v936_v35, %v928_v41  ;;  %v3372_v41 = vrot.slane %v2305_v57, %v2733_v2  ;;  %v3375_v35 = vrot.slane %v2305_v57, %v2736_v3 }
 0x2b5   :  { %v949_v24 = vadd.f32 %v948_v56, %v927_v52 }
 0x2b6   :  { %v938_v20 = vadd.f32 %v937_v63, %v930_v55  ;;  %v1087_v13 = vpop.permute.xlu0 %1086 }
 0x2b7   :  { %v950_v37 = vadd.f32 %v949_v24, %v929_v17  ;;  %v3369_v4 = vpop.permute.xlu1 %1088 }
 0x2b8   :  { %v939_v54 = vrot.slane %v938_v20, 4  ;;  %v3379_v52 = vsel %vm71_vm0, %v1087_v13, %v3369_v4 }
 0x2b9   :  { %v951_v25 = vadd.f32 %v950_v37, %v931_v11 }
 0x2ba   :  { %v940_v40 = vadd.f32 %v939_v54, %v938_v20 }
 0x2bb   :  { %v952_v32 = vrot.slane %v951_v25, 4 }
 0x2bc   :  { %v941_v27 = vrot.slane %v940_v40, 2 }
 0x2bd   :  { %v953_v53 = vadd.f32 %v952_v32, %v951_v25 }
 0x2be   :  { %v942_v49 = vadd.f32 %v941_v27, %v940_v40 }
 0x2bf   :  { %v954_v34 = vrot.slane %v953_v53, 2 }
 0x2c0   :  { %v943_v45 = vrot.slane %v942_v49, 1 }
 0x2c1   :  { %v955_v22 = vadd.f32 %v954_v34, %v953_v53 }
 0x2c2   :  { %v944_v30 = vadd.f32 %v943_v45, %v942_v49 }
 0x2c3   :  { %v956_v47 = vrot.slane %v955_v22, 1 }
 0x2c4   :  { %v958_v62 = vmul.f32 0.015625, %v944_v30 }
 0x2c5   :  { %v957_v36 = vadd.f32 %v956_v47, %v955_v22 }
 0x2c6   :  { %v960_v14 = vadd.f32 1e-05, %v958_v62 }
 0x2c7   :  { %v959_v38 = vmul.f32 0.015625, %v957_v36  ;;  %v1006_v36 = vpop.permute.xlu0 %1005 }
 0x2c8   :  { %2513 = vrsqrt.f32 %v960_v14 }
 0x2c9   :  { %v961_v39 = vadd.f32 1e-05, %v959_v38 }
 0x2cb   :  { %2515 = vrsqrt.f32 %v961_v39 }
 0x2d2   :  { %v2514_v5 = vpop.eup %2513 }
 0x2d3   :  { %v964_v56 = vmul.f32 %v2514_v5, %v3292_v60  ;;  %v970_v55 = vmul.f32 %v2514_v5, %v3279_v8  ;;  %v966_v63 = vmul.f32 %v2514_v5, %v3295_v23  ;;  %v972_v17 = vmul.f32 %v2514_v5, %v3282_v0 }
 0x2d4   :  { %v968_v24 = vmul.f32 %v2514_v5, %v3298_v6  ;;  %v974_v20 = vmul.f32 %v2514_v5, %v3285_v42  ;;  %v976_v11 = vmul.f32 %v2514_v5, %v3300_v61  ;;  %v978_v37 = vmul.f32 %v2514_v5, %v3287_v28 }
 0x2d5   :  { %v2516_v54 = vpop.eup %2515  ;;  %v1012_v25 = vmul.f32 %v3289_v9, %v964_v56  ;;  %v1018_v40 = vmul.f32 %v3354_v43, %v970_v55  ;;  %v1014_v60 = vmul.f32 %v986_v18, %v966_v63  ;;  %v1020_v32 = vmul.f32 %v998_v12, %v972_v17  ;;  %v1054_v63 = vpop.permute.xlu0 %1053 }
 0x2d6   :  { %v965_v8 = vmul.f32 %v2516_v54, %v3320_v31  ;;  %v971_v23 = vmul.f32 %v2516_v54, %v3309_v48  ;;  %v967_v0 = vmul.f32 %v2516_v54, %v3323_v26  ;;  %v973_v6 = vmul.f32 %v2516_v54, %v3312_v21 }
 0x2d7   :  { %v3396_v42 = vadd.f32 %v3306_v7, %v1012_v25  ;;  %v3398_v61 = vadd.f32 %v1042_v46, %v1018_v40  ;;  %v3401_v28 = vadd.f32 %v3340_v59, %v1014_v60  ;;  %v969_v27 = vmul.f32 %v2516_v54, %v3326_v15 }
 0x2d8   :  { %v1013_v53 = vmul.f32 %v3289_v9, %v965_v8  ;;  %v1019_v31 = vmul.f32 %v3354_v43, %v971_v23  ;;  %v1015_v49 = vmul.f32 %v986_v18, %v967_v0  ;;  %v1021_v48 = vmul.f32 %v998_v12, %v973_v6  ;;  %v1010_v18 = vpop.permute.xlu1 %1009 }
 0x2d9   :  { %v1217_v26 = vmul.f32 %v3372_v41, %v3396_v42  ;;  %v1223_v21 = vmul.f32 %v3372_v41, %v3398_v61  ;;  %v1219_v34 = vmul.f32 %v3372_v41, %v3401_v28  ;;  %v1016_v45 = vmul.f32 %v990_v51, %v968_v24 }
 0x2da   :  { %v3413_v22 = vadd.f32 %v3306_v7, %v1013_v53  ;;  %v3415_v15 = vadd.f32 %v1042_v46, %v1019_v31  ;;  %v3418_v9 = vadd.f32 %v3340_v59, %v1015_v49  ;;  %v1017_v43 = vmul.f32 %v990_v51, %v969_v27 }
 0x2db   :  { %v3421_v12 = vadd.f32 %v3362_v33, %v1016_v45  ;;  %v3423_v30 = vadd.f32 %v1046_v16, %v1020_v32  ;;  %v3425_v47 = vadd.f32 %v1046_v16, %v1021_v48  ;;  %v975_v62 = vmul.f32 %v2516_v54, %v3315_v10 }
 0x2dc   :  { %v1218_v7 = vmul.f32 %v3375_v35, %v3413_v22  ;;  %v1224_v46 = vmul.f32 %v3375_v35, %v3415_v15  ;;  %v1220_v59 = vmul.f32 %v3375_v35, %v3418_v9  ;;  %v3435_v51 = vadd.f32 %v3362_v33, %v1017_v43  ;;  %v1058_v25 = vpop.permute.xlu1 %1057 }
 0x2dd   :  { %v1221_v14 = vmul.f32 %v3372_v41, %v3421_v12  ;;  %v1225_v16 = vmul.f32 %v3372_v41, %v3423_v30  ;;  %v1226_v10 = vmul.f32 %v3375_v35, %v3425_v47  ;;  %v1022_v38 = vmul.f32 %v1002_v19, %v974_v20 }
 0x2de   :  { %v1222_v39 = vmul.f32 %v3375_v35, %v3435_v51  ;;  %v1023_v57 = vmul.f32 %v1002_v19, %v975_v62  ;;  %v977_v13 = vmul.f32 %v2516_v54, %v3328_v50  ;;  %v1024_v5 = vmul.f32 %v1006_v36, %v976_v11 }
 0x2df   :  { %v3447_v33 = vadd.f32 %v3364_v58, %v1022_v38  ;;  %v979_v56 = vmul.f32 %v2516_v54, %v3317_v44  ;;  %v1026_v55 = vmul.f32 %v1010_v18, %v978_v37  ;;  %v1093_v17 = vmul.f32 %v3379_v52, %v3396_v42 }
 0x2e0   :  { %v3453_v24 = vadd.f32 %v3364_v58, %v1023_v57  ;;  %v1025_v20 = vmul.f32 %v1006_v36, %v977_v13  ;;  %v3455_v40 = vadd.f32 %v1054_v63, %v1024_v5  ;;  %v1094_v50 = vmul.f32 %v3369_v4, %v3413_v22  ;;  %v1262_v13 = vpop.permute.xlu0 %1261 }
 0x2e1   :  { %v1227_v19 = vmul.f32 %v3372_v41, %v3447_v33  ;;  %v1027_v11 = vmul.f32 %v1010_v18, %v979_v56  ;;  %v3461_v44 = vadd.f32 %v1058_v25, %v1026_v55  ;;  %1125 = vrot.lane.b32.xlu1 %v1093_v17, %s2664_s30  ;;  %v1095_v8 = vmul.f32 %v3379_v52, %v3401_v28  ;;  %v1381_v55 = vld [vmem:[#allocation7 + $0x18] sm:$0xff]  ;;  %v1443_v17 = vld [vmem:[%s4142_s4 + $0x8] sm:$0xff] }
 0x2e2   :  { %v1228_v37 = vmul.f32 %v3375_v35, %v3453_v24  ;;  %v3466_v58 = vadd.f32 %v1054_v63, %v1025_v20  ;;  %v1229_v54 = vmul.f32 %v3372_v41, %v3455_v40  ;;  %1127 = vrot.lane.b32.xlu0 %v1094_v50, %s2664_s30  ;;  %v1096_v0 = vmul.f32 %v3369_v4, %v3418_v9  ;;  %v1442_v63 = vld [vmem:[%s4142_s4] sm:$0xff]  ;;  %v1444_v20 = vld [vmem:[%s4142_s4 + $0x10] sm:$0xff] }
 0x2e3   :  { %v3471_v60 = vadd.f32 %v1058_v25, %v1027_v11  ;;  %v1231_v32 = vmul.f32 %v3372_v41, %v3461_v44  ;;  %v1097_v27 = vmul.f32 %v3379_v52, %v3421_v12  ;;  %v1098_v41 = vmul.f32 %v3369_v4, %v3435_v51  ;;  %2308 = vmatprep.mubr.msk.f32.mxu1 %vm1490_vm9, %v1381_v55  ;;  %v1446_v25 = vld [vmem:[%s4142_s4 + $0x20] sm:$0xff]  ;;  %v1448_v50 = vld [vmem:[%s4142_s4 + $0x30] sm:$0xff] }
 0x2e4   :  { %v1230_v23 = vmul.f32 %v3375_v35, %v3466_v58  ;;  %v1099_v53 = vmul.f32 %v3379_v52, %v3398_v61  ;;  %v3495_v31 = vpack.c.bf16 %v1220_v59, %v1218_v7  ;;  %v3497_v49 = vpack.c.bf16 %v1219_v34, %v1217_v26 }
 0x2e5   :  { %v1232_v6 = vmul.f32 %v3375_v35, %v3471_v60  ;;  %1129 = vrot.lane.b32.xlu1 %v1095_v8, %s2664_s30  ;;  %v1100_v35 = vmul.f32 %v3369_v4, %v3415_v15  ;;  %v3499_v48 = vpack.c.bf16 %v1224_v46, %v1222_v39  ;;  %v3501_v45 = vpack.c.bf16 %v1223_v21, %v1221_v14 }
 0x2e6   :  { %1131 = vrot.lane.b32.xlu0 %v1096_v0, %s2664_s30  ;;  %v3503_v43 = vpack.c.bf16 %v1228_v37, %v1226_v10  ;;  %v3505_v18 = vpack.c.bf16 %v1227_v19, %v1225_v16  ;;  %v3509_v36 = vpack.c.bf16 %v1231_v32, %v1229_v54  ;;  %v1101_v26 = vmul.f32 %v3379_v52, %v3423_v30  ;;  %v1260_v16 = vpop.permute.xlu1 %1259  ;;  %v1447_v19 = vld [vmem:[%s4142_s4 + $0x28] sm:$0xff] }
 0x2e7   :  { %v3507_v62 = vpack.c.bf16 %v1232_v6, %v1230_v23  ;;  %v1102_v34 = vmul.f32 %v3369_v4, %v3425_v47  ;;  %v1103_v21 = vmul.f32 %v3379_v52, %v3447_v33  ;;  %v1104_v7 = vmul.f32 %v3369_v4, %v3453_v24 }
 0x2e8   :  { %v1105_v46 = vmul.f32 %v3379_v52, %v3455_v40  ;;  %v1106_v59 = vmul.f32 %v3369_v4, %v3466_v58  ;;  %v1107_v14 = vmul.f32 %v3379_v52, %v3461_v44  ;;  %v1108_v10 = vmul.f32 %v3369_v4, %v3471_v60 }
 0x2e9   :  { %1133 = vrot.lane.b32.xlu1 %v1097_v27, %s2664_s30  ;;  %v1266_v38 = vmul.f32 %v1260_v16, %v3396_v42  ;;  %v1268_v39 = vmul.f32 %v1260_v16, %v3401_v28  ;;  %v1270_v57 = vmul.f32 %v1260_v16, %v3421_v12  ;;  %v1272_v52 = vmul.f32 %v1260_v16, %v3398_v61 }
 0x2ea   :  { %1135 = vrot.lane.b32.xlu0 %v1098_v41, %s2664_s30  ;;  %v1274_v4 = vmul.f32 %v1260_v16, %v3423_v30  ;;  %v1263_v5 = vsel %vm107_vm1, %v1260_v16, %v1262_v13  ;;  %v1276_v42 = vmul.f32 %v1260_v16, %v3447_v33  ;;  %v2670_v11 = vmov 4  }
 0x2eb   :  { %v1267_v28 = vmul.f32 %v1263_v5, %v3413_v22  ;;  %v1269_v12 = vmul.f32 %v1263_v5, %v3418_v9  ;;  %v1271_v61 = vmul.f32 %v1263_v5, %v3435_v51  ;;  %v1273_v30 = vmul.f32 %v1263_v5, %v3415_v15  ;;  %v1379_v51 = vld [vmem:[#allocation7 + $0x8] sm:$0xff] }
 0x2ec   :  { %v1275_v33 = vmul.f32 %v1263_v5, %v3425_v47  ;;  %v1277_v56 = vmul.f32 %v1263_v5, %v3453_v24  ;;  %v1279_v22 = vmul.f32 %v1263_v5, %v3466_v58  ;;  %v1281_v9 = vmul.f32 %v1263_v5, %v3471_v60  ;;  %2307 = vmatprep.mubr.msk.f32.mxu0 %vm1490_vm9, %v1379_v51 }
 0x2ed   :  { %1137 = vrot.lane.b32.xlu1 %v1099_v53, %s2664_s30  ;;  %v1278_v15 = vmul.f32 %v1260_v16, %v3455_v40  ;;  %v1280_v47 = vmul.f32 %v1260_v16, %v3461_v44  ;;  %v2669_v24 = vmov 3   ;;  %v1445_v40 = vld [vmem:[%s4142_s4 + $0x18] sm:$0xff] }
 0x2ee   :  { %1139 = vrot.lane.b32.xlu0 %v1100_v35, %s2664_s30  ;;  %2443 = vset.pattern.permute.xlu1 %v2669_v24  ;;  %v1449_v44 = vld [vmem:[%s4142_s4 + $0x38] sm:$0xff] }
 0x2ef   :  { %2444 = vset.pattern.permute.xlu0 %v2669_v24 }
 0x2f1   :  { %1141 = vrot.lane.b32.xlu1 %v1101_v26, %s2664_s30 }
 0x2f2   :  { %1143 = vrot.lane.b32.xlu0 %v1102_v34, %s2664_s30 }
 0x2f5   :  { %1145 = vrot.lane.b32.xlu1 %v1103_v21, %s2664_s30 }
 0x2f6   :  { %1147 = vrot.lane.b32.xlu0 %v1104_v7, %s2664_s30 }
 0x2f9   :  { %1149 = vrot.lane.b32.xlu1 %v1105_v46, %s2664_s30 }
 0x2fa   :  { %1151 = vrot.lane.b32.xlu0 %v1106_v59, %s2664_s30 }
 0x2fd   :  { %1153 = vrot.lane.b32.xlu1 %v1107_v14, %s2664_s30 }
 0x2fe   :  { %1155 = vrot.lane.b32.xlu0 %v1108_v10, %s2664_s30 }
 0x301   :  { %1298 = vrot.lane.b32.xlu1 %v1266_v38, %s2663_s29 }
 0x302   :  { %1302 = vrot.lane.b32.xlu0 %v1268_v39, %s2663_s29 }
 0x305   :  { %1306 = vrot.lane.b32.xlu1 %v1270_v57, %s2663_s29 }
 0x306   :  { %1310 = vrot.lane.b32.xlu0 %v1272_v52, %s2663_s29 }
 0x309   :  { %1314 = vrot.lane.b32.xlu1 %v1274_v4, %s2663_s29 }
 0x30a   :  { %1318 = vrot.lane.b32.xlu0 %v1276_v42, %s2663_s29 }
 0x30d   :  { %1300 = vrot.lane.b32.xlu1 %v1267_v28, %s2663_s29 }
 0x30e   :  { %1304 = vrot.lane.b32.xlu0 %v1269_v12, %s2663_s29 }
 0x311   :  { %1308 = vrot.lane.b32.xlu1 %v1271_v61, %s2663_s29 }
 0x312   :  { %1312 = vrot.lane.b32.xlu0 %v1273_v30, %s2663_s29 }
 0x315   :  { %1316 = vrot.lane.b32.xlu1 %v1275_v33, %s2663_s29 }
 0x316   :  { %1320 = vrot.lane.b32.xlu0 %v1277_v56, %s2663_s29 }
 0x319   :  { %1324 = vrot.lane.b32.xlu1 %v1279_v22, %s2663_s29 }
 0x31a   :  { %1328 = vrot.lane.b32.xlu0 %v1281_v9, %s2663_s29 }
 0x31d   :  { %1322 = vrot.lane.b32.xlu1 %v1278_v15, %s2663_s29 }
 0x31e   :  { %1326 = vrot.lane.b32.xlu0 %v1280_v47, %s2663_s29 }
 0x321   :  { %1452 = vperm.xlu1 %2443, %v1442_v63  }
 0x322   :  { %1457 = vperm.xlu0 %2444, %v1443_v17  }
 0x325   :  { %1462 = vperm.xlu1 %2443, %v1444_v20  }
 0x326   :  { %1472 = vperm.xlu0 %2444, %v1446_v25  }
 0x329   :  { %1467 = vperm.xlu1 %2443, %v1445_v40  }
 0x32a   :  { %1482 = vperm.xlu0 %2444, %v1448_v50  }
 0x32d   :  { %1477 = vperm.xlu1 %2443, %v1447_v19  }
 0x32e   :  { %2445 = vset.pattern.permute.xlu0 %v2670_v11 }
 0x32f   :  { %2154 = vperm.xlu0 %2445, %v1442_v63  }
 0x331   :  { %1487 = vperm.xlu1 %2443, %v1449_v44  }
 0x333   :  { %2166 = vperm.xlu0 %2445, %v1445_v40  }
 0x335   :  { %2446 = vset.pattern.permute.xlu1 %v2670_v11 }
 0x336   :  { %2158 = vperm.xlu1 %2446, %v1443_v17  }
 0x337   :  { %2174 = vperm.xlu0 %2445, %v1447_v19  }
 0x33a   :  { %2162 = vperm.xlu1 %2446, %v1444_v20  }
 0x33b   :  { %2182 = vperm.xlu0 %2445, %v1449_v44  }
 0x33e   :  { %2170 = vperm.xlu1 %2446, %v1446_v25  }
 0x342   :  { %2178 = vperm.xlu1 %2446, %v1448_v50  }
 0x353   :  { %v1126_v37 = vpop.permute.xlu1 %1125 }
 0x354   :  { %1181 = vst.msk [vmem:[#allocation3] sm:$0xff] %vm120_vm2, %v1126_v37  ;;  %v1128_v58 = vpop.permute.xlu0 %1127 }
 0x355   :  { %1197 = vst.msk [vmem:[#allocation3] sm:$0xff] %vm107_vm1, %v2665_v29  ;;  %v1157_v54 = vsel %vm107_vm1, %v1126_v37, %v1128_v58 }
 0x357   :  { %v1130_v60 = vpop.permute.xlu1 %1129 }
 0x358   :  { %1183 = vst.msk [vmem:[#allocation3 + $0x10] sm:$0xff] %vm120_vm2, %v1130_v60  ;;  %v1132_v32 = vpop.permute.xlu0 %1131 }
 0x359   :  { %1198 = vst.msk [vmem:[#allocation3 + $0x10] sm:$0xff] %vm107_vm1, %v2665_v29  ;;  %v1158_v8 = vsel %vm107_vm1, %v1130_v60, %v1132_v32 }
 0x35a   :  { %v2340_v23 = vpack.c.bf16 %v1158_v8, %v1157_v54 }
 0x35b   :  { %v1134_v0 = vpop.permute.xlu1 %1133 }
 0x35c   :  { %1185 = vst.msk [vmem:[#allocation3 + $0x20] sm:$0xff] %vm120_vm2, %v1134_v0  ;;  %v1136_v6 = vpop.permute.xlu0 %1135  ;;  %2341 = vmatprep.subr.bf16.mxu0 %v2340_v23  ;;  %2388 = vmatprep.subr.bf16.mxu1 %v2340_v23  ;;  %v1394_v41 = vld [vmem:[#allocation3] sm:$0xff] }
 0x35d   :  { %1199 = vst.msk [vmem:[#allocation3 + $0x20] sm:$0xff] %vm107_vm1, %v2665_v29  ;;  %v1159_v27 = vsel %vm107_vm1, %v1134_v0, %v1136_v6 }
 0x35f   :  { %v1138_v53 = vpop.permute.xlu1 %1137 }
 0x360   :  { %1187 = vst.msk [vmem:[#allocation3 + $0x30] sm:$0xff] %vm120_vm2, %v1138_v53  ;;  %v1140_v35 = vpop.permute.xlu0 %1139  ;;  %v1396_v26 = vld [vmem:[#allocation3 + $0x10] sm:$0xff] }
 0x361   :  { %1200 = vst.msk [vmem:[#allocation3 + $0x30] sm:$0xff] %vm107_vm1, %v2665_v29  ;;  %v1160_v34 = vsel %vm107_vm1, %v1138_v53, %v1140_v35  ;;  %v2342_v21 = vpack.c.bf16 %v1396_v26, %v1394_v41 }
 0x362   :  { %v2344_v7 = vpack.c.bf16 %v1160_v34, %v1159_v27 }
 0x363   :  { %v1142_v46 = vpop.permute.xlu1 %1141  ;;  %2343 = vmatpush1.bf16.msra.mxu0 %v2342_v21  ;;  %2400 = vmatpush1.bf16.msra.mxu1 %v2342_v21 }
 0x364   :  { %1189 = vst.msk [vmem:[#allocation3 + $0x40] sm:$0xff] %vm120_vm2, %v1142_v46  ;;  %v1144_v59 = vpop.permute.xlu0 %1143  ;;  %2345 = vmatprep.subr.bf16.mxu0 %v2344_v7  ;;  %2389 = vmatprep.subr.bf16.mxu1 %v2344_v7  ;;  %v1398_v16 = vld [vmem:[#allocation3 + $0x20] sm:$0xff] }
 0x365   :  { %1201 = vst.msk [vmem:[#allocation3 + $0x40] sm:$0xff] %vm107_vm1, %v2665_v29  ;;  %v1161_v14 = vsel %vm107_vm1, %v1142_v46, %v1144_v59 }
 0x367   :  { %v1146_v10 = vpop.permute.xlu1 %1145 }
 0x368   :  { %1191 = vst.msk [vmem:[#allocation3 + $0x50] sm:$0xff] %vm120_vm2, %v1146_v10  ;;  %v1148_v38 = vpop.permute.xlu0 %1147  ;;  %v1400_v39 = vld [vmem:[#allocation3 + $0x30] sm:$0xff] }
 0x369   :  { %1202 = vst.msk [vmem:[#allocation3 + $0x50] sm:$0xff] %vm107_vm1, %v2665_v29  ;;  %v1162_v57 = vsel %vm107_vm1, %v1146_v10, %v1148_v38  ;;  %v2346_v52 = vpack.c.bf16 %v1400_v39, %v1398_v16  ;;  %v1380_v16 = vld [vmem:[#allocation7 + $0x10] sm:$0xff]  ;;  %v1383_v10 = vld [vmem:[#allocation7 + $0x28] sm:$0xff]  ;;  %v1382_v38 = vld [vmem:[#allocation7 + $0x20] sm:$0xff] }
 0x36a   :  { %v2348_v13 = vpack.c.bf16 %v1162_v57, %v1161_v14  ;;  %v1378_v14 = vld [vmem:[#allocation7] sm:$0xff]  ;;  %v1385_v39 = vld [vmem:[#allocation7 + $0x38] sm:$0xff]  ;;  %v1384_v57 = vld [vmem:[#allocation7 + $0x30] sm:$0xff] }
 0x36b   :  { %v1150_v4 = vpop.permute.xlu1 %1149  ;;  %2347 = vmatpush1.bf16.msra.mxu0 %v2346_v52  ;;  %2401 = vmatpush1.bf16.msra.mxu1 %v2346_v52  ;;  %v1387_v52 = vld [vmem:[#allocation7 + $0x48] sm:$0xff] }
 0x36c   :  { %1193 = vst.msk [vmem:[#allocation3 + $0x60] sm:$0xff] %vm120_vm2, %v1150_v4  ;;  %v1152_v5 = vpop.permute.xlu0 %1151  ;;  %2349 = vmatprep.subr.bf16.mxu0 %v2348_v13  ;;  %2390 = vmatprep.subr.bf16.mxu1 %v2348_v13  ;;  %v1402_v28 = vld [vmem:[#allocation3 + $0x40] sm:$0xff] }
 0x36d   :  { %1203 = vst.msk [vmem:[#allocation3 + $0x60] sm:$0xff] %vm107_vm1, %v2665_v29  ;;  %v1163_v42 = vsel %vm107_vm1, %v1150_v4, %v1152_v5  ;;  %v1386_v13 = vld [vmem:[#allocation7 + $0x40] sm:$0xff]  ;;  %v1389_v4 = vld [vmem:[#allocation7 + $0x58] sm:$0xff]  ;;  %v1388_v5 = vld [vmem:[#allocation7 + $0x50] sm:$0xff] }
 0x36f   :  { %v1154_v12 = vpop.permute.xlu1 %1153 }
 0x370   :  { %1195 = vst.msk [vmem:[#allocation3 + $0x70] sm:$0xff] %vm120_vm2, %v1154_v12  ;;  %v1156_v61 = vpop.permute.xlu0 %1155  ;;  %v1404_v30 = vld [vmem:[#allocation3 + $0x50] sm:$0xff] }
 0x371   :  { %1204 = vst.msk [vmem:[#allocation3 + $0x70] sm:$0xff] %vm107_vm1, %v2665_v29  ;;  %v1164_v33 = vsel %vm107_vm1, %v1154_v12, %v1156_v61  ;;  %v2350_v56 = vpack.c.bf16 %v1404_v30, %v1402_v28  ;;  %v1390_v28 = vld [vmem:[#allocation7 + $0x60] sm:$0xff]  ;;  %v1393_v12 = vld [vmem:[#allocation7 + $0x78] sm:$0xff]  ;;  %v1392_v61 = vld [vmem:[#allocation7 + $0x70] sm:$0xff]  ;;  %v2671_v30 = vmov 5  }
 0x372   :  { %v2352_v22 = vpack.c.bf16 %v1164_v33, %v1163_v42  ;;  %v1391_v42 = vld [vmem:[#allocation7 + $0x68] sm:$0xff]  ;;  %2447 = vset.pattern.permute.xlu1 %v2671_v30  ;;  %v2227_v33 = vld [vmem:[%s4142_s4] sm:$0x1] }
 0x373   :  { %v1299_v9 = vpop.permute.xlu1 %1298  ;;  %2351 = vmatpush1.bf16.msra.mxu0 %v2350_v56  ;;  %2402 = vmatpush1.bf16.msra.mxu1 %v2350_v56  ;;  %v2672_v56 = vmov 6  }
 0x374   :  { %v1303_v15 = vpop.permute.xlu0 %1302  ;;  %2353 = vmatprep.subr.bf16.mxu0 %v2352_v22  ;;  %2391 = vmatprep.subr.bf16.mxu1 %v2352_v22  ;;  %v1406_v51 = vld [vmem:[#allocation3 + $0x60] sm:$0xff] }
 0x375   :  { %2230 = vperm.xlu1 %2447, %v2227_v33   ;;  %2448 = vset.pattern.permute.xlu0 %v2672_v56 }
 0x376   :  { %2249 = vperm.xlu0 %2448, %v2227_v33  }
 0x377   :  { %v1307_v55 = vpop.permute.xlu1 %1306 }
 0x378   :  { %v1311_v47 = vpop.permute.xlu0 %1310  ;;  %v1408_v63 = vld [vmem:[#allocation3 + $0x70] sm:$0xff] }
 0x379   :  { %v2354_v17 = vpack.c.bf16 %v1408_v63, %v1406_v51 }
 0x37b   :  { %v1315_v24 = vpop.permute.xlu1 %1314  ;;  %2355 = vmatpush1.bf16.msra.mxu0 %v2354_v17  ;;  %2403 = vmatpush1.bf16.msra.mxu1 %v2354_v17 }
 0x37c   :  { %v1319_v20 = vpop.permute.xlu0 %1318  ;;  %2357 = vmatprep.subr.bf16.mxu0 %v3495_v31  ;;  %2392 = vmatprep.subr.bf16.mxu1 %v3495_v31 }
 0x37f   :  { %v1301_v25 = vpop.permute.xlu1 %1300  ;;  %2359 = vmatpush1.bf16.msra.mxu0 %v3497_v49  ;;  %2404 = vmatpush1.bf16.msra.mxu1 %v3497_v49 }
 0x380   :  { %v1330_v40 = vsel %vm71_vm0, %v1299_v9, %v1301_v25  ;;  %1355 = vst.msk [vmem:[#allocation3 + $0x108] sm:$0xff] %vm71_vm0, %v1301_v25  ;;  %v1305_v50 = vpop.permute.xlu0 %1304  ;;  %2361 = vmatprep.subr.bf16.mxu0 %v3499_v48  ;;  %2393 = vmatprep.subr.bf16.mxu1 %v3499_v48 }
 0x381   :  { %1370 = vst.msk [vmem:[#allocation3 + $0x108] sm:$0xff] %vm232_vm3, %v2665_v29  ;;  %v1331_v19 = vsel %vm71_vm0, %v1303_v15, %v1305_v50 }
 0x382   :  { %1357 = vst.msk [vmem:[#allocation3 + $0x118] sm:$0xff] %vm71_vm0, %v1305_v50  ;;  %v2374_v8 = vpack.c.bf16 %v1331_v19, %v1330_v40 }
 0x383   :  { %1371 = vst.msk [vmem:[#allocation3 + $0x118] sm:$0xff] %vm232_vm3, %v2665_v29  ;;  %v1309_v31 = vpop.permute.xlu1 %1308  ;;  %2363 = vmatpush1.bf16.msra.mxu0 %v3501_v45  ;;  %2405 = vmatpush1.bf16.msra.mxu1 %v3501_v45 }
 0x384   :  { %v1332_v49 = vsel %vm71_vm0, %v1307_v55, %v1309_v31  ;;  %1359 = vst.msk [vmem:[#allocation3 + $0x128] sm:$0xff] %vm71_vm0, %v1309_v31  ;;  %v1313_v48 = vpop.permute.xlu0 %1312  ;;  %2365 = vmatprep.subr.bf16.mxu0 %v3503_v43  ;;  %2394 = vmatprep.subr.bf16.mxu1 %v3503_v43 }
 0x385   :  { %1372 = vst.msk [vmem:[#allocation3 + $0x128] sm:$0xff] %vm232_vm3, %v2665_v29  ;;  %v1333_v11 = vsel %vm71_vm0, %v1311_v47, %v1313_v48 }
 0x386   :  { %1361 = vst.msk [vmem:[#allocation3 + $0x138] sm:$0xff] %vm71_vm0, %v1313_v48  ;;  %v2378_v35 = vpack.c.bf16 %v1333_v11, %v1332_v49 }
 0x387   :  { %1373 = vst.msk [vmem:[#allocation3 + $0x138] sm:$0xff] %vm232_vm3, %v2665_v29  ;;  %v1317_v45 = vpop.permute.xlu1 %1316  ;;  %2367 = vmatpush1.bf16.msra.mxu0 %v3505_v18  ;;  %2406 = vmatpush1.bf16.msra.mxu1 %v3505_v18 }
 0x388   :  { %v1334_v44 = vsel %vm71_vm0, %v1315_v24, %v1317_v45  ;;  %1363 = vst.msk [vmem:[#allocation3 + $0x148] sm:$0xff] %vm71_vm0, %v1317_v45  ;;  %v1321_v43 = vpop.permute.xlu0 %1320  ;;  %2369 = vmatprep.subr.bf16.mxu0 %v3507_v62  ;;  %2395 = vmatprep.subr.bf16.mxu1 %v3507_v62  ;;  %v1427_v37 = vld [vmem:[#allocation3 + $0x108] sm:$0xff] }
 0x389   :  { %1374 = vst.msk [vmem:[#allocation3 + $0x148] sm:$0xff] %vm232_vm3, %v2665_v29  ;;  %v1335_v58 = vsel %vm71_vm0, %v1319_v20, %v1321_v43 }
 0x38a   :  { %1365 = vst.msk [vmem:[#allocation3 + $0x158] sm:$0xff] %vm71_vm0, %v1321_v43  ;;  %v1429_v54 = vld [vmem:[#allocation3 + $0x118] sm:$0xff]  ;;  %v2382_v21 = vpack.c.bf16 %v1335_v58, %v1334_v44 }
 0x38b   :  { %1375 = vst.msk [vmem:[#allocation3 + $0x158] sm:$0xff] %vm232_vm3, %v2665_v29  ;;  %v2372_v18 = vpack.c.bf16 %v1429_v54, %v1427_v37  ;;  %v1325_v60 = vpop.permute.xlu1 %1324  ;;  %2371 = vmatpush1.bf16.msra.mxu0 %v3509_v36  ;;  %2407 = vmatpush1.bf16.msra.mxu1 %v3509_v36 }
 0x38c   :  { %1367 = vst.msk [vmem:[#allocation3 + $0x168] sm:$0xff] %vm71_vm0, %v1325_v60  ;;  %v1329_v62 = vpop.permute.xlu0 %1328  ;;  %v1431_v32 = vld [vmem:[#allocation3 + $0x128] sm:$0xff] }
 0x38d   :  { %2373 = vmatprep.subr.bf16.mxu0 %v2372_v18  ;;  %2396 = vmatprep.subr.bf16.mxu1 %v2372_v18  ;;  %1376 = vst.msk [vmem:[#allocation3 + $0x168] sm:$0xff] %vm232_vm3, %v2665_v29 }
 0x38e   :  { %1369 = vst.msk [vmem:[#allocation3 + $0x178] sm:$0xff] %vm71_vm0, %v1329_v62  ;;  %v1433_v23 = vld [vmem:[#allocation3 + $0x138] sm:$0xff] }
 0x38f   :  { %1377 = vst.msk [vmem:[#allocation3 + $0x178] sm:$0xff] %vm232_vm3, %v2665_v29  ;;  %v2376_v0 = vpack.c.bf16 %v1433_v23, %v1431_v32  ;;  %v1323_v6 = vpop.permute.xlu1 %1322  ;;  %2375 = vmatpush1.bf16.msra.mxu0 %v2374_v8  ;;  %2408 = vmatpush1.bf16.msra.mxu1 %v2374_v8 }
 0x390   :  { %v1336_v36 = vsel %vm71_vm0, %v1323_v6, %v1325_v60  ;;  %v1327_v27 = vpop.permute.xlu0 %1326  ;;  %v1435_v41 = vld [vmem:[#allocation3 + $0x148] sm:$0xff] }
 0x391   :  { %2377 = vmatprep.subr.bf16.mxu0 %v2376_v0  ;;  %2397 = vmatprep.subr.bf16.mxu1 %v2376_v0  ;;  %v1337_v53 = vsel %vm71_vm0, %v1327_v27, %v1329_v62 }
 0x392   :  { %v1437_v26 = vld [vmem:[#allocation3 + $0x158] sm:$0xff]  ;;  %v2386_v59 = vpack.c.bf16 %v1337_v53, %v1336_v36 }
 0x393   :  { %v2380_v34 = vpack.c.bf16 %v1437_v26, %v1435_v41  ;;  %2379 = vmatpush1.bf16.msra.mxu0 %v2378_v35  ;;  %2409 = vmatpush1.bf16.msra.mxu1 %v2378_v35 }
 0x394   :  { %v1439_v29 = vld [vmem:[#allocation3 + $0x168] sm:$0xff] }
 0x395   :  { %2381 = vmatprep.subr.bf16.mxu0 %v2380_v34  ;;  %2398 = vmatprep.subr.bf16.mxu1 %v2380_v34 }
 0x396   :  { %v1441_v7 = vld [vmem:[#allocation3 + $0x178] sm:$0xff] }
 0x397   :  { %v2384_v46 = vpack.c.bf16 %v1441_v7, %v1439_v29  ;;  %2383 = vmatpush1.bf16.msra.mxu0 %v2382_v21  ;;  %2410 = vmatpush1.bf16.msra.mxu1 %v2382_v21 }
 0x399   :  { %2385 = vmatprep.subr.bf16.mxu0 %v2384_v46  ;;  %2399 = vmatprep.subr.bf16.mxu1 %v2384_v46 }
 0x39b   :  { %2387 = vmatpush1.bf16.msra.mxu0 %v2386_v59  ;;  %2411 = vmatpush1.bf16.msra.mxu1 %v2386_v59 }
 0x39e   :  { %1580 = vmatmul.mubr.f32.vlgmr.msra.gmra.mrb[16].mxu0 %v1378_v14  ;;  %1586 = vmatmul.mubr.f32.vlgmr.msra.gmra.mrb[0].mxu1 %v1380_v16 }
 0x39f   :  { %2309 = vmatprep.mubr.msk.f32.mxu1 %vm1490_vm9, %v1383_v10 }
 0x3a0   :  { %v1453_v9 = vpop.permute.xlu1 %1452 }
 0x3a1   :  { %v1458_v22 = vpop.permute.xlu0 %1457 }
 0x3a2   :  { %1592 = vmatmul.mubr.f32.gmra.mrb[2].mxu1 %v1382_v38 }
 0x3a3   :  { %2310 = vmatprep.mubr.msk.f32.mxu1 %vm1490_vm9, %v1385_v39 }
 0x3a4   :  { %v1463_v48 = vpop.permute.xlu1 %1462 }
 0x3a6   :  { %1598 = vmatmul.mubr.f32.gmra.mrb[4].mxu1 %v1384_v57 }
 0x3a7   :  { %2311 = vmatprep.mubr.msk.f32.mxu1 %vm1490_vm9, %v1387_v52 }
 0x3a8   :  { %v1468_v34 = vpop.permute.xlu1 %1467 }
 0x3aa   :  { %1604 = vmatmul.mubr.f32.gmra.mrb[6].mxu1 %v1386_v13 }
 0x3ab   :  { %2312 = vmatprep.mubr.msk.f32.mxu1 %vm1490_vm9, %v1389_v4 }
 0x3ae   :  { %1610 = vmatmul.mubr.f32.gmra.mrb[8].mxu1 %v1388_v5 }
 0x3af   :  { %2313 = vmatprep.mubr.msk.f32.mxu1 %vm1490_vm9, %v1391_v42 }
 0x3b2   :  { %1616 = vmatmul.mubr.f32.gmra.mrb[10].mxu1 %v1390_v28 }
 0x3b3   :  { %2314 = vmatprep.mubr.msk.f32.mxu1 %vm1490_vm9, %v1393_v12 }
 0x3b6   :  { %1622 = vmatmul.mubr.f32.gmra.mrb[12].mxu1 %v1392_v61 }
 0x471   :  { %v1581_v15 = vpop.f32.mrb[16].mxu0  ;;  %v1587_v51 = vpop.f32.mrb[0].mxu1 }
 0x472   :  { %v1582_v55 = vadd.f32 %v1581_v15, %v1453_v9  ;;  %v1588_v47 = vadd.f32 %v1587_v51, %v1458_v22  ;;  %v1583_v63 = vpop.f32.mrb[17].mxu0  ;;  %v1589_v17 = vpop.f32.mrb[1].mxu1 }
 0x473   :  { %v3685_v24 = vadd.f32 %v1583_v63, %v1453_v9  ;;  %v3687_v20 = vadd.f32 %v1589_v17, %v1458_v22 }
 0x474   :  { %v3689_v25 = vmul.f32 0.70710677, %v1582_v55  ;;  %v3691_v40 = vmul.f32 0.70710677, %v1588_v47  ;;  %v3712_v10 = vmul.f32 0.5, %v1582_v55  ;;  %v3722_v5 = vmul.f32 0.5, %v1588_v47 }
 0x475   :  { %v3694_v50 = vmul.f32 0.70710677, %v3685_v24  ;;  %v3697_v19 = vmul.f32 0.70710677, %v3687_v20  ;;  %v1593_v0 = vpop.f32.mrb[2].mxu1 }
 0x476   :  { %v1660_v31 = vand.u32 2147483647, %v3689_v25  ;;  %v1662_v49 = vand.u32 2147483647, %v3691_v40  ;;  %v1595_v36 = vpop.f32.mrb[3].mxu1  ;;  %v3703_v53 = vadd.f32 %v1593_v0, %v1463_v48  ;;  %vm1964_vm0 = vcmp.ge.f32.partialorder %v3689_v25, 0.0 }
 0x477   :  { %v1661_v11 = vand.u32 2147483647, %v3694_v50  ;;  %v1663_v45 = vand.u32 2147483647, %v3697_v19  ;;  %v3705_v29 = vadd.f32 %v1595_v36, %v1463_v48  ;;  %vm1966_vm1 = vcmp.ge.f32.partialorder %v3691_v40, 0.0 }
 0x478   :  { %v1676_v44 = vmul.f32 0.3275911, %v1660_v31  ;;  %v1868_v43 = vsub.f32 0.0, %v1660_v31  ;;  %v1678_v37 = vmul.f32 0.3275911, %v1662_v49  ;;  %v1870_v58 = vsub.f32 0.0, %v1662_v49 }
 0x479   :  { %v1677_v54 = vmul.f32 0.3275911, %v1661_v11  ;;  %v1869_v18 = vsub.f32 0.0, %v1661_v11  ;;  %v1679_v60 = vmul.f32 0.3275911, %v1663_v45  ;;  %v1871_v23 = vsub.f32 0.0, %v1663_v45 }
 0x47a   :  { %v1692_v62 = vadd.f32 1.0, %v1676_v44  ;;  %v1884_v32 = vmul.f32 %v1868_v43, %v1660_v31  ;;  %v1694_v8 = vadd.f32 1.0, %v1678_v37  ;;  %v1886_v6 = vmul.f32 %v1870_v58, %v1662_v49  ;;  %v1599_v35 = vpop.f32.mrb[4].mxu1 }
 0x47b   :  { %v1693_v27 = vadd.f32 1.0, %v1677_v54  ;;  %v1885_v41 = vmul.f32 %v1869_v18, %v1661_v11  ;;  %v1601_v21 = vpop.f32.mrb[5].mxu1  ;;  %v1695_v7 = vadd.f32 1.0, %v1679_v60  ;;  %v1887_v46 = vmul.f32 %v1871_v23, %v1663_v45  ;;  %v1473_v23 = vpop.permute.xlu0 %1472 }
 0x47c   :  { %2517 = vrcp.f32 %v1692_v62  ;;  %v1900_v26 = vmul.f32 1.442695, %v1884_v32  ;;  %v3708_v59 = vmul.f32 0.70710677, %v3703_v53  ;;  %v3710_v14 = vadd.f32 %v1599_v35, %v1468_v34 }
 0x47d   :  { %2519 = vrcp.f32 %v1694_v8  ;;  %v1605_v16 = vpop.f32.mrb[6].mxu1  ;;  %v1904_v38 = vmul.f32 1.442695, %v1886_v6  ;;  %v3715_v39 = vmul.f32 0.70710677, %v3705_v29  ;;  %v3720_v4 = vadd.f32 %v1601_v21, %v1468_v34 }
 0x47e   :  { %v3717_v57 = vpop.f32.mrb[7].mxu1  ;;  %2521 = vrcp.f32 %v1693_v27  ;;  %v1902_v52 = vmul.f32 1.442695, %v1885_v41  ;;  %v1664_v13 = vand.u32 2147483647, %v3708_v59  ;;  %v3741_v45 = vmul.f32 0.5, %v3685_v24 }
 0x47f   :  { %2523 = vpow2.f32 %v1900_v26  ;;  %v1665_v42 = vand.u32 2147483647, %v3715_v39  ;;  %v3726_v28 = vmul.f32 0.70710677, %v3710_v14  ;;  %v1906_v61 = vmul.f32 1.442695, %v1887_v46 }
 0x480   :  { %2525 = vrcp.f32 %v1695_v7  ;;  %v1680_v30 = vmul.f32 0.3275911, %v1664_v13  ;;  %v1872_v33 = vsub.f32 0.0, %v1664_v13  ;;  %v3734_v47 = vmul.f32 0.70710677, %v3720_v4 }
 0x481   :  { %v3728_v12 = vpop.f32.mrb[8].mxu1  ;;  %2527 = vpow2.f32 %v1904_v38  ;;  %v1681_v22 = vmul.f32 0.3275911, %v1665_v42  ;;  %v1873_v9 = vsub.f32 0.0, %v1665_v42  ;;  %v1666_v15 = vand.u32 2147483647, %v3726_v28 }
 0x482   :  { %v3730_v56 = vpop.f32.mrb[9].mxu1  ;;  %2529 = vpow2.f32 %v1902_v52  ;;  %v1696_v51 = vadd.f32 1.0, %v1680_v30  ;;  %v1888_v55 = vmul.f32 %v1872_v33, %v1664_v13  ;;  %v3744_v44 = vmul.f32 0.5, %v3687_v20 }
 0x483   :  { %v1697_v63 = vadd.f32 1.0, %v1681_v22  ;;  %v1889_v17 = vmul.f32 %v1873_v9, %v1665_v42  ;;  %v1682_v31 = vmul.f32 0.3275911, %v1666_v15  ;;  %v1874_v49 = vsub.f32 0.0, %v1666_v15 }
 0x484   :  { %2531 = vrcp.f32 %v1696_v51  ;;  %v1667_v43 = vand.u32 2147483647, %v3734_v47  ;;  %v1908_v18 = vmul.f32 1.442695, %v1888_v55  ;;  %v3753_v6 = vadd.f32 %v1605_v16, %v1473_v23 }
 0x485   :  { %v3736_v48 = vpop.f32.mrb[10].mxu1  ;;  %2533 = vrcp.f32 %v1697_v63  ;;  %v1698_v60 = vadd.f32 1.0, %v1682_v31  ;;  %v1910_v32 = vmul.f32 1.442695, %v1889_v17  ;;  %v1890_v24 = vmul.f32 %v1874_v49, %v1666_v15 }
 0x486   :  { %v3738_v11 = vpop.eup %2517  ;;  %v3747_v37 = vpop.f32.mrb[11].mxu1  ;;  %v1683_v8 = vmul.f32 0.3275911, %v1667_v43  ;;  %2535 = vpow2.f32 %v1906_v61  ;;  %v1875_v0 = vsub.f32 0.0, %v1667_v43  ;;  %v3766_v38 = vmul.f32 0.5, %v3703_v53 }
 0x487   :  { %v3749_v58 = vpop.eup %2519  ;;  %v1724_v54 = vmul.f32 1.0614054, %v3738_v11  ;;  %2537 = vrcp.f32 %v1698_v60  ;;  %v1912_v35 = vmul.f32 1.442695, %v1890_v24  ;;  %v3772_v42 = vmul.f32 0.70710677, %v3753_v6 }
 0x488   :  { %v1726_v62 = vmul.f32 1.0614054, %v3749_v58  ;;  %v3757_v27 = vpop.eup %2521  ;;  %v1699_v26 = vadd.f32 1.0, %v1683_v8  ;;  %2539 = vpow2.f32 %v1908_v18  ;;  %v1891_v13 = vmul.f32 %v1875_v0, %v1667_v43 }
 0x489   :  { %v1740_v20 = vadd.f32 -1.4531521, %v1724_v54  ;;  %v3755_v36 = vpop.f32.mrb[12].mxu1  ;;  %v3761_v21 = vpop.eup %2523  ;;  %v1725_v46 = vmul.f32 1.0614054, %v3757_v27  ;;  %2541 = vpow2.f32 %v1910_v32  ;;  %v3780_v15 = vmul.f32 0.5, %v3705_v29 }
 0x48a   :  { %v1742_v41 = vadd.f32 -1.4531521, %v1726_v62  ;;  %v3759_v34 = vpop.f32.mrb[13].mxu1  ;;  %v3768_v16 = vpop.eup %2525  ;;  %2543 = vrcp.f32 %v1699_v26  ;;  %v1668_v51 = vand.u32 2147483647, %v3772_v42  ;;  %v3786_v31 = vadd.f32 %v3717_v57, %v1473_v23 }
 0x48b   :  { %v1756_v7 = vmul.f32 %v3738_v11, %v1740_v20  ;;  %v3774_v61 = vpop.eup %2527  ;;  %v1741_v33 = vadd.f32 -1.4531521, %v1725_v46  ;;  %v1727_v22 = vmul.f32 1.0614054, %v3768_v16  ;;  %2545 = vpow2.f32 %v1912_v35  ;;  %v3795_v20 = vpop.permute.xlu1 %1477 }
 0x48c   :  { %v1758_v52 = vmul.f32 %v3749_v58, %v1742_v41  ;;  %v3777_v9 = vpop.eup %2529  ;;  %v1914_v54 = vmul.f32 1.442695, %v1891_v13  ;;  %v1684_v18 = vmul.f32 0.3275911, %v1668_v51  ;;  %v1876_v60 = vsub.f32 0.0, %v1668_v51 }
 0x48d   :  { %v1772_v30 = vadd.f32 1.4214138, %v1756_v7  ;;  %v1757_v63 = vmul.f32 %v3757_v27, %v1741_v33  ;;  %v1743_v17 = vadd.f32 -1.4531521, %v1727_v22  ;;  %v3800_v41 = vadd.f32 %v3728_v12, %v3795_v20 }
 0x48e   :  { %v1774_v53 = vadd.f32 1.4214138, %v1758_v52  ;;  %v3788_v49 = vpop.eup %2531  ;;  %v1700_v23 = vadd.f32 1.0, %v1684_v18  ;;  %2547 = vpow2.f32 %v1914_v54  ;;  %v3807_v22 = vmul.f32 %v1876_v60, %v1668_v51 }
 0x48f   :  { %v1788_v55 = vmul.f32 %v3738_v11, %v1772_v30  ;;  %v3791_v29 = vpop.eup %2533  ;;  %v1773_v32 = vadd.f32 1.4214138, %v1757_v63  ;;  %v1759_v24 = vmul.f32 %v3768_v16, %v1743_v17  ;;  %v1728_v8 = vmul.f32 1.0614054, %v3788_v49 }
 0x490   :  { %v1790_v43 = vmul.f32 %v3749_v58, %v1774_v53  ;;  %v1729_v57 = vmul.f32 1.0614054, %v3791_v29  ;;  %v2536_v35 = vpop.eup %2535  ;;  %2549 = vrcp.f32 %v1700_v23  ;;  %vm1965_vm2 = vcmp.ge.f32.partialorder %v3694_v50, 0.0 }
 0x491   :  { %v1804_v62 = vadd.f32 -0.28449672, %v1788_v55  ;;  %v1789_v7 = vmul.f32 %v3757_v27, %v1773_v32  ;;  %v1775_v46 = vadd.f32 1.4214138, %v1759_v24  ;;  %v1744_v52 = vadd.f32 -1.4531521, %v1728_v8  ;;  %v3804_v13 = vpop.eup %2537 }
 0x492   :  { %v1806_v0 = vadd.f32 -0.28449672, %v1790_v43  ;;  %v1745_v33 = vadd.f32 -1.4531521, %v1729_v57  ;;  %v3809_v53 = vpop.eup %2539  ;;  %v1730_v32 = vmul.f32 1.0614054, %v3804_v13 }
 0x493   :  { %v1820_v26 = vmul.f32 %v3738_v11, %v1804_v62  ;;  %v1805_v12 = vadd.f32 -0.28449672, %v1789_v7  ;;  %v1791_v63 = vmul.f32 %v3768_v16, %v1775_v46  ;;  %v1760_v17 = vmul.f32 %v3788_v49, %v1744_v52  ;;  %v3813_v43 = vpop.eup %2541 }
 0x494   :  { %v1822_v30 = vmul.f32 %v3749_v58, %v1806_v0  ;;  %v1761_v62 = vmul.f32 %v3791_v29, %v1745_v33  ;;  %v3818_v51 = vpop.eup %2543  ;;  %v1746_v7 = vadd.f32 -1.4531521, %v1730_v32  ;;  %vm1967_vm3 = vcmp.ge.f32.partialorder %v3697_v19, 0.0 }
 0x495   :  { %v1836_v55 = vadd.f32 0.2548296, %v1820_v26  ;;  %v1821_v60 = vmul.f32 %v3757_v27, %v1805_v12  ;;  %v1807_v24 = vadd.f32 -0.28449672, %v1791_v63  ;;  %v1776_v8 = vadd.f32 1.4214138, %v1760_v17  ;;  %v3823_v0 = vpop.eup %2545 }
 0x496   :  { %v1838_v18 = vadd.f32 0.2548296, %v1822_v30  ;;  %v1777_v26 = vadd.f32 1.4214138, %v1761_v62  ;;  %v1731_v46 = vmul.f32 1.0614054, %v3818_v51  ;;  %v1762_v12 = vmul.f32 %v3804_v13, %v1746_v7 }
 0x497   :  { %v1852_v54 = vmul.f32 %v3738_v11, %v1836_v55  ;;  %v1837_v52 = vadd.f32 0.2548296, %v1821_v60  ;;  %v1823_v30 = vmul.f32 %v3768_v16, %v1807_v24  ;;  %v1792_v11 = vmul.f32 %v3788_v49, %v1776_v8 }
 0x498   :  { %v1854_v57 = vmul.f32 %v3749_v58, %v1838_v18  ;;  %v1793_v55 = vmul.f32 %v3791_v29, %v1777_v26  ;;  %v1747_v58 = vadd.f32 -1.4531521, %v1731_v46  ;;  %v3840_v26 = vpop.eup %2547  ;;  %vm1968_vm10 = vcmp.ge.f32.partialorder %v3708_v59, 0.0 }
 0x499   :  { %v1932_v23 = vmul.f32 %v3761_v21, %v1852_v54  ;;  %v1853_v17 = vmul.f32 %v3757_v27, %v1837_v52  ;;  %v1839_v18 = vadd.f32 0.2548296, %v1823_v30  ;;  %v1808_v62 = vadd.f32 -0.28449672, %v1792_v11 }
 0x49a   :  { %v1934_v33 = vmul.f32 %v3774_v61, %v1854_v57  ;;  %v1809_v32 = vadd.f32 -0.28449672, %v1793_v55  ;;  %v1778_v54 = vadd.f32 1.4214138, %v1762_v12  ;;  %v1763_v60 = vmul.f32 %v3818_v51, %v1747_v58  ;;  %v3846_v55 = vpop.eup %2549 }
 0x49b   :  { %v1948_v63 = vsub.f32 1.0, %v1932_v23  ;;  %v1933_v24 = vmul.f32 %v3777_v9, %v1853_v17  ;;  %v1855_v8 = vmul.f32 %v3768_v16, %v1839_v18  ;;  %v1824_v57 = vmul.f32 %v3788_v49, %v1808_v62 }
 0x49c   :  { %v1950_v21 = vsub.f32 1.0, %v1934_v33  ;;  %v1825_v27 = vmul.f32 %v3791_v29, %v1809_v32  ;;  %v1794_v46 = vmul.f32 %v3804_v13, %v1778_v54  ;;  %v1779_v23 = vadd.f32 1.4214138, %v1763_v60 }
 0x49d   :  { %v1980_v61 = vsub.f32 0.0, %v1948_v63  ;;  %v1949_v30 = vsub.f32 1.0, %v1933_v24  ;;  %v1935_v11 = vmul.f32 %v2536_v35, %v1855_v8  ;;  %v1840_v33 = vadd.f32 0.2548296, %v1824_v57 }
 0x49e   :  { %v1982_v7 = vsub.f32 0.0, %v1950_v21  ;;  %v1841_v12 = vadd.f32 0.2548296, %v1825_v27  ;;  %v1810_v58 = vadd.f32 -0.28449672, %v1794_v46  ;;  %vm1969_vm11 = vcmp.ge.f32.partialorder %v3715_v39, 0.0 }
 0x49f   :  { %v1996_v52 = vsel %vm1964_vm0, %v1948_v63, %v1980_v61  ;;  %v1981_v18 = vsub.f32 0.0, %v1949_v30  ;;  %v1951_v62 = vsub.f32 1.0, %v1935_v11  ;;  %v1856_v32 = vmul.f32 %v3788_v49, %v1840_v33 }
 0x4a0   :  { %v2012_v9 = vadd.f32 1.0, %v1996_v52  ;;  %v1998_v16 = vsel %vm1966_vm1, %v1950_v21, %v1982_v7  ;;  %v1857_v35 = vmul.f32 %v3791_v29, %v1841_v12  ;;  %v1826_v63 = vmul.f32 %v3804_v13, %v1810_v58 }
 0x4a1   :  { %v2014_v17 = vadd.f32 1.0, %v1998_v16  ;;  %v1795_v40 = vmul.f32 %v3818_v51, %v1779_v23  ;;  %v1997_v54 = vsel %vm1965_vm2, %v1949_v30, %v1981_v18  ;;  %v1983_v60 = vsub.f32 0.0, %v1951_v62 }
 0x4a2   :  { %v3854_v25 = vmul.f32 %v2012_v9, %v3712_v10  ;;  %v1936_v49 = vmul.f32 %v3809_v53, %v1856_v32  ;;  %v2013_v61 = vadd.f32 1.0, %v1997_v54  ;;  %v1937_v24 = vmul.f32 %v3813_v43, %v1857_v35 }
 0x4a3   :  { %v3860_v21 = vmul.f32 %v2014_v17, %v3722_v5  ;;  %v1842_v10 = vadd.f32 0.2548296, %v1826_v63  ;;  %v1811_v8 = vadd.f32 -0.28449672, %v1795_v40  ;;  %v1999_v57 = vsel %vm1967_vm3, %v1951_v62, %v1983_v60 }
 0x4a4   :  { %v1952_v7 = vsub.f32 1.0, %v1936_v49  ;;  %v1732_v5 = vmul.f32 1.0614054, %v3846_v55  ;;  %v3872_v50 = vmul.f32 %v2013_v61, %v3741_v45  ;;  %v2015_v27 = vadd.f32 1.0, %v1999_v57 }
 0x4a5   :  { %v2044_v29 = vadd.f32 %v3860_v21, %v3854_v25  ;;  %v1953_v46 = vsub.f32 1.0, %v1937_v24  ;;  %v1858_v53 = vmul.f32 %v3804_v13, %v1842_v10  ;;  %v1827_v43 = vmul.f32 %v3818_v51, %v1811_v8 }
 0x4a6   :  { %v1984_v23 = vsub.f32 0.0, %v1952_v7  ;;  %v1748_v52 = vadd.f32 -1.4531521, %v1732_v5  ;;  %v1916_v30 = vmul.f32 1.442695, %v3807_v22  ;;  %v3878_v11 = vmul.f32 %v2015_v27, %v3744_v44 }
 0x4a7   :  { %v1985_v19 = vsub.f32 0.0, %v1953_v46  ;;  %v1938_v33 = vmul.f32 %v3823_v0, %v1858_v53  ;;  %v3882_v9 = vmul.f32 0.70710677, %v3786_v31  ;;  %vm1970_vm12 = vcmp.ge.f32.partialorder %v3726_v28, 0.0 }
 0x4a8   :  { %v2000_v45 = vsel %vm1968_vm10, %v1952_v7, %v1984_v23  ;;  %v1843_v13 = vadd.f32 0.2548296, %v1827_v43  ;;  %v1764_v16 = vmul.f32 %v3846_v55, %v1748_v52  ;;  %v2057_v22 = vadd.f32 %v3878_v11, %v3872_v50 }
 0x4a9   :  { %v2016_v12 = vadd.f32 1.0, %v2000_v45  ;;  %v2001_v44 = vsel %vm1969_vm11, %v1953_v46, %v1985_v19  ;;  %v1954_v58 = vsub.f32 1.0, %v1938_v33  ;;  %v1669_v59 = vand.u32 2147483647, %v3882_v9  ;;  %v1483_v46 = vpop.permute.xlu0 %1482 }
 0x4aa   :  { %v2017_v0 = vadd.f32 1.0, %v2001_v44  ;;  %v1859_v17 = vmul.f32 %v3818_v51, %v1843_v13  ;;  %v1780_v18 = vadd.f32 1.4214138, %v1764_v16  ;;  %2551 = vpow2.f32 %v1916_v30 }
 0x4ab   :  { %v3895_v62 = vmul.f32 %v2016_v12, %v3766_v38  ;;  %v1986_v32 = vsub.f32 0.0, %v1954_v58  ;;  %v3898_v35 = vmul.f32 0.70710677, %v3800_v41  ;;  %v1685_v54 = vmul.f32 0.3275911, %v1669_v59 }
 0x4ac   :  { %v3901_v63 = vmul.f32 %v2017_v0, %v3780_v15  ;;  %v1939_v39 = vmul.f32 %v3840_v26, %v1859_v17  ;;  %v1796_v40 = vmul.f32 %v3846_v55, %v1780_v18  ;;  %v1634_v60 = vmul.f32 0.5, %v3710_v14 }
 0x4ad   :  { %v2045_v51 = vadd.f32 %v2044_v29, %v3895_v62  ;;  %v2002_v38 = vsel %vm1970_vm12, %v1954_v58, %v1986_v32  ;;  %v1670_v49 = vand.u32 2147483647, %v3898_v35  ;;  %v1701_v8 = vadd.f32 1.0, %v1685_v54 }
 0x4ae   :  { %v2058_v61 = vadd.f32 %v2057_v22, %v3901_v63  ;;  %v2018_v24 = vadd.f32 1.0, %v2002_v38  ;;  %v1955_v10 = vsub.f32 1.0, %v1939_v39  ;;  %v1812_v15 = vadd.f32 -0.28449672, %v1796_v40 }
 0x4af   :  { %v1686_v57 = vmul.f32 0.3275911, %v1670_v49  ;;  %vm1971_vm13 = vcmp.ge.f32.partialorder %v3734_v47, 0.0  ;;  %2553 = vrcp.f32 %v1701_v8  ;;  %v3918_v53 = vadd.f32 %v3730_v56, %v3795_v20  ;;  %v1488_v56 = vpop.permute.xlu1 %1487 }
 0x4b0   :  { %v3911_v26 = vmul.f32 %v2018_v24, %v1634_v60  ;;  %v1987_v7 = vsub.f32 0.0, %v1955_v10  ;;  %v1828_v5 = vmul.f32 %v3846_v55, %v1812_v15  ;;  %v1635_v23 = vmul.f32 0.5, %v3720_v4 }
 0x4b1   :  { %v1702_v14 = vadd.f32 1.0, %v1686_v57  ;;  %v3922_v52 = vadd.f32 %v3736_v48, %v1483_v46  ;;  %v3926_v47 = vmul.f32 0.70710677, %v3918_v53  ;;  %v3935_v13 = vadd.f32 %v3747_v37, %v1483_v46 }
 0x4b2   :  { %v2046_v28 = vadd.f32 %v2045_v51, %v3911_v26  ;;  %v2003_v29 = vsel %vm1971_vm13, %v1955_v10, %v1987_v7  ;;  %v1844_v27 = vadd.f32 0.2548296, %v1828_v5  ;;  %v3942_v22 = vadd.f32 %v3755_v36, %v1488_v56 }
 0x4b3   :  { %v2019_v43 = vadd.f32 1.0, %v2003_v29  ;;  %2555 = vrcp.f32 %v1702_v14  ;;  %v3931_v45 = vmul.f32 0.70710677, %v3922_v52  ;;  %v1671_v4 = vand.u32 2147483647, %v3926_v47 }
 0x4b4   :  { %v1860_v30 = vmul.f32 %v3846_v55, %v1844_v27  ;;  %v2552_v19 = vpop.eup %2551  ;;  %v1877_v55 = vsub.f32 0.0, %v1669_v59  ;;  %v3945_v0 = vmul.f32 0.70710677, %v3935_v13  ;;  %v1878_v18 = vsub.f32 0.0, %v1670_v49 }
 0x4b5   :  { %v3928_v33 = vmul.f32 %v2019_v43, %v1635_v23  ;;  %v1672_v16 = vand.u32 2147483647, %v3931_v45  ;;  %v1687_v44 = vmul.f32 0.3275911, %v1671_v4  ;;  %v3948_v37 = vmul.f32 0.70710677, %v3942_v22 }
 0x4b6   :  { %v1940_v20 = vmul.f32 %v2552_v19, %v1860_v30  ;;  %vm1972_vm14 = vcmp.ge.f32.partialorder %v3772_v42, 0.0  ;;  %v1893_v40 = vmul.f32 %v1877_v55, %v1669_v59  ;;  %v1673_v36 = vand.u32 2147483647, %v3945_v0 }
 0x4b7   :  { %v3938_v48 = vadd.f32 %v2058_v61, %v3928_v33  ;;  %v1688_v58 = vmul.f32 0.3275911, %v1672_v16  ;;  %v1703_v32 = vadd.f32 1.0, %v1687_v44  ;;  %v1636_v38 = vmul.f32 0.5, %v3753_v6 }
 0x4b8   :  { %v1956_v12 = vsub.f32 1.0, %v1940_v20  ;;  %v1689_v24 = vmul.f32 0.3275911, %v1673_v36  ;;  %v1894_v8 = vmul.f32 %v1878_v18, %v1670_v49  ;;  %v1674_v57 = vand.u32 2147483647, %v3948_v37 }
 0x4b9   :  { %v3950_v39 = vpop.eup %2553  ;;  %v1704_v54 = vadd.f32 1.0, %v1688_v58  ;;  %2557 = vrcp.f32 %v1703_v32  ;;  %v1918_v59 = vmul.f32 1.442695, %v1893_v40  ;;  %v1879_v29 = vsub.f32 0.0, %v1671_v4 }
 0x4ba   :  { %v1988_v17 = vsub.f32 0.0, %v1956_v12  ;;  %v1733_v60 = vmul.f32 1.0614054, %v3950_v39  ;;  %v1705_v5 = vadd.f32 1.0, %v1689_v24  ;;  %v1690_v27 = vmul.f32 0.3275911, %v1674_v57 }
 0x4bb   :  { %2559 = vrcp.f32 %v1704_v54  ;;  %v1920_v43 = vmul.f32 1.442695, %v1894_v8  ;;  %v1880_v49 = vsub.f32 0.0, %v1672_v16  ;;  %v3968_v20 = vadd.f32 %v3759_v34, %v1488_v56 }
 0x4bc   :  { %v2004_v51 = vsel %vm1972_vm14, %v1956_v12, %v1988_v17  ;;  %v1749_v15 = vadd.f32 -1.4531521, %v1733_v60  ;;  %2561 = vrcp.f32 %v1705_v5  ;;  %v1706_v30 = vadd.f32 1.0, %v1690_v27 }
 0x4bd   :  { %v2020_v61 = vadd.f32 1.0, %v2004_v51  ;;  %v3956_v10 = vpop.eup %2555  ;;  %2563 = vpow2.f32 %v1918_v59  ;;  %v1895_v12 = vmul.f32 %v1879_v29, %v1671_v4  ;;  %v3977_v17 = vmul.f32 0.5, %v3786_v31 }
 0x4be   :  { %v1734_v7 = vmul.f32 1.0614054, %v3956_v10  ;;  %v1765_v14 = vmul.f32 %v3950_v39, %v1749_v15  ;;  %2565 = vrcp.f32 %v1706_v30  ;;  %v1896_v32 = vmul.f32 %v1880_v49, %v1672_v16 }
 0x4bf   :  { %v3959_v42 = vmul.f32 %v2020_v61, %v1636_v38  ;;  %2567 = vpow2.f32 %v1920_v43  ;;  %v1881_v4 = vsub.f32 0.0, %v1673_v36  ;;  %v1922_v60 = vmul.f32 1.442695, %v1895_v12 }
 0x4c0   :  { %v1750_v46 = vadd.f32 -1.4531521, %v1734_v7  ;;  %v1781_v23 = vadd.f32 1.4214138, %v1765_v14  ;;  %v1882_v61 = vsub.f32 0.0, %v1674_v57  ;;  %vm1973_vm15 = vcmp.ge.f32.partialorder %v3882_v9, 0.0 }
 0x4c1   :  { %v3964_v6 = vadd.f32 %v2046_v28, %v3959_v42  ;;  %v3972_v28 = vmul.f32 0.70710677, %v3968_v20  ;;  %v1924_v59 = vmul.f32 1.442695, %v1896_v32  ;;  %v1897_v29 = vmul.f32 %v1881_v4, %v1673_v36 }
 0x4c2   :  { %v1766_v19 = vmul.f32 %v3956_v10, %v1750_v46  ;;  %v1797_v55 = vmul.f32 %v3950_v39, %v1781_v23  ;;  %v1638_v23 = vmul.f32 0.5, %v3800_v41  ;;  %v1898_v12 = vmul.f32 %v1882_v61, %v1674_v57 }
 0x4c3   :  { %v3974_v58 = vpop.eup %2557  ;;  %v1675_v54 = vand.u32 2147483647, %v3972_v28  ;;  %v1926_v41 = vmul.f32 1.442695, %v1897_v29  ;;  %vm1974_vm4 = vcmp.ge.f32.partialorder %v3898_v35, 0.0  ;;  %vm1975_vm5 = vcmp.ge.f32.partialorder %v3926_v47, 0.0 }
 0x4c4   :  { %v1782_v44 = vadd.f32 1.4214138, %v1766_v19  ;;  %v1813_v18 = vadd.f32 -0.28449672, %v1797_v55  ;;  %v1735_v56 = vmul.f32 1.0614054, %v3974_v58 }
 0x4c5   :  { %v3979_v40 = vpop.eup %2559  ;;  %v1691_v15 = vmul.f32 0.3275911, %v1675_v54  ;;  %vm1976_vm6 = vcmp.ge.f32.partialorder %v3931_v45, 0.0  ;;  %vm1977_vm7 = vcmp.ge.f32.partialorder %v3945_v0, 0.0  ;;  %vm1978_vm8 = vcmp.ge.f32.partialorder %v3948_v37, 0.0 }
 0x4c6   :  { %v1798_v34 = vmul.f32 %v3956_v10, %v1782_v44  ;;  %v1829_v51 = vmul.f32 %v3950_v39, %v1813_v18  ;;  %v1736_v38 = vmul.f32 1.0614054, %v3979_v40  ;;  %v1751_v24 = vadd.f32 -1.4531521, %v1735_v56  ;;  %v3986_v7 = vpop.eup %2561 }
 0x4c7   :  { %v1707_v27 = vadd.f32 1.0, %v1691_v15  ;;  %v1737_v49 = vmul.f32 1.0614054, %v3986_v7  ;;  %v2564_v30 = vpop.eup %2563  ;;  %v1642_v0 = vmul.f32 0.5, %v3942_v22  ;;  %vm1979_vm9 = vcmp.ge.f32.partialorder %v3972_v28, 0.0 }
 0x4c8   :  { %v1814_v31 = vadd.f32 -0.28449672, %v1798_v34  ;;  %v1845_v8 = vadd.f32 0.2548296, %v1829_v51  ;;  %v1752_v16 = vadd.f32 -1.4531521, %v1736_v38  ;;  %v1767_v14 = vmul.f32 %v3974_v58, %v1751_v24  ;;  %v3994_v34 = vpop.eup %2565 }
 0x4c9   :  { %2569 = vrcp.f32 %v1707_v27  ;;  %v1753_v32 = vadd.f32 -1.4531521, %v1737_v49  ;;  %v2568_v56 = vpop.eup %2567  ;;  %v1738_v57 = vmul.f32 1.0614054, %v3994_v34 }
 0x4ca   :  { %v1830_v5 = vmul.f32 %v3956_v10, %v1814_v31  ;;  %v1861_v46 = vmul.f32 %v3950_v39, %v1845_v8  ;;  %v1768_v43 = vmul.f32 %v3979_v40, %v1752_v16  ;;  %v1783_v55 = vadd.f32 1.4214138, %v1767_v14 }
 0x4cb   :  { %2571 = vpow2.f32 %v1922_v60  ;;  %v1769_v38 = vmul.f32 %v3986_v7, %v1753_v32  ;;  %v1928_v31 = vmul.f32 1.442695, %v1898_v12  ;;  %v1883_v8 = vsub.f32 0.0, %v1675_v54 }
 0x4cc   :  { %v1846_v19 = vadd.f32 0.2548296, %v1830_v5  ;;  %v1941_v44 = vmul.f32 %v2564_v30, %v1861_v46  ;;  %v1784_v18 = vadd.f32 1.4214138, %v1768_v43  ;;  %v1799_v39 = vmul.f32 %v3974_v58, %v1783_v55 }
 0x4cd   :  { %2573 = vpow2.f32 %v1924_v59  ;;  %v1754_v5 = vadd.f32 -1.4531521, %v1738_v57  ;;  %v1899_v55 = vmul.f32 %v1883_v8, %v1675_v54 }
 0x4ce   :  { %v1862_v36 = vmul.f32 %v3956_v10, %v1846_v19  ;;  %v1957_v4 = vsub.f32 1.0, %v1941_v44  ;;  %v1800_v51 = vmul.f32 %v3979_v40, %v1784_v18  ;;  %v1815_v61 = vadd.f32 -0.28449672, %v1799_v39 }
 0x4cf   :  { %v1785_v10 = vadd.f32 1.4214138, %v1769_v38  ;;  %2575 = vpow2.f32 %v1926_v41  ;;  %v1770_v49 = vmul.f32 %v3994_v34, %v1754_v5 }
 0x4d0   :  { %v1942_v60 = vmul.f32 %v2568_v56, %v1862_v36  ;;  %v1989_v24 = vsub.f32 0.0, %v1957_v4  ;;  %v1816_v15 = vadd.f32 -0.28449672, %v1800_v51  ;;  %v1831_v59 = vmul.f32 %v3974_v58, %v1815_v61 }
 0x4d1   :  { %v1801_v27 = vmul.f32 %v3986_v7, %v1785_v10  ;;  %2577 = vpow2.f32 %v1928_v31  ;;  %v1786_v32 = vadd.f32 1.4214138, %v1770_v49 }
 0x4d2   :  { %v1958_v16 = vsub.f32 1.0, %v1942_v60  ;;  %v2005_v14 = vsel %vm1973_vm15, %v1957_v4, %v1989_v24  ;;  %v1832_v29 = vmul.f32 %v3979_v40, %v1816_v15  ;;  %v1847_v43 = vadd.f32 0.2548296, %v1831_v59 }
 0x4d3   :  { %v2021_v9 = vadd.f32 1.0, %v2005_v14  ;;  %v1817_v19 = vadd.f32 -0.28449672, %v1801_v27  ;;  %v2570_v12 = vpop.eup %2569  ;;  %v1802_v57 = vmul.f32 %v3994_v34, %v1786_v32  ;;  %v1930_v15 = vmul.f32 1.442695, %v1899_v55 }
 0x4d4   :  { %v1990_v46 = vsub.f32 0.0, %v1958_v16  ;;  %v1848_v30 = vadd.f32 0.2548296, %v1832_v29  ;;  %v1863_v35 = vmul.f32 %v3974_v58, %v1847_v43  ;;  %v1739_v4 = vmul.f32 1.0614054, %v2570_v12 }
 0x4d5   :  { %v4008_v44 = vmul.f32 %v2021_v9, %v3977_v17  ;;  %v2572_v36 = vpop.eup %2571  ;;  %v1833_v56 = vmul.f32 %v3986_v7, %v1817_v19  ;;  %v1818_v24 = vadd.f32 -0.28449672, %v1802_v57  ;;  %2579 = vpow2.f32 %v1930_v15 }
 0x4d6   :  { %v2006_v18 = vsel %vm1974_vm4, %v1958_v16, %v1990_v46  ;;  %v1864_v41 = vmul.f32 %v3979_v40, %v1848_v30  ;;  %v1943_v54 = vmul.f32 %v2572_v36, %v1863_v35  ;;  %v1755_v58 = vadd.f32 -1.4531521, %v1739_v4 }
 0x4d7   :  { %v2022_v39 = vadd.f32 1.0, %v2006_v18  ;;  %v2574_v51 = vpop.eup %2573  ;;  %v2060_v38 = vadd.f32 %v3938_v48, %v4008_v44  ;;  %v1849_v61 = vadd.f32 0.2548296, %v1833_v56  ;;  %v1639_v48 = vmul.f32 0.5, %v3918_v53 }
 0x4d8   :  { %v1944_v60 = vmul.f32 %v2574_v51, %v1864_v41  ;;  %v1959_v31 = vsub.f32 1.0, %v1943_v54  ;;  %v1771_v16 = vmul.f32 %v2570_v12, %v1755_v58  ;;  %v1640_v53 = vmul.f32 0.5, %v3922_v52 }
 0x4d9   :  { %v4016_v17 = vmul.f32 %v2022_v39, %v1638_v23  ;;  %v1865_v8 = vmul.f32 %v3986_v7, %v1849_v61  ;;  %v2576_v59 = vpop.eup %2575  ;;  %v1834_v23 = vmul.f32 %v3994_v34, %v1818_v24  ;;  %v1641_v4 = vmul.f32 0.5, %v3935_v13 }
 0x4da   :  { %v1960_v10 = vsub.f32 1.0, %v1944_v60  ;;  %v1991_v5 = vsub.f32 0.0, %v1959_v31  ;;  %v1787_v27 = vadd.f32 1.4214138, %v1771_v16 }
 0x4db   :  { %v2048_v40 = vadd.f32 %v3964_v6, %v4016_v17  ;;  %v1945_v29 = vmul.f32 %v2576_v59, %v1865_v8  ;;  %v1850_v46 = vadd.f32 0.2548296, %v1834_v23  ;;  %v2578_v6 = vpop.eup %2577  ;;  %v1643_v59 = vmul.f32 0.5, %v3968_v20 }
 0x4dc   :  { %v1992_v14 = vsub.f32 0.0, %v1960_v10  ;;  %v2007_v9 = vsel %vm1975_vm5, %v1959_v31, %v1991_v5  ;;  %v1803_v30 = vmul.f32 %v2570_v12, %v1787_v27 }
 0x4dd   :  { %v2023_v43 = vadd.f32 1.0, %v2007_v9  ;;  %v1961_v49 = vsub.f32 1.0, %v1945_v29  ;;  %v1866_v55 = vmul.f32 %v3994_v34, %v1850_v46 }
 0x4de   :  { %v2008_v7 = vsel %vm1976_vm6, %v1960_v10, %v1992_v14  ;;  %v1819_v35 = vadd.f32 -0.28449672, %v1803_v30 }
 0x4df   :  { %v2024_v19 = vadd.f32 1.0, %v2008_v7  ;;  %v2039_v18 = vmul.f32 %v2023_v43, %v1639_v48  ;;  %v1993_v47 = vsub.f32 0.0, %v1961_v49  ;;  %v1946_v36 = vmul.f32 %v2578_v6, %v1866_v55  ;;  %v2580_v61 = vpop.eup %2579 }
 0x4e0   :  { %v1835_v41 = vmul.f32 %v2570_v12, %v1819_v35 }
 0x4e1   :  { %v2040_v32 = vmul.f32 %v2024_v19, %v1640_v53  ;;  %v2061_v45 = vadd.f32 %v2060_v38, %v2039_v18  ;;  %v2009_v39 = vsel %vm1977_vm7, %v1961_v49, %v1993_v47  ;;  %v1962_v54 = vsub.f32 1.0, %v1946_v36 }
 0x4e2   :  { %v2025_v51 = vadd.f32 1.0, %v2009_v39  ;;  %v1851_v57 = vadd.f32 0.2548296, %v1835_v41 }
 0x4e3   :  { %v2049_v56 = vadd.f32 %v2048_v40, %v2040_v32  ;;  %v1994_v60 = vsub.f32 0.0, %v1962_v54 }
 0x4e4   :  { %v2041_v52 = vmul.f32 %v2025_v51, %v1641_v4  ;;  %v1867_v34 = vmul.f32 %v2570_v12, %v1851_v57 }
 0x4e5   :  { %v2010_v31 = vsel %vm1978_vm8, %v1962_v54, %v1994_v60 }
 0x4e6   :  { %v2062_v58 = vadd.f32 %v2061_v45, %v2041_v52  ;;  %v2026_v24 = vadd.f32 1.0, %v2010_v31  ;;  %v1947_v38 = vmul.f32 %v2580_v61, %v1867_v34 }
 0x4e8   :  { %v2042_v15 = vmul.f32 %v2026_v24, %v1642_v0  ;;  %v1963_v10 = vsub.f32 1.0, %v1947_v38 }
 0x4ea   :  { %v2050_v40 = vadd.f32 %v2049_v56, %v2042_v15  ;;  %v1995_v8 = vsub.f32 0.0, %v1963_v10 }
 0x4ec   :  { %v2051_v13 = vrot.slane %v2050_v40, 4  ;;  %v2011_v16 = vsel %vm1979_vm9, %v1963_v10, %v1995_v8 }
 0x4ed   :  { %v2027_v48 = vadd.f32 1.0, %v2011_v16 }
 0x4ee   :  { %v2052_v37 = vadd.f32 %v2051_v13, %v2050_v40 }
 0x4ef   :  { %v2043_v12 = vmul.f32 %v2027_v48, %v1643_v59 }
 0x4f0   :  { %v2053_v5 = vrot.slane %v2052_v37, 2 }
 0x4f1   :  { %v2063_v23 = vadd.f32 %v2062_v58, %v2043_v12 }
 0x4f2   :  { %v2054_v14 = vadd.f32 %v2053_v5, %v2052_v37 }
 0x4f3   :  { %v2064_v29 = vrot.slane %v2063_v23, 4 }
 0x4f4   :  { %v2055_v22 = vrot.slane %v2054_v14, 1 }
 0x4f5   :  { %v2065_v27 = vadd.f32 %v2064_v29, %v2063_v23 }
 0x4f6   :  { %v2056_v9 = vadd.f32 %v2055_v22, %v2054_v14 }
 0x4f7   :  { %v2066_v46 = vrot.slane %v2065_v27, 2 }
 0x4f8   :  { %v2070_v6 = vmul.f32 0.015625, %v2056_v9 }
 0x4f9   :  { %v2067_v43 = vadd.f32 %v2066_v46, %v2065_v27 }
 0x4fa   :  { %v4034_v7 = vsub.f32 %v3895_v62, %v2070_v6  ;;  %v4037_v28 = vsub.f32 %v3911_v26, %v2070_v6  ;;  %v4040_v20 = vsub.f32 %v3959_v42, %v2070_v6  ;;  %v4043_v49 = vsub.f32 %v4016_v17, %v2070_v6 }
 0x4fb   :  { %v4045_v30 = vsub.f32 %v2040_v32, %v2070_v6  ;;  %v4047_v53 = vsub.f32 %v2042_v15, %v2070_v6  ;;  %v2068_v19 = vrot.slane %v2067_v43, 1  ;;  %v4050_v55 = vsub.f32 %v3854_v25, %v2070_v6 }
 0x4fc   :  { %v4053_v62 = vsub.f32 %v3860_v21, %v2070_v6  ;;  %v2098_v60 = vmul.f32 %v4043_v49, %v4043_v49 }
 0x4fd   :  { %v2069_v47 = vadd.f32 %v2068_v19, %v2067_v43  ;;  %v2088_v26 = vmul.f32 %v4050_v55, %v4050_v55  ;;  %v2100_v31 = vmul.f32 %v4045_v30, %v4045_v30  ;;  %v2102_v15 = vmul.f32 %v4047_v53, %v4047_v53 }
 0x4fe   :  { %v2090_v42 = vmul.f32 %v4053_v62, %v4053_v62 }
 0x4ff   :  { %v2071_v17 = vmul.f32 0.015625, %v2069_v47 }
 0x500   :  { %v2104_v35 = vadd.f32 %v2090_v42, %v2088_v26 }
 0x501   :  { %v4060_v32 = vsub.f32 %v3901_v63, %v2071_v17  ;;  %v4063_v36 = vsub.f32 %v3928_v33, %v2071_v17  ;;  %v4066_v25 = vsub.f32 %v4008_v44, %v2071_v17  ;;  %v4068_v21 = vsub.f32 %v2039_v18, %v2071_v17 }
 0x502   :  { %v4070_v45 = vsub.f32 %v2041_v52, %v2071_v17  ;;  %v4072_v39 = vsub.f32 %v2043_v12, %v2071_v17  ;;  %v4075_v41 = vsub.f32 %v3872_v50, %v2071_v17  ;;  %v2075_v56 = vsub.f32 %v3878_v11, %v2071_v17  ;;  %v2159_v17 = vpop.permute.xlu1 %2158 }
 0x503   :  { %v2092_v63 = vmul.f32 %v4034_v7, %v4034_v7  ;;  %v2094_v44 = vmul.f32 %v4037_v28, %v4037_v28  ;;  %v2093_v51 = vmul.f32 %v4060_v32, %v4060_v32  ;;  %v2096_v50 = vmul.f32 %v4040_v20, %v4040_v20 }
 0x504   :  { %v2089_v33 = vmul.f32 %v4075_v41, %v4075_v41  ;;  %v2091_v4 = vmul.f32 %v2075_v56, %v2075_v56  ;;  %v2095_v11 = vmul.f32 %v4063_v36, %v4063_v36  ;;  %v2097_v61 = vmul.f32 %v4066_v25, %v4066_v25 }
 0x505   :  { %v2105_v18 = vadd.f32 %v2104_v35, %v2092_v63  ;;  %v2099_v24 = vmul.f32 %v4068_v21, %v4068_v21  ;;  %v2101_v40 = vmul.f32 %v4070_v45, %v4070_v45  ;;  %v2103_v16 = vmul.f32 %v4072_v39, %v4072_v39  ;;  %v2155_v35 = vpop.permute.xlu0 %2154 }
 0x506   :  { %v2117_v54 = vadd.f32 %v2091_v4, %v2089_v33  ;;  %v2163_v63 = vpop.permute.xlu1 %2162 }
 0x507   :  { %v2106_v57 = vadd.f32 %v2105_v18, %v2094_v44 }
 0x508   :  { %v2118_v52 = vadd.f32 %v2117_v54, %v2093_v51 }
 0x509   :  { %v2107_v34 = vadd.f32 %v2106_v57, %v2096_v50  ;;  %v2167_v4 = vpop.permute.xlu0 %2166 }
 0x50a   :  { %v2119_v58 = vadd.f32 %v2118_v52, %v2095_v11 }
 0x50b   :  { %v2108_v0 = vadd.f32 %v2107_v34, %v2098_v60 }
 0x50c   :  { %v2120_v38 = vadd.f32 %v2119_v58, %v2097_v61 }
 0x50d   :  { %v2109_v10 = vadd.f32 %v2108_v0, %v2100_v31  ;;  %v2171_v31 = vpop.permute.xlu1 %2170 }
 0x50e   :  { %v2121_v8 = vadd.f32 %v2120_v38, %v2099_v24 }
 0x50f   :  { %v2110_v13 = vadd.f32 %v2109_v10, %v2102_v15 }
 0x510   :  { %v2122_v59 = vadd.f32 %v2121_v8, %v2101_v40 }
 0x511   :  { %v2111_v48 = vrot.slane %v2110_v13, 4 }
 0x512   :  { %v2123_v37 = vadd.f32 %v2122_v59, %v2103_v16  ;;  %v2179_v16 = vpop.permute.xlu1 %2178 }
 0x513   :  { %v2112_v12 = vadd.f32 %v2111_v48, %v2110_v13 }
 0x514   :  { %v2124_v5 = vrot.slane %v2123_v37, 4 }
 0x515   :  { %v2113_v23 = vrot.slane %v2112_v12, 2 }
 0x516   :  { %v2125_v14 = vadd.f32 %v2124_v5, %v2123_v37 }
 0x517   :  { %v2114_v29 = vadd.f32 %v2113_v23, %v2112_v12 }
 0x518   :  { %v2126_v22 = vrot.slane %v2125_v14, 2 }
 0x519   :  { %v2115_v27 = vrot.slane %v2114_v29, 1 }
 0x51a   :  { %v2127_v9 = vadd.f32 %v2126_v22, %v2125_v14 }
 0x51b   :  { %v2116_v46 = vadd.f32 %v2115_v27, %v2114_v29 }
 0x51c   :  { %v2128_v6 = vrot.slane %v2127_v9, 1 }
 0x51d   :  { %v2130_v43 = vmul.f32 0.015625, %v2116_v46 }
 0x51e   :  { %v2129_v19 = vadd.f32 %v2128_v6, %v2127_v9 }
 0x51f   :  { %v2132_v47 = vadd.f32 1e-05, %v2130_v43 }
 0x520   :  { %v2131_v26 = vmul.f32 0.015625, %v2129_v19 }
 0x521   :  { %2581 = vrsqrt.f32 %v2132_v47 }
 0x522   :  { %v2133_v42 = vadd.f32 1e-05, %v2131_v26 }
 0x524   :  { %2583 = vrsqrt.f32 %v2133_v42 }
 0x52b   :  { %v2582_v33 = vpop.eup %2581 }
 0x52c   :  { %v2138_v44 = vmul.f32 %v2582_v33, %v4053_v62  ;;  %v2136_v18 = vmul.f32 %v2582_v33, %v4050_v55  ;;  %v2140_v51 = vmul.f32 %v2582_v33, %v4034_v7  ;;  %v2142_v54 = vmul.f32 %v2582_v33, %v4037_v28 }
 0x52d   :  { %v2144_v50 = vmul.f32 %v2582_v33, %v4040_v20  ;;  %v2146_v57 = vmul.f32 %v2582_v33, %v4043_v49  ;;  %v2148_v11 = vmul.f32 %v2582_v33, %v4045_v30  ;;  %v2150_v52 = vmul.f32 %v2582_v33, %v4047_v53  ;;  %v2175_v53 = vpop.permute.xlu0 %2174 }
 0x52e   :  { %v2584_v60 = vpop.eup %2583  ;;  %v2187_v34 = vmul.f32 %v2159_v17, %v2138_v44  ;;  %v2185_v61 = vmul.f32 %v2155_v35, %v2136_v18  ;;  %v2189_v0 = vmul.f32 %v2163_v63, %v2140_v51  ;;  %v2191_v15 = vmul.f32 %v2167_v4, %v2142_v54 }
 0x52f   :  { %v2139_v58 = vmul.f32 %v2584_v60, %v2075_v56  ;;  %v2137_v62 = vmul.f32 %v2584_v60, %v4075_v41  ;;  %v2141_v55 = vmul.f32 %v2584_v60, %v4060_v32  ;;  %v2143_v7 = vmul.f32 %v2584_v60, %v4063_v36 }
 0x530   :  { %v2201_v28 = vadd.f32 %v2187_v34, %v2185_v61  ;;  %v2145_v20 = vmul.f32 %v2584_v60, %v4066_v25  ;;  %v2147_v49 = vmul.f32 %v2584_v60, %v4068_v21  ;;  %v2149_v41 = vmul.f32 %v2584_v60, %v4070_v45 }
 0x531   :  { %v2188_v30 = vmul.f32 %v2159_v17, %v2139_v58  ;;  %v2186_v24 = vmul.f32 %v2155_v35, %v2137_v62  ;;  %v2190_v56 = vmul.f32 %v2163_v63, %v2141_v55  ;;  %v2151_v32 = vmul.f32 %v2584_v60, %v4072_v39  ;;  %v2183_v37 = vpop.permute.xlu0 %2182  ;;  %v2315_v63 = vld [vmem:[%s4139_s1 + $0x1] ss:$4 sm:$0x3]  ;;  %s2674_s1 = smov [#allocation9]  }
 0x532   :  { %v2202_v38 = vadd.f32 %v2201_v28, %v2189_v0  ;;  %v2193_v36 = vmul.f32 %v2171_v31, %v2144_v50  ;;  %v2192_v13 = vmul.f32 %v2167_v4, %v2143_v7  ;;  %v2195_v25 = vmul.f32 %v2175_v53, %v2146_v57  ;;  %v2231_v4 = vpop.permute.xlu1 %2230  ;;  %s2285_s28 = sshll.u32 %s2674_s1, 4  ;;  %s2286_s28 = int_to_ptr.vmem [resolvable:$true] %s2285_s28 }
 0x533   :  { %v2214_v10 = vadd.f32 %v2188_v30, %v2186_v24  ;;  %v2194_v21 = vmul.f32 %v2171_v31, %v2145_v20  ;;  %v2197_v5 = vmul.f32 %v2179_v16, %v2148_v11  ;;  %v2196_v14 = vmul.f32 %v2175_v53, %v2147_v49  ;;  %s2629_s6 = scalar_lea.vmem %s2286_s28, 32  ;;  %p2634_p3 = scmp.lt.s32.totalorder %s2286_s28, %s2286_s28 }
 0x534   :  { %v2203_v40 = vadd.f32 %v2202_v38, %v2191_v15  ;;  %v2199_v22 = vmul.f32 %v2183_v37, %v2150_v52  ;;  %v2198_v45 = vmul.f32 %v2179_v16, %v2149_v41  ;;  %v2200_v46 = vmul.f32 %v2183_v37, %v2151_v32  ;;  %p2630_p2 = scmp.ne.s32.totalorder %s2286_s28, %s2629_s6  ;;  %p2635_p4 = scmp.lt.s32.totalorder %s2629_s6, %s2629_s6 }
 0x535   :  { %v2215_v8 = vadd.f32 %v2214_v10, %v2190_v56  ;;  %v2239_v51 = vrot.slane %v2315_v63, %v2733_v2  ;;  %v2243_v11 = vrot.slane %v2315_v63, %v2736_v3  ;;  %v2673_v52 = vmov 1966171168   ;;  %v2250_v34 = vpop.permute.xlu0 %2249 }
 0x536   :  { %v2204_v59 = vadd.f32 %v2203_v40, %v2193_v36  ;;  %v2260_v60 = vunpack.c.l.s4 %v2673_v52  ;;  %v4145_v30 = vlaneseq  ;;  %p2636_p5 = por %p2635_p4, %p2634_p3 }
 0x537   :  { %v2216_v48 = vadd.f32 %v2215_v8, %v2192_v13 }
 0x538   :  { %v2205_v12 = vadd.f32 %v2204_v59, %v2195_v25  ;;  %v2261_v7 = vunpack.c.0.s8 %v2260_v60  ;;  %vm2276_vm0 = vcmp.lt.s32.totalorder %v4145_v30, 256  ;;  %p2637_p6 = pnand %p2636_p5, %p2630_p2 }
 0x539   :  { %v2217_v23 = vadd.f32 %v2216_v48, %v2194_v21 }
 0x53a   :  { %v2206_v29 = vadd.f32 %v2205_v12, %v2197_v5  ;;  %v2264_v0 = vsub.s32 %v2261_v7, %v2730_v1 }
 0x53b   :  { %v2218_v27 = vadd.f32 %v2217_v23, %v2196_v14 }
 0x53c   :  { %v2207_v9 = vadd.f32 %v2206_v29, %v2199_v22 }
 0x53d   :  { %v2219_v39 = vadd.f32 %v2218_v27, %v2198_v45 }
 0x53e   :  { %v2208_v6 = vrot.slane %v2207_v9, 4 }
 0x53f   :  { %v2220_v43 = vadd.f32 %v2219_v39, %v2200_v46 }
 0x540   :  { %v2209_v19 = vadd.f32 %v2208_v6, %v2207_v9 }
 0x541   :  { %v2221_v47 = vrot.slane %v2220_v43, 4 }
 0x542   :  { %v2210_v26 = vrot.slane %v2209_v19, 2 }
 0x543   :  { %v2222_v42 = vadd.f32 %v2221_v47, %v2220_v43 }
 0x544   :  { %v2211_v17 = vadd.f32 %v2210_v26, %v2209_v19 }
 0x545   :  { %v2223_v35 = vrot.slane %v2222_v42, 2 }
 0x546   :  { %v2212_v33 = vrot.slane %v2211_v17, 1 }
 0x547   :  { %v2224_v44 = vadd.f32 %v2223_v35, %v2222_v42 }
 0x548   :  { %v2213_v18 = vadd.f32 %v2212_v33, %v2211_v17 }
 0x549   :  { %v2225_v54 = vrot.slane %v2224_v44, 1 }
 0x54a   :  { %v2233_v50 = vadd.f32 %v2231_v4, %v2213_v18 }
 0x54b   :  { %v2226_v57 = vadd.f32 %v2225_v54, %v2224_v44 }
 0x54c   :  { %v2246_v61 = vmul.f32 %v2239_v51, %v2233_v50 }
 0x54d   :  { %v2234_v58 = vadd.f32 %v2231_v4, %v2226_v57 }
 0x54e   :  { %v2252_v62 = vadd.f32 %v2250_v34, %v2246_v61 }
 0x54f   :  { %v2247_v55 = vmul.f32 %v2243_v11, %v2234_v58 }
 0x550   :  { %v2254_v28 = vmul.f32 %v2252_v62, %v2239_v51 }
 0x551   :  { %v2253_v31 = vadd.f32 %v2250_v34, %v2247_v55 }
 0x553   :  { %v2255_v20 = vmul.f32 %v2253_v31, %v2243_v11 }
 0x555   :  { %v2258_v49 = vcombine.low %v2254_v28, %v2255_v20 }
 0x557   :  { %v2265_v2 = vrot.slane %v2258_v49, %v2264_v0 }
 0x559   :  { %v2272_v3 = vrot.slane %v2265_v2, %v2264_v0 }
 0x55b   :  { %2278 = vst.msk [vmem:[#allocation9] sm:$0x3] %vm2276_vm0, %v2272_v3 }
 0x55c   :  { %2640 = shalt.err (!%p2637_p6)
}
 0x55d   :  { %s2641_s9 = scalar_lea.hbm %s4143_s5, 32 }
 0x55e   :  { %p2642_p7 = scmp.ne.s32.totalorder %s4143_s5, %s2641_s9  ;;  %p2645_p8 = scmp.lt.u32.totalorder %s2641_s9, %s4143_s5 }
 0x560   :  { %p2647_p9 = pnand %p2645_p8, %p2642_p7 }
 0x562   :  { %2650 = shalt.err (!%p2647_p9)
}
 0x563   :  { %2288 = dma.vmem_to_hbm [thread:$0]  %s2286_s28, 32, %s4143_s5, [#allocation6]  }
 0x564   :  { %2655 = dma.done.wait [#allocation6], 32  }
 0x565   :  { %2656 = vsyncadd [#allocation6], 4294967264 }
 0x566   :  { %2292 = vsyncpa [#allocation5], 1 }
 0x567   :  { %2293 = vsyncpa [#allocation8], 1 }
 0x568   :  { %2294 = vsyncpa [#allocation6], 1 }

</bundles_post_ra>
